<compile_context>
chip_gen: v7x
topology: tpu7x:2x2x1
jax: 0.10.0
libtpu: 0.0.40
codegen_flags: <defaults>
</compile_context>

<pallas_src>
import functools
import numpy as np
import jax
import jax.numpy as jnp
from jax import lax
from jax.experimental import pallas as pl
from jax.experimental.pallas import tpu as pltpu

# Scaled-down configuration (original: LSTM_UNITS=128, seq=220, embed=300).
LSTM_UNITS = 32
DENSE_HIDDEN_UNITS = 4 * LSTM_UNITS      # 128
EMBED_SIZE = 32
MAX_FEATURES = 64
BATCH = 2
SEQ = 8


# --------------------------------------------------------------------------
# Fused Pallas kernel: BiLSTM x2 + avg/max pooling + dense head.
# One grid step processes one batch block of `block_B` rows.
# --------------------------------------------------------------------------
def _fused_bilstm_head_kernel(
        x_ref,                                           # (T, block_B, E) time-major
        wih1_ref, whh1f_ref, whh1b_ref, b1_ref,          # layer-1 (fwd|bwd fused wih/b)
        wih2a_ref, wih2b_ref, whh2f_ref, whh2b_ref, b2_ref,
        w12_ref, b12_ref, wo_ref, bo_ref,                # dense head (w1|w2 fused)
        out_ref,                                         # (block_B, 1)
        gf_seq, gb_seq, h1f_seq, h1b_seq):               # VMEM scratch
    T, B, E = x_ref.shape
    H = whh1f_ref.shape[0]
    G = 4 * H
    f32 = jnp.float32
    unroll = True if T <= 16 else 2
    CH = T if T <= 32 else 32                            # projection chunk along time

    def mxu(a, w):
        # MXU matmul with f32 accumulation; LHS cast to the weight dtype.
        return jnp.dot(a.astype(w.dtype), w, preferred_element_type=f32)

    def cell(g_in, h, c, whh_ref):
        # g_in already contains x_t @ W_ih + (b_ih + b_hh), precomputed.
        # Recurrent matmul stays f32 (operand rounding would compound over T).
        gates = g_in.astype(f32) + jnp.dot(h, whh_ref[...], preferred_element_type=f32)
        if G <= 128:
            # Toy config: whole gate row fits one vreg -> two full-vreg EUP passes.
            sig = jax.nn.sigmoid(gates)
            tnh = jnp.tanh(gates)
            i, f, o = sig[:, 0:H], sig[:, H:2 * H], sig[:, 3 * H:4 * H]
            g = tnh[:, 2 * H:3 * H]
        else:
            # H=128 production config: slices are lane-aligned -> only the required
            # ~5H transcendental elements per row (EUP is the recurrence bottleneck).
            i_f = jax.nn.sigmoid(gates[:, 0:2 * H])
            o = jax.nn.sigmoid(gates[:, 3 * H:4 * H])
            g = jnp.tanh(gates[:, 2 * H:3 * H])
            i, f = i_f[:, 0:H], i_f[:, H:2 * H]
        c_new = f * c + i * g
        h_new = o * jnp.tanh(c_new)
        return h_new, c_new

    zeros = jnp.zeros((B, H), f32)
    gdt = gf_seq.dtype
    hdt = h1f_seq.dtype

    # ---------------- Layer 1: chunked input projection ------------------
    # One (chunk*B, E) x (E, 8H) matmul per chunk; fwd gates in cols 0:4H,
    # bwd gates in cols 4H:8H (lane-aligned split).  Bias folded in.
    for t0 in range(0, T, CH):
        t1 = min(t0 + CH, T)
        n = t1 - t0
        x_flat = x_ref[t0:t1].reshape(n * B, E)
        g_all = mxu(x_flat, wih1_ref[...]) + b1_ref[...]          # (n*B, 8H) f32
        gf_seq[t0:t1] = g_all[:, 0:G].astype(gdt).reshape(n, B, G)
        gb_seq[t0:t1] = g_all[:, G:2 * G].astype(gdt).reshape(n, B, G)

    # ---------------- Layer 1: recurrence ---------------------------------
    def l1_step(t, carry):
        hf, cf, hb, cb = carry
        tb = T - 1 - t
        hf, cf = cell(gf_seq[t], hf, cf, whh1f_ref)               # forward direction
        hb, cb = cell(gb_seq[tb], hb, cb, whh1b_ref)              # backward direction
        h1f_seq[t] = hf.astype(hdt)
        h1b_seq[tb] = hb.astype(hdt)
        return hf, cf, hb, cb

    lax.fori_loop(0, T, l1_step, (zeros, zeros, zeros, zeros), unroll=unroll)

    # ---------------- Layer 2: chunked input projection -------------------
    # Layer-2 input is concat([h1_fwd, h1_bwd]); the (2H, 8H) fused weight is
    # pre-split by input half (wih2a rows for h1_fwd, wih2b rows for h1_bwd)
    # so no per-step lane concat is needed.  gf/gb scratch is reused (the
    # layer-1 gate inputs are fully consumed at this point).
    for t0 in range(0, T, CH):
        t1 = min(t0 + CH, T)
        n = t1 - t0
        hf_flat = h1f_seq[t0:t1].reshape(n * B, H)
        hb_flat = h1b_seq[t0:t1].reshape(n * B, H)
        g_all = (mxu(hf_flat, wih2a_ref[...]) + mxu(hb_flat, wih2b_ref[...])
                 + b2_ref[...])                                   # (n*B, 8H) f32
        gf_seq[t0:t1] = g_all[:, 0:G].astype(gdt).reshape(n, B, G)
        gb_seq[t0:t1] = g_all[:, G:2 * G].astype(gdt).reshape(n, B, G)

    # ---------------- Layer 2 recurrence with fused avg/max pooling -------
    neg_inf = jnp.full((B, H), -jnp.inf, f32)

    def l2_step(t, carry):
        hf, cf, hb, cb, sf, sb, mf, mb = carry
        tb = T - 1 - t
        hf, cf = cell(gf_seq[t], hf, cf, whh2f_ref)
        hb, cb = cell(gb_seq[tb], hb, cb, whh2b_ref)
        return (hf, cf, hb, cb,
                sf + hf, sb + hb,
                jnp.maximum(mf, hf), jnp.maximum(mb, hb))

    (_, _, _, _, sf, sb, mf, mb) = lax.fori_loop(
        0, T, l2_step,
        (zeros, zeros, zeros, zeros, zeros, zeros, neg_inf, neg_inf),
        unroll=unroll)

    # ---------------- Dense head epilogue ---------------------------------
    inv_t = 1.0 / T
    # h_conc = cat([max_pool, avg_pool], 1) with max/avg = [fwd half, bwd half].
    h_conc = jnp.concatenate([mf, mb, sf * inv_t, sb * inv_t], axis=1)   # (B, 4H)
    h12 = jnp.maximum(mxu(h_conc, w12_ref[...]) + b12_ref[...], 0.0)     # (B, 8H)
    hidden = h_conc + h12[:, 0:G] + h12[:, G:2 * G]
    out_ref[...] = (mxu(hidden, wo_ref[...]) + bo_ref[...]).astype(out_ref.dtype)


def fused_bilstm_head(x_emb, params, *, matmul_dtype=jnp.float32, block_b=None):
    """x_emb: (B, T, E) batch-first embeddings. Returns (B, 1) f32."""
    B, T, E = x_emb.shape
    l1, l2, hd = params["lstm1"], params["lstm2"], params["head"]
    H = l1["whh_f"].shape[0]
    G = 4 * H
    md = matmul_dtype
    md_size = jnp.dtype(md).itemsize
    # Sublane tile of the matmul dtype: 8 rows (f32) / 16 rows (bf16) -> avoids
    # Mosaic relayout copies on the (T, block_B, E) input block.
    sub = 8 * (4 // md_size)

    if block_b is None:
        # Sized for v7x's 64 MiB VMEM (the tightest gen); raise on v6e/v5e
        # (128 MiB physical) for better recurrence MXU utilization.
        block_b = 64 if md_size == 2 else 32
    block_b = max(sub, (block_b // sub) * sub)
    block_b = min(block_b, ((B + sub - 1) // sub) * sub)
    Bp = ((B + block_b - 1) // block_b) * block_b
    num_blocks = Bp // block_b

    if Bp != B:
        x_emb = jnp.pad(x_emb, ((0, Bp - B), (0, 0), (0, 0)))
    # Time-major layout so per-step loads are contiguous leading-axis indexing.
    x_tm = jnp.transpose(x_emb, (1, 0, 2)).astype(md)

    # ---- Fused weights (done once in the JAX wrapper; glue only) ---------
    # Layer 1: wih fwd|bwd lane-concatenated -> one (E, 8H) projection weight.
    wih1 = jnp.concatenate([l1["wih_f"], l1["wih_b"]], axis=1).astype(md)      # (E, 8H)
    b1 = jnp.concatenate([l1["b_f"], l1["b_b"]], axis=1)                       # (1, 8H)
    # Layer 2: split the (2H, 4H) weights by input half, lane-concat fwd|bwd.
    wih2a = jnp.concatenate([l2["wih_f"][0:H], l2["wih_b"][0:H]], axis=1).astype(md)       # (H, 8H)
    wih2b = jnp.concatenate([l2["wih_f"][H:2 * H], l2["wih_b"][H:2 * H]], axis=1).astype(md)
    b2 = jnp.concatenate([l2["b_f"], l2["b_b"]], axis=1)                       # (1, 8H)
    # Head: w1|w2 fused into one (4H, 8H) matmul.
    w12 = jnp.concatenate([hd["w1"], hd["w2"]], axis=1).astype(md)             # (4H, 8H)
    b12 = jnp.concatenate([hd["b1"], hd["b2"]], axis=1)                        # (1, 8H)
    wo = hd["wo"].astype(md)
    bo = hd["bo"]
    # Recurrent weights stay f32 (h @ Whh kept in f32 for numerical stability).
    weights = (wih1, l1["whh_f"], l1["whh_b"], b1,
               wih2a, wih2b, l2["whh_f"], l2["whh_b"], b2,
               w12, b12, wo, bo)

    # Gate-input / layer-1-hidden scratch in the matmul dtype: exact on the f32
    # path, halves the dominant VMEM buffers on the bf16 path.
    gate_dtype = md

    weight_bytes = sum(int(np.prod(w.shape)) * jnp.dtype(w.dtype).itemsize for w in weights)
    est = (2 * T * block_b * E * md_size              # double-buffered x block
           + 2 * T * block_b * G * jnp.dtype(gate_dtype).itemsize   # gate scratch
           + 2 * T * block_b * H * md_size            # layer-1 hidden scratch
           + min(T, 32) * block_b * 2 * G * 4         # chunked projection f32 intermediate
           + 2 * weight_bytes + 2 * block_b * 4)
    vmem_limit = int(min(56 * 1024 * 1024, max(32 * 1024 * 1024, est * 3 // 2)))

    def full_spec(shape):
        return pl.BlockSpec(shape, lambda b: (0,) * len(shape))   # resident, DMA'd once

    grid_spec = pltpu.PrefetchScalarGridSpec(
        num_scalar_prefetch=0,
        grid=(num_blocks,),
        in_specs=[pl.BlockSpec((T, block_b, E), lambda b: (0, b, 0))]
                 + [full_spec(w.shape) for w in weights],
        out_specs=pl.BlockSpec((block_b, 1), lambda b: (b, 0)),
        scratch_shapes=[
            pltpu.VMEM((T, block_b, G), gate_dtype),   # fwd gate-input sequence (reused L2)
            pltpu.VMEM((T, block_b, G), gate_dtype),   # bwd gate-input sequence (reused L2)
            pltpu.VMEM((T, block_b, H), md),           # layer-1 fwd hidden sequence
            pltpu.VMEM((T, block_b, H), md),           # layer-1 bwd hidden sequence
        ])

    out = pl.pallas_call(
        _fused_bilstm_head_kernel,
        out_shape=jax.ShapeDtypeStruct((Bp, 1), jnp.float32),
        grid_spec=grid_spec,
        compiler_params=pltpu.CompilerParams(
            dimension_semantics=("parallel",),         # batch blocks across TCs (v7x)
            vmem_limit_bytes=vmem_limit),
    )(x_tm, *weights)
    return out[:B]


# --------------------------------------------------------------------------
# Full forward (Pallas path).
# --------------------------------------------------------------------------
def neural_net_forward(tokens, params, *, matmul_dtype=jnp.float32, block_b=None):
    # Frozen embedding lookup — plain-JAX gather glue; table cast to the matmul
    # dtype first so the gathered (B,T,E) HBM traffic is halved on the bf16 path.
    # TODO(synk): fold the gather into the kernel via PrefetchScalarGridSpec + pl.Element.
    emb = params["embedding"]
    if jnp.dtype(matmul_dtype).itemsize < 4:
        emb = emb.astype(matmul_dtype)
    h_emb = jnp.take(emb, tokens, axis=0)                        # (B, T, E)
    # SpatialDropout(0.3) is Dropout2d; identity at inference time.
    return fused_bilstm_head(h_emb, params, matmul_dtype=matmul_dtype,
                             block_b=block_b)                    # (B, 1)


# --------------------------------------------------------------------------
# Pure-JAX reference for correctness check.
# --------------------------------------------------------------------------
def _lstm_dir_ref(x, wih, whh, b, reverse):
    H = whh.shape[0]
    B = x.shape[0]

    def cell(carry, x_t):
        h, c = carry
        gates = x_t @ wih + h @ whh + b[0]
        i = jax.nn.sigmoid(gates[:, 0:H])
        f = jax.nn.sigmoid(gates[:, H:2 * H])
        g = jnp.tanh(gates[:, 2 * H:3 * H])
        o = jax.nn.sigmoid(gates[:, 3 * H:4 * H])
        c = f * c + i * g
        h = o * jnp.tanh(c)
        return (h, c), h

    xs = jnp.swapaxes(x, 0, 1)
    if reverse:
        xs = xs[::-1]
    init = (jnp.zeros((B, H), jnp.float32), jnp.zeros((B, H), jnp.float32))
    _, hs = lax.scan(cell, init, xs)
    if reverse:
        hs = hs[::-1]
    return jnp.swapaxes(hs, 0, 1)


def _bilstm_ref(x, p):
    fwd = _lstm_dir_ref(x, p["wih_f"], p["whh_f"], p["b_f"], reverse=False)
    bwd = _lstm_dir_ref(x, p["wih_b"], p["whh_b"], p["b_b"], reverse=True)
    return jnp.concatenate([fwd, bwd], axis=-1)


def neural_net_forward_ref(tokens, params):
    h_emb = jnp.take(params["embedding"], tokens, axis=0)
    h1 = _bilstm_ref(h_emb, params["lstm1"])
    h2 = _bilstm_ref(h1, params["lstm2"])
    p = params["head"]
    avg_pool = jnp.mean(h2, axis=1)
    max_pool = jnp.max(h2, axis=1)
    h_conc = jnp.concatenate([max_pool, avg_pool], axis=1)
    l1 = jax.nn.relu(h_conc @ p["w1"] + p["b1"])
    l2 = jax.nn.relu(h_conc @ p["w2"] + p["b2"])
    hidden = h_conc + l1 + l2
    return hidden @ p["wo"] + p["bo"]


# --------------------------------------------------------------------------
# Deterministic parameter construction (PyTorch-style uniform(-k, k) scaling).
# --------------------------------------------------------------------------
def make_params(key):
    def u(key, shape, k):
        return jax.random.uniform(key, shape, jnp.float32, -k, k)

    keys = jax.random.split(key, 32)
    ki = iter(keys)
    H = LSTM_UNITS
    k_lstm = 1.0 / np.sqrt(H)
    k_dense = 1.0 / np.sqrt(DENSE_HIDDEN_UNITS)

    def lstm_params(in_dim):
        return {
            # stored transposed: (in_dim, 4H) / (H, 4H); bias = b_ih + b_hh as (1, 4H)
            "wih_f": u(next(ki), (in_dim, 4 * H), k_lstm),
            "whh_f": u(next(ki), (H, 4 * H), k_lstm),
            "b_f": u(next(ki), (1, 4 * H), k_lstm) + u(next(ki), (1, 4 * H), k_lstm),
            "wih_b": u(next(ki), (in_dim, 4 * H), k_lstm),
            "whh_b": u(next(ki), (H, 4 * H), k_lstm),
            "b_b": u(next(ki), (1, 4 * H), k_lstm) + u(next(ki), (1, 4 * H), k_lstm),
        }

    params = {
        "embedding": jax.random.normal(next(ki), (MAX_FEATURES, EMBED_SIZE), jnp.float32),
        "lstm1": lstm_params(EMBED_SIZE),
        "lstm2": lstm_params(2 * H),
        "head": {
            "w1": u(next(ki), (DENSE_HIDDEN_UNITS, DENSE_HIDDEN_UNITS), k_dense),
            "b1": u(next(ki), (1, DENSE_HIDDEN_UNITS), k_dense),
            "w2": u(next(ki), (DENSE_HIDDEN_UNITS, DENSE_HIDDEN_UNITS), k_dense),
            "b2": u(next(ki), (1, DENSE_HIDDEN_UNITS), k_dense),
            "wo": u(next(ki), (DENSE_HIDDEN_UNITS, 1), k_dense),
            "bo": u(next(ki), (1, 1), k_dense),
            # linear_aux_out exists in __init__ but its output is not returned by
            # forward(); omitted from the kernel path on purpose.
        },
    }
    return params


if __name__ == "__main__":
    key = jax.random.PRNGKey(0)
    pkey, tkey = jax.random.split(key)
    params = make_params(pkey)
    tokens = jax.random.randint(tkey, (BATCH, SEQ), 0, MAX_FEATURES, dtype=jnp.int32)

    fwd_f32 = jax.jit(functools.partial(neural_net_forward, matmul_dtype=jnp.float32))
    fwd_bf16 = jax.jit(functools.partial(neural_net_forward, matmul_dtype=jnp.bfloat16))

    out = jax.block_until_ready(fwd_f32(tokens, params))
    ref = jax.block_until_ready(jax.jit(neural_net_forward_ref)(tokens, params))
    np.testing.assert_allclose(np.asarray(out), np.asarray(ref), rtol=2e-3, atol=2e-3)

    # bf16 matmul-operand path (all gens, incl. v5e); recurrence, gate elementwise
    # math, pooling and accumulation stay f32.
    out_bf16 = jax.block_until_ready(fwd_bf16(tokens, params))
    assert np.all(np.isfinite(np.asarray(out_bf16)))
    np.testing.assert_allclose(np.asarray(out_bf16), np.asarray(ref), rtol=1.5e-1, atol=1.5e-1)

    assert out.shape == (BATCH, 1) and out.dtype == jnp.float32
    print("KERNEL_OK")
</pallas_src>

<mosaic_0001>
module attributes {stable_mosaic.version = 11 : i64} {
  func.func @_fused_bilstm_head_kernel(%arg0: i32, %arg1: memref<8x8x32xf32, #tpu.memory_space<vmem>>, %arg2: memref<32x256xf32, #tpu.memory_space<vmem>>, %arg3: memref<32x128xf32, #tpu.memory_space<vmem>>, %arg4: memref<32x128xf32, #tpu.memory_space<vmem>>, %arg5: memref<1x256xf32, #tpu.memory_space<vmem>>, %arg6: memref<32x256xf32, #tpu.memory_space<vmem>>, %arg7: memref<32x256xf32, #tpu.memory_space<vmem>>, %arg8: memref<32x128xf32, #tpu.memory_space<vmem>>, %arg9: memref<32x128xf32, #tpu.memory_space<vmem>>, %arg10: memref<1x256xf32, #tpu.memory_space<vmem>>, %arg11: memref<128x256xf32, #tpu.memory_space<vmem>>, %arg12: memref<1x256xf32, #tpu.memory_space<vmem>>, %arg13: memref<128x1xf32, #tpu.memory_space<vmem>>, %arg14: memref<1x1xf32, #tpu.memory_space<vmem>>, %arg15: memref<8x1xf32, #tpu.memory_space<vmem>>, %arg16: memref<8x8x128xf32, #tpu.memory_space<vmem>>, %arg17: memref<8x8x128xf32, #tpu.memory_space<vmem>>, %arg18: memref<8x8x32xf32, #tpu.memory_space<vmem>>, %arg19: memref<8x8x32xf32, #tpu.memory_space<vmem>>) attributes {dimension_semantics = [#tpu.dimension_semantics<parallel>], iteration_bounds = array<i64: 1>, scalar_prefetch = 0 : i64, scratch_operands = 4 : i64, tpu.core_type = #tpu.core_type<tc>, window_params = [{transform_indices = @transform_0, window_bounds = array<i64: 8, 8, 32>}, {pipeline_mode = #tpu.pipeline_mode<synchronous>, transform_indices = @transform_1, window_bounds = array<i64: 32, 256>}, {pipeline_mode = #tpu.pipeline_mode<synchronous>, transform_indices = @transform_2, window_bounds = array<i64: 32, 128>}, {pipeline_mode = #tpu.pipeline_mode<synchronous>, transform_indices = @transform_3, window_bounds = array<i64: 32, 128>}, {pipeline_mode = #tpu.pipeline_mode<synchronous>, transform_indices = @transform_4, window_bounds = array<i64: 1, 256>}, {pipeline_mode = #tpu.pipeline_mode<synchronous>, transform_indices = @transform_5, window_bounds = array<i64: 32, 256>}, {pipeline_mode = #tpu.pipeline_mode<synchronous>, transform_indices = @transform_6, window_bounds = array<i64: 32, 256>}, {pipeline_mode = #tpu.pipeline_mode<synchronous>, transform_indices = @transform_7, window_bounds = array<i64: 32, 128>}, {pipeline_mode = #tpu.pipeline_mode<synchronous>, transform_indices = @transform_8, window_bounds = array<i64: 32, 128>}, {pipeline_mode = #tpu.pipeline_mode<synchronous>, transform_indices = @transform_9, window_bounds = array<i64: 1, 256>}, {pipeline_mode = #tpu.pipeline_mode<synchronous>, transform_indices = @transform_10, window_bounds = array<i64: 128, 256>}, {pipeline_mode = #tpu.pipeline_mode<synchronous>, transform_indices = @transform_11, window_bounds = array<i64: 1, 256>}, {pipeline_mode = #tpu.pipeline_mode<synchronous>, transform_indices = @transform_12, window_bounds = array<i64: 128, 1>}, {pipeline_mode = #tpu.pipeline_mode<synchronous>, transform_indices = @transform_13, window_bounds = array<i64: 1, 1>}, {transform_indices = @transform_14, window_bounds = array<i64: 8, 1>}]} {
    %cst = arith.constant 0.000000e+00 : f32
    %0 = vector.broadcast %cst : f32 to vector<8x32xf32>
    %c0 = arith.constant 0 : index
    %c0_0 = arith.constant 0 : index
    %c0_1 = arith.constant 0 : index
    %1 = vector.load %arg1[%c0, %c0_0, %c0_1] : memref<8x8x32xf32, #tpu.memory_space<vmem>>, vector<8x8x32xf32>
    %2 = vector.shape_cast %1 : vector<8x8x32xf32> to vector<64x32xf32>
    %c0_2 = arith.constant 0 : index
    %c0_3 = arith.constant 0 : index
    %3 = vector.load %arg2[%c0_2, %c0_3] : memref<32x256xf32, #tpu.memory_space<vmem>>, vector<32x256xf32>
    %cst_4 = arith.constant dense<0.000000e+00> : vector<64x256xf32>
    %4 = tpu.matmul %2, %3, %cst_4 {dimension_numbers = #tpu.dot_dimension_numbers<[1], [0], [0], [1], [0, 0, 1, 1], [], []>} : vector<64x32xf32>, vector<32x256xf32>, vector<64x256xf32> -> vector<64x256xf32>
    %c0_5 = arith.constant 0 : index
    %c0_6 = arith.constant 0 : index
    %5 = vector.load %arg5[%c0_5, %c0_6] : memref<1x256xf32, #tpu.memory_space<vmem>>, vector<1x256xf32>
    %6 = vector.broadcast %5 : vector<1x256xf32> to vector<64x256xf32>
    %7 = arith.addf %4, %6 : vector<64x256xf32>
    %8 = vector.extract_strided_slice %7 {offsets = [0, 0], sizes = [64, 128], strides = [1, 1]} : vector<64x256xf32> to vector<64x128xf32>
    %9 = vector.shape_cast %8 : vector<64x128xf32> to vector<8x8x128xf32>
    %c0_7 = arith.constant 0 : index
    %c0_8 = arith.constant 0 : index
    %c0_9 = arith.constant 0 : index
    %10 = vector.load %arg16[%c0_7, %c0_8, %c0_9] : memref<8x8x128xf32, #tpu.memory_space<vmem>>, vector<8x8x128xf32>
    tpu.vector_store %arg16[%c0_7, %c0_8, %c0_9], %9 {strides = array<i32>} : memref<8x8x128xf32, #tpu.memory_space<vmem>>, vector<8x8x128xf32>,
    %11 = vector.extract_strided_slice %7 {offsets = [0, 128], sizes = [64, 128], strides = [1, 1]} : vector<64x256xf32> to vector<64x128xf32>
    %12 = vector.shape_cast %11 : vector<64x128xf32> to vector<8x8x128xf32>
    %c0_10 = arith.constant 0 : index
    %c0_11 = arith.constant 0 : index
    %c0_12 = arith.constant 0 : index
    %13 = vector.load %arg17[%c0_10, %c0_11, %c0_12] : memref<8x8x128xf32, #tpu.memory_space<vmem>>, vector<8x8x128xf32>
    tpu.vector_store %arg17[%c0_10, %c0_11, %c0_12], %12 {strides = array<i32>} : memref<8x8x128xf32, #tpu.memory_space<vmem>>, vector<8x8x128xf32>,
    %c0_i32 = arith.constant 0 : i32
    %c7_i32 = arith.constant 7 : i32
    %14 = arith.subi %c7_i32, %c0_i32 : i32
    %15 = arith.index_cast %c0_i32 : i32 to index
    %c0_13 = arith.constant 0 : index
    %c0_14 = arith.constant 0 : index
    %16 = vector.load %arg16[%15, %c0_13, %c0_14] : memref<8x8x128xf32, #tpu.memory_space<vmem>>, vector<1x8x128xf32>
    %17 = vector.shape_cast %16 : vector<1x8x128xf32> to vector<8x128xf32>
    %c0_15 = arith.constant 0 : index
    %c0_16 = arith.constant 0 : index
    %18 = vector.load %arg3[%c0_15, %c0_16] : memref<32x128xf32, #tpu.memory_space<vmem>>, vector<32x128xf32>
    %cst_17 = arith.constant dense<0.000000e+00> : vector<8x128xf32>
    %19 = tpu.matmul %0, %18, %cst_17 {dimension_numbers = #tpu.dot_dimension_numbers<[1], [0], [0], [1], [0, 0, 1, 1], [], []>} : vector<8x32xf32>, vector<32x128xf32>, vector<8x128xf32> -> vector<8x128xf32>
    %20 = arith.addf %17, %19 : vector<8x128xf32>
    %21 = arith.negf %20 : vector<8x128xf32>
    %22 = math.exp %21 : vector<8x128xf32>
    %cst_18 = arith.constant 1.000000e+00 : f32
    %23 = vector.broadcast %cst_18 : f32 to vector<8x128xf32>
    %24 = arith.addf %23, %22 : vector<8x128xf32>
    %25 = arith.divf %23, %24 : vector<8x128xf32>
    %26 = math.tanh %20 : vector<8x128xf32>
    %27 = vector.extract_strided_slice %25 {offsets = [0, 0], sizes = [8, 32], strides = [1, 1]} : vector<8x128xf32> to vector<8x32xf32>
    %28 = vector.extract_strided_slice %25 {offsets = [0, 32], sizes = [8, 32], strides = [1, 1]} : vector<8x128xf32> to vector<8x32xf32>
    %29 = vector.extract_strided_slice %25 {offsets = [0, 96], sizes = [8, 32], strides = [1, 1]} : vector<8x128xf32> to vector<8x32xf32>
    %30 = vector.extract_strided_slice %26 {offsets = [0, 64], sizes = [8, 32], strides = [1, 1]} : vector<8x128xf32> to vector<8x32xf32>
    %31 = arith.mulf %28, %0 : vector<8x32xf32>
    %32 = arith.mulf %27, %30 : vector<8x32xf32>
    %33 = arith.addf %31, %32 : vector<8x32xf32>
    %34 = math.tanh %33 : vector<8x32xf32>
    %35 = arith.mulf %29, %34 : vector<8x32xf32>
    %36 = arith.index_cast %14 : i32 to index
    %c0_19 = arith.constant 0 : index
    %c0_20 = arith.constant 0 : index
    %37 = vector.load %arg17[%36, %c0_19, %c0_20] : memref<8x8x128xf32, #tpu.memory_space<vmem>>, vector<1x8x128xf32>
    %38 = vector.shape_cast %37 : vector<1x8x128xf32> to vector<8x128xf32>
    %c0_21 = arith.constant 0 : index
    %c0_22 = arith.constant 0 : index
    %39 = vector.load %arg4[%c0_21, %c0_22] : memref<32x128xf32, #tpu.memory_space<vmem>>, vector<32x128xf32>
    %cst_23 = arith.constant dense<0.000000e+00> : vector<8x128xf32>
    %40 = tpu.matmul %0, %39, %cst_23 {dimension_numbers = #tpu.dot_dimension_numbers<[1], [0], [0], [1], [0, 0, 1, 1], [], []>} : vector<8x32xf32>, vector<32x128xf32>, vector<8x128xf32> -> vector<8x128xf32>
    %41 = arith.addf %38, %40 : vector<8x128xf32>
    %42 = arith.negf %41 : vector<8x128xf32>
    %43 = math.exp %42 : vector<8x128xf32>
    %cst_24 = arith.constant 1.000000e+00 : f32
    %44 = vector.broadcast %cst_24 : f32 to vector<8x128xf32>
    %45 = arith.addf %44, %43 : vector<8x128xf32>
    %46 = arith.divf %44, %45 : vector<8x128xf32>
    %47 = math.tanh %41 : vector<8x128xf32>
    %48 = vector.extract_strided_slice %46 {offsets = [0, 0], sizes = [8, 32], strides = [1, 1]} : vector<8x128xf32> to vector<8x32xf32>
    %49 = vector.extract_strided_slice %46 {offsets = [0, 32], sizes = [8, 32], strides = [1, 1]} : vector<8x128xf32> to vector<8x32xf32>
    %50 = vector.extract_strided_slice %46 {offsets = [0, 96], sizes = [8, 32], strides = [1, 1]} : vector<8x128xf32> to vector<8x32xf32>
    %51 = vector.extract_strided_slice %47 {offsets = [0, 64], sizes = [8, 32], strides = [1, 1]} : vector<8x128xf32> to vector<8x32xf32>
    %52 = arith.mulf %49, %0 : vector<8x32xf32>
    %53 = arith.mulf %48, %51 : vector<8x32xf32>
    %54 = arith.addf %52, %53 : vector<8x32xf32>
    %55 = math.tanh %54 : vector<8x32xf32>
    %56 = arith.mulf %50, %55 : vector<8x32xf32>
    %57 = arith.index_cast %c0_i32 : i32 to index
    %c0_25 = arith.constant 0 : index
    %c0_26 = arith.constant 0 : index
    %58 = vector.load %arg18[%57, %c0_25, %c0_26] : memref<8x8x32xf32, #tpu.memory_space<vmem>>, vector<1x8x32xf32>
    %59 = vector.shape_cast %58 : vector<1x8x32xf32> to vector<8x32xf32>
    %60 = vector.shape_cast %35 : vector<8x32xf32> to vector<1x8x32xf32>
    tpu.vector_store %arg18[%57, %c0_25, %c0_26], %60 {strides = array<i32>} : memref<8x8x32xf32, #tpu.memory_space<vmem>>, vector<1x8x32xf32>,
    %61 = arith.index_cast %14 : i32 to index
    %c0_27 = arith.constant 0 : index
    %c0_28 = arith.constant 0 : index
    %62 = vector.load %arg19[%61, %c0_27, %c0_28] : memref<8x8x32xf32, #tpu.memory_space<vmem>>, vector<1x8x32xf32>
    %63 = vector.shape_cast %62 : vector<1x8x32xf32> to vector<8x32xf32>
    %64 = vector.shape_cast %56 : vector<8x32xf32> to vector<1x8x32xf32>
    tpu.vector_store %arg19[%61, %c0_27, %c0_28], %64 {strides = array<i32>} : memref<8x8x32xf32, #tpu.memory_space<vmem>>, vector<1x8x32xf32>,
    %c1_i32 = arith.constant 1 : i32
    %c7_i32_29 = arith.constant 7 : i32
    %65 = arith.subi %c7_i32_29, %c1_i32 : i32
    %66 = arith.index_cast %c1_i32 : i32 to index
    %c0_30 = arith.constant 0 : index
    %c0_31 = arith.constant 0 : index
    %67 = vector.load %arg16[%66, %c0_30, %c0_31] : memref<8x8x128xf32, #tpu.memory_space<vmem>>, vector<1x8x128xf32>
    %68 = vector.shape_cast %67 : vector<1x8x128xf32> to vector<8x128xf32>
    %c0_32 = arith.constant 0 : index
    %c0_33 = arith.constant 0 : index
    %69 = vector.load %arg3[%c0_32, %c0_33] : memref<32x128xf32, #tpu.memory_space<vmem>>, vector<32x128xf32>
    %cst_34 = arith.constant dense<0.000000e+00> : vector<8x128xf32>
    %70 = tpu.matmul %35, %69, %cst_34 {dimension_numbers = #tpu.dot_dimension_numbers<[1], [0], [0], [1], [0, 0, 1, 1], [], []>} : vector<8x32xf32>, vector<32x128xf32>, vector<8x128xf32> -> vector<8x128xf32>
    %71 = arith.addf %68, %70 : vector<8x128xf32>
    %72 = arith.negf %71 : vector<8x128xf32>
    %73 = math.exp %72 : vector<8x128xf32>
    %cst_35 = arith.constant 1.000000e+00 : f32
    %74 = vector.broadcast %cst_35 : f32 to vector<8x128xf32>
    %75 = arith.addf %74, %73 : vector<8x128xf32>
    %76 = arith.divf %74, %75 : vector<8x128xf32>
    %77 = math.tanh %71 : vector<8x128xf32>
    %78 = vector.extract_strided_slice %76 {offsets = [0, 0], sizes = [8, 32], strides = [1, 1]} : vector<8x128xf32> to vector<8x32xf32>
    %79 = vector.extract_strided_slice %76 {offsets = [0, 32], sizes = [8, 32], strides = [1, 1]} : vector<8x128xf32> to vector<8x32xf32>
    %80 = vector.extract_strided_slice %76 {offsets = [0, 96], sizes = [8, 32], strides = [1, 1]} : vector<8x128xf32> to vector<8x32xf32>
    %81 = vector.extract_strided_slice %77 {offsets = [0, 64], sizes = [8, 32], strides = [1, 1]} : vector<8x128xf32> to vector<8x32xf32>
    %82 = arith.mulf %79, %33 : vector<8x32xf32>
    %83 = arith.mulf %78, %81 : vector<8x32xf32>
    %84 = arith.addf %82, %83 : vector<8x32xf32>
    %85 = math.tanh %84 : vector<8x32xf32>
    %86 = arith.mulf %80, %85 : vector<8x32xf32>
    %87 = arith.index_cast %65 : i32 to index
    %c0_36 = arith.constant 0 : index
    %c0_37 = arith.constant 0 : index
    %88 = vector.load %arg17[%87, %c0_36, %c0_37] : memref<8x8x128xf32, #tpu.memory_space<vmem>>, vector<1x8x128xf32>
    %89 = vector.shape_cast %88 : vector<1x8x128xf32> to vector<8x128xf32>
    %c0_38 = arith.constant 0 : index
    %c0_39 = arith.constant 0 : index
    %90 = vector.load %arg4[%c0_38, %c0_39] : memref<32x128xf32, #tpu.memory_space<vmem>>, vector<32x128xf32>
    %cst_40 = arith.constant dense<0.000000e+00> : vector<8x128xf32>
    %91 = tpu.matmul %56, %90, %cst_40 {dimension_numbers = #tpu.dot_dimension_numbers<[1], [0], [0], [1], [0, 0, 1, 1], [], []>} : vector<8x32xf32>, vector<32x128xf32>, vector<8x128xf32> -> vector<8x128xf32>
    %92 = arith.addf %89, %91 : vector<8x128xf32>
    %93 = arith.negf %92 : vector<8x128xf32>
    %94 = math.exp %93 : vector<8x128xf32>
    %cst_41 = arith.constant 1.000000e+00 : f32
    %95 = vector.broadcast %cst_41 : f32 to vector<8x128xf32>
    %96 = arith.addf %95, %94 : vector<8x128xf32>
    %97 = arith.divf %95, %96 : vector<8x128xf32>
    %98 = math.tanh %92 : vector<8x128xf32>
    %99 = vector.extract_strided_slice %97 {offsets = [0, 0], sizes = [8, 32], strides = [1, 1]} : vector<8x128xf32> to vector<8x32xf32>
    %100 = vector.extract_strided_slice %97 {offsets = [0, 32], sizes = [8, 32], strides = [1, 1]} : vector<8x128xf32> to vector<8x32xf32>
    %101 = vector.extract_strided_slice %97 {offsets = [0, 96], sizes = [8, 32], strides = [1, 1]} : vector<8x128xf32> to vector<8x32xf32>
    %102 = vector.extract_strided_slice %98 {offsets = [0, 64], sizes = [8, 32], strides = [1, 1]} : vector<8x128xf32> to vector<8x32xf32>
    %103 = arith.mulf %100, %54 : vector<8x32xf32>
    %104 = arith.mulf %99, %102 : vector<8x32xf32>
    %105 = arith.addf %103, %104 : vector<8x32xf32>
    %106 = math.tanh %105 : vector<8x32xf32>
    %107 = arith.mulf %101, %106 : vector<8x32xf32>
    %108 = arith.index_cast %c1_i32 : i32 to index
    %c0_42 = arith.constant 0 : index
    %c0_43 = arith.constant 0 : index
    %109 = vector.load %arg18[%108, %c0_42, %c0_43] : memref<8x8x32xf32, #tpu.memory_space<vmem>>, vector<1x8x32xf32>
    %110 = vector.shape_cast %109 : vector<1x8x32xf32> to vector<8x32xf32>
    %111 = vector.shape_cast %86 : vector<8x32xf32> to vector<1x8x32xf32>
    tpu.vector_store %arg18[%108, %c0_42, %c0_43], %111 {strides = array<i32>} : memref<8x8x32xf32, #tpu.memory_space<vmem>>, vector<1x8x32xf32>,
    %112 = arith.index_cast %65 : i32 to index
    %c0_44 = arith.constant 0 : index
    %c0_45 = arith.constant 0 : index
    %113 = vector.load %arg19[%112, %c0_44, %c0_45] : memref<8x8x32xf32, #tpu.memory_space<vmem>>, vector<1x8x32xf32>
    %114 = vector.shape_cast %113 : vector<1x8x32xf32> to vector<8x32xf32>
    %115 = vector.shape_cast %107 : vector<8x32xf32> to vector<1x8x32xf32>
    tpu.vector_store %arg19[%112, %c0_44, %c0_45], %115 {strides = array<i32>} : memref<8x8x32xf32, #tpu.memory_space<vmem>>, vector<1x8x32xf32>,
    %c2_i32 = arith.constant 2 : i32
    %c7_i32_46 = arith.constant 7 : i32
    %116 = arith.subi %c7_i32_46, %c2_i32 : i32
    %117 = arith.index_cast %c2_i32 : i32 to index
    %c0_47 = arith.constant 0 : index
    %c0_48 = arith.constant 0 : index
    %118 = vector.load %arg16[%117, %c0_47, %c0_48] : memref<8x8x128xf32, #tpu.memory_space<vmem>>, vector<1x8x128xf32>
    %119 = vector.shape_cast %118 : vector<1x8x128xf32> to vector<8x128xf32>
    %c0_49 = arith.constant 0 : index
    %c0_50 = arith.constant 0 : index
    %120 = vector.load %arg3[%c0_49, %c0_50] : memref<32x128xf32, #tpu.memory_space<vmem>>, vector<32x128xf32>
    %cst_51 = arith.constant dense<0.000000e+00> : vector<8x128xf32>
    %121 = tpu.matmul %86, %120, %cst_51 {dimension_numbers = #tpu.dot_dimension_numbers<[1], [0], [0], [1], [0, 0, 1, 1], [], []>} : vector<8x32xf32>, vector<32x128xf32>, vector<8x128xf32> -> vector<8x128xf32>
    %122 = arith.addf %119, %121 : vector<8x128xf32>
    %123 = arith.negf %122 : vector<8x128xf32>
    %124 = math.exp %123 : vector<8x128xf32>
    %cst_52 = arith.constant 1.000000e+00 : f32
    %125 = vector.broadcast %cst_52 : f32 to vector<8x128xf32>
    %126 = arith.addf %125, %124 : vector<8x128xf32>
    %127 = arith.divf %125, %126 : vector<8x128xf32>
    %128 = math.tanh %122 : vector<8x128xf32>
    %129 = vector.extract_strided_slice %127 {offsets = [0, 0], sizes = [8, 32], strides = [1, 1]} : vector<8x128xf32> to vector<8x32xf32>
    %130 = vector.extract_strided_slice %127 {offsets = [0, 32], sizes = [8, 32], strides = [1, 1]} : vector<8x128xf32> to vector<8x32xf32>
    %131 = vector.extract_strided_slice %127 {offsets = [0, 96], sizes = [8, 32], strides = [1, 1]} : vector<8x128xf32> to vector<8x32xf32>
    %132 = vector.extract_strided_slice %128 {offsets = [0, 64], sizes = [8, 32], strides = [1, 1]} : vector<8x128xf32> to vector<8x32xf32>
    %133 = arith.mulf %130, %84 : vector<8x32xf32>
    %134 = arith.mulf %129, %132 : vector<8x32xf32>
    %135 = arith.addf %133, %134 : vector<8x32xf32>
    %136 = math.tanh %135 : vector<8x32xf32>
    %137 = arith.mulf %131, %136 : vector<8x32xf32>
    %138 = arith.index_cast %116 : i32 to index
    %c0_53 = arith.constant 0 : index
    %c0_54 = arith.constant 0 : index
    %139 = vector.load %arg17[%138, %c0_53, %c0_54] : memref<8x8x128xf32, #tpu.memory_space<vmem>>, vector<1x8x128xf32>
    %140 = vector.shape_cast %139 : vector<1x8x128xf32> to vector<8x128xf32>
    %c0_55 = arith.constant 0 : index
    %c0_56 = arith.constant 0 : index
    %141 = vector.load %arg4[%c0_55, %c0_56] : memref<32x128xf32, #tpu.memory_space<vmem>>, vector<32x128xf32>
    %cst_57 = arith.constant dense<0.000000e+00> : vector<8x128xf32>
    %142 = tpu.matmul %107, %141, %cst_57 {dimension_numbers = #tpu.dot_dimension_numbers<[1], [0], [0], [1], [0, 0, 1, 1], [], []>} : vector<8x32xf32>, vector<32x128xf32>, vector<8x128xf32> -> vector<8x128xf32>
    %143 = arith.addf %140, %142 : vector<8x128xf32>
    %144 = arith.negf %143 : vector<8x128xf32>
    %145 = math.exp %144 : vector<8x128xf32>
    %cst_58 = arith.constant 1.000000e+00 : f32
    %146 = vector.broadcast %cst_58 : f32 to vector<8x128xf32>
    %147 = arith.addf %146, %145 : vector<8x128xf32>
    %148 = arith.divf %146, %147 : vector<8x128xf32>
    %149 = math.tanh %143 : vector<8x128xf32>
    %150 = vector.extract_strided_slice %148 {offsets = [0, 0], sizes = [8, 32], strides = [1, 1]} : vector<8x128xf32> to vector<8x32xf32>
    %151 = vector.extract_strided_slice %148 {offsets = [0, 32], sizes = [8, 32], strides = [1, 1]} : vector<8x128xf32> to vector<8x32xf32>
    %152 = vector.extract_strided_slice %148 {offsets = [0, 96], sizes = [8, 32], strides = [1, 1]} : vector<8x128xf32> to vector<8x32xf32>
    %153 = vector.extract_strided_slice %149 {offsets = [0, 64], sizes = [8, 32], strides = [1, 1]} : vector<8x128xf32> to vector<8x32xf32>
    %154 = arith.mulf %151, %105 : vector<8x32xf32>
    %155 = arith.mulf %150, %153 : vector<8x32xf32>
    %156 = arith.addf %154, %155 : vector<8x32xf32>
    %157 = math.tanh %156 : vector<8x32xf32>
    %158 = arith.mulf %152, %157 : vector<8x32xf32>
    %159 = arith.index_cast %c2_i32 : i32 to index
    %c0_59 = arith.constant 0 : index
    %c0_60 = arith.constant 0 : index
    %160 = vector.load %arg18[%159, %c0_59, %c0_60] : memref<8x8x32xf32, #tpu.memory_space<vmem>>, vector<1x8x32xf32>
    %161 = vector.shape_cast %160 : vector<1x8x32xf32> to vector<8x32xf32>
    %162 = vector.shape_cast %137 : vector<8x32xf32> to vector<1x8x32xf32>
    tpu.vector_store %arg18[%159, %c0_59, %c0_60], %162 {strides = array<i32>} : memref<8x8x32xf32, #tpu.memory_space<vmem>>, vector<1x8x32xf32>,
    %163 = arith.index_cast %116 : i32 to index
    %c0_61 = arith.constant 0 : index
    %c0_62 = arith.constant 0 : index
    %164 = vector.load %arg19[%163, %c0_61, %c0_62] : memref<8x8x32xf32, #tpu.memory_space<vmem>>, vector<1x8x32xf32>
    %165 = vector.shape_cast %164 : vector<1x8x32xf32> to vector<8x32xf32>
    %166 = vector.shape_cast %158 : vector<8x32xf32> to vector<1x8x32xf32>
    tpu.vector_store %arg19[%163, %c0_61, %c0_62], %166 {strides = array<i32>} : memref<8x8x32xf32, #tpu.memory_space<vmem>>, vector<1x8x32xf32>,
    %c3_i32 = arith.constant 3 : i32
    %c7_i32_63 = arith.constant 7 : i32
    %167 = arith.subi %c7_i32_63, %c3_i32 : i32
    %168 = arith.index_cast %c3_i32 : i32 to index
    %c0_64 = arith.constant 0 : index
    %c0_65 = arith.constant 0 : index
    %169 = vector.load %arg16[%168, %c0_64, %c0_65] : memref<8x8x128xf32, #tpu.memory_space<vmem>>, vector<1x8x128xf32>
    %170 = vector.shape_cast %169 : vector<1x8x128xf32> to vector<8x128xf32>
    %c0_66 = arith.constant 0 : index
    %c0_67 = arith.constant 0 : index
    %171 = vector.load %arg3[%c0_66, %c0_67] : memref<32x128xf32, #tpu.memory_space<vmem>>, vector<32x128xf32>
    %cst_68 = arith.constant dense<0.000000e+00> : vector<8x128xf32>
    %172 = tpu.matmul %137, %171, %cst_68 {dimension_numbers = #tpu.dot_dimension_numbers<[1], [0], [0], [1], [0, 0, 1, 1], [], []>} : vector<8x32xf32>, vector<32x128xf32>, vector<8x128xf32> -> vector<8x128xf32>
    %173 = arith.addf %170, %172 : vector<8x128xf32>
    %174 = arith.negf %173 : vector<8x128xf32>
    %175 = math.exp %174 : vector<8x128xf32>
    %cst_69 = arith.constant 1.000000e+00 : f32
    %176 = vector.broadcast %cst_69 : f32 to vector<8x128xf32>
    %177 = arith.addf %176, %175 : vector<8x128xf32>
    %178 = arith.divf %176, %177 : vector<8x128xf32>
    %179 = math.tanh %173 : vector<8x128xf32>
    %180 = vector.extract_strided_slice %178 {offsets = [0, 0], sizes = [8, 32], strides = [1, 1]} : vector<8x128xf32> to vector<8x32xf32>
    %181 = vector.extract_strided_slice %178 {offsets = [0, 32], sizes = [8, 32], strides = [1, 1]} : vector<8x128xf32> to vector<8x32xf32>
    %182 = vector.extract_strided_slice %178 {offsets = [0, 96], sizes = [8, 32], strides = [1, 1]} : vector<8x128xf32> to vector<8x32xf32>
    %183 = vector.extract_strided_slice %179 {offsets = [0, 64], sizes = [8, 32], strides = [1, 1]} : vector<8x128xf32> to vector<8x32xf32>
    %184 = arith.mulf %181, %135 : vector<8x32xf32>
    %185 = arith.mulf %180, %183 : vector<8x32xf32>
    %186 = arith.addf %184, %185 : vector<8x32xf32>
    %187 = math.tanh %186 : vector<8x32xf32>
    %188 = arith.mulf %182, %187 : vector<8x32xf32>
    %189 = arith.index_cast %167 : i32 to index
    %c0_70 = arith.constant 0 : index
    %c0_71 = arith.constant 0 : index
    %190 = vector.load %arg17[%189, %c0_70, %c0_71] : memref<8x8x128xf32, #tpu.memory_space<vmem>>, vector<1x8x128xf32>
    %191 = vector.shape_cast %190 : vector<1x8x128xf32> to vector<8x128xf32>
    %c0_72 = arith.constant 0 : index
    %c0_73 = arith.constant 0 : index
    %192 = vector.load %arg4[%c0_72, %c0_73] : memref<32x128xf32, #tpu.memory_space<vmem>>, vector<32x128xf32>
    %cst_74 = arith.constant dense<0.000000e+00> : vector<8x128xf32>
    %193 = tpu.matmul %158, %192, %cst_74 {dimension_numbers = #tpu.dot_dimension_numbers<[1], [0], [0], [1], [0, 0, 1, 1], [], []>} : vector<8x32xf32>, vector<32x128xf32>, vector<8x128xf32> -> vector<8x128xf32>
    %194 = arith.addf %191, %193 : vector<8x128xf32>
    %195 = arith.negf %194 : vector<8x128xf32>
    %196 = math.exp %195 : vector<8x128xf32>
    %cst_75 = arith.constant 1.000000e+00 : f32
    %197 = vector.broadcast %cst_75 : f32 to vector<8x128xf32>
    %198 = arith.addf %197, %196 : vector<8x128xf32>
    %199 = arith.divf %197, %198 : vector<8x128xf32>
    %200 = math.tanh %194 : vector<8x128xf32>
    %201 = vector.extract_strided_slice %199 {offsets = [0, 0], sizes = [8, 32], strides = [1, 1]} : vector<8x128xf32> to vector<8x32xf32>
    %202 = vector.extract_strided_slice %199 {offsets = [0, 32], sizes = [8, 32], strides = [1, 1]} : vector<8x128xf32> to vector<8x32xf32>
    %203 = vector.extract_strided_slice %199 {offsets = [0, 96], sizes = [8, 32], strides = [1, 1]} : vector<8x128xf32> to vector<8x32xf32>
    %204 = vector.extract_strided_slice %200 {offsets = [0, 64], sizes = [8, 32], strides = [1, 1]} : vector<8x128xf32> to vector<8x32xf32>
    %205 = arith.mulf %202, %156 : vector<8x32xf32>
    %206 = arith.mulf %201, %204 : vector<8x32xf32>
    %207 = arith.addf %205, %206 : vector<8x32xf32>
    %208 = math.tanh %207 : vector<8x32xf32>
    %209 = arith.mulf %203, %208 : vector<8x32xf32>
    %210 = arith.index_cast %c3_i32 : i32 to index
    %c0_76 = arith.constant 0 : index
    %c0_77 = arith.constant 0 : index
    %211 = vector.load %arg18[%210, %c0_76, %c0_77] : memref<8x8x32xf32, #tpu.memory_space<vmem>>, vector<1x8x32xf32>
    %212 = vector.shape_cast %211 : vector<1x8x32xf32> to vector<8x32xf32>
    %213 = vector.shape_cast %188 : vector<8x32xf32> to vector<1x8x32xf32>
    tpu.vector_store %arg18[%210, %c0_76, %c0_77], %213 {strides = array<i32>} : memref<8x8x32xf32, #tpu.memory_space<vmem>>, vector<1x8x32xf32>,
    %214 = arith.index_cast %167 : i32 to index
    %c0_78 = arith.constant 0 : index
    %c0_79 = arith.constant 0 : index
    %215 = vector.load %arg19[%214, %c0_78, %c0_79] : memref<8x8x32xf32, #tpu.memory_space<vmem>>, vector<1x8x32xf32>
    %216 = vector.shape_cast %215 : vector<1x8x32xf32> to vector<8x32xf32>
    %217 = vector.shape_cast %209 : vector<8x32xf32> to vector<1x8x32xf32>
    tpu.vector_store %arg19[%214, %c0_78, %c0_79], %217 {strides = array<i32>} : memref<8x8x32xf32, #tpu.memory_space<vmem>>, vector<1x8x32xf32>,
    %c4_i32 = arith.constant 4 : i32
    %c7_i32_80 = arith.constant 7 : i32
    %218 = arith.subi %c7_i32_80, %c4_i32 : i32
    %219 = arith.index_cast %c4_i32 : i32 to index
    %c0_81 = arith.constant 0 : index
    %c0_82 = arith.constant 0 : index
    %220 = vector.load %arg16[%219, %c0_81, %c0_82] : memref<8x8x128xf32, #tpu.memory_space<vmem>>, vector<1x8x128xf32>
    %221 = vector.shape_cast %220 : vector<1x8x128xf32> to vector<8x128xf32>
    %c0_83 = arith.constant 0 : index
    %c0_84 = arith.constant 0 : index
    %222 = vector.load %arg3[%c0_83, %c0_84] : memref<32x128xf32, #tpu.memory_space<vmem>>, vector<32x128xf32>
    %cst_85 = arith.constant dense<0.000000e+00> : vector<8x128xf32>
    %223 = tpu.matmul %188, %222, %cst_85 {dimension_numbers = #tpu.dot_dimension_numbers<[1], [0], [0], [1], [0, 0, 1, 1], [], []>} : vector<8x32xf32>, vector<32x128xf32>, vector<8x128xf32> -> vector<8x128xf32>
    %224 = arith.addf %221, %223 : vector<8x128xf32>
    %225 = arith.negf %224 : vector<8x128xf32>
    %226 = math.exp %225 : vector<8x128xf32>
    %cst_86 = arith.constant 1.000000e+00 : f32
    %227 = vector.broadcast %cst_86 : f32 to vector<8x128xf32>
    %228 = arith.addf %227, %226 : vector<8x128xf32>
    %229 = arith.divf %227, %228 : vector<8x128xf32>
    %230 = math.tanh %224 : vector<8x128xf32>
    %231 = vector.extract_strided_slice %229 {offsets = [0, 0], sizes = [8, 32], strides = [1, 1]} : vector<8x128xf32> to vector<8x32xf32>
    %232 = vector.extract_strided_slice %229 {offsets = [0, 32], sizes = [8, 32], strides = [1, 1]} : vector<8x128xf32> to vector<8x32xf32>
    %233 = vector.extract_strided_slice %229 {offsets = [0, 96], sizes = [8, 32], strides = [1, 1]} : vector<8x128xf32> to vector<8x32xf32>
    %234 = vector.extract_strided_slice %230 {offsets = [0, 64], sizes = [8, 32], strides = [1, 1]} : vector<8x128xf32> to vector<8x32xf32>
    %235 = arith.mulf %232, %186 : vector<8x32xf32>
    %236 = arith.mulf %231, %234 : vector<8x32xf32>
    %237 = arith.addf %235, %236 : vector<8x32xf32>
    %238 = math.tanh %237 : vector<8x32xf32>
    %239 = arith.mulf %233, %238 : vector<8x32xf32>
    %240 = arith.index_cast %218 : i32 to index
    %c0_87 = arith.constant 0 : index
    %c0_88 = arith.constant 0 : index
    %241 = vector.load %arg17[%240, %c0_87, %c0_88] : memref<8x8x128xf32, #tpu.memory_space<vmem>>, vector<1x8x128xf32>
    %242 = vector.shape_cast %241 : vector<1x8x128xf32> to vector<8x128xf32>
    %c0_89 = arith.constant 0 : index
    %c0_90 = arith.constant 0 : index
    %243 = vector.load %arg4[%c0_89, %c0_90] : memref<32x128xf32, #tpu.memory_space<vmem>>, vector<32x128xf32>
    %cst_91 = arith.constant dense<0.000000e+00> : vector<8x128xf32>
    %244 = tpu.matmul %209, %243, %cst_91 {dimension_numbers = #tpu.dot_dimension_numbers<[1], [0], [0], [1], [0, 0, 1, 1], [], []>} : vector<8x32xf32>, vector<32x128xf32>, vector<8x128xf32> -> vector<8x128xf32>
    %245 = arith.addf %242, %244 : vector<8x128xf32>
    %246 = arith.negf %245 : vector<8x128xf32>
    %247 = math.exp %246 : vector<8x128xf32>
    %cst_92 = arith.constant 1.000000e+00 : f32
    %248 = vector.broadcast %cst_92 : f32 to vector<8x128xf32>
    %249 = arith.addf %248, %247 : vector<8x128xf32>
    %250 = arith.divf %248, %249 : vector<8x128xf32>
    %251 = math.tanh %245 : vector<8x128xf32>
    %252 = vector.extract_strided_slice %250 {offsets = [0, 0], sizes = [8, 32], strides = [1, 1]} : vector<8x128xf32> to vector<8x32xf32>
    %253 = vector.extract_strided_slice %250 {offsets = [0, 32], sizes = [8, 32], strides = [1, 1]} : vector<8x128xf32> to vector<8x32xf32>
    %254 = vector.extract_strided_slice %250 {offsets = [0, 96], sizes = [8, 32], strides = [1, 1]} : vector<8x128xf32> to vector<8x32xf32>
    %255 = vector.extract_strided_slice %251 {offsets = [0, 64], sizes = [8, 32], strides = [1, 1]} : vector<8x128xf32> to vector<8x32xf32>
    %256 = arith.mulf %253, %207 : vector<8x32xf32>
    %257 = arith.mulf %252, %255 : vector<8x32xf32>
    %258 = arith.addf %256, %257 : vector<8x32xf32>
    %259 = math.tanh %258 : vector<8x32xf32>
    %260 = arith.mulf %254, %259 : vector<8x32xf32>
    %261 = arith.index_cast %c4_i32 : i32 to index
    %c0_93 = arith.constant 0 : index
    %c0_94 = arith.constant 0 : index
    %262 = vector.load %arg18[%261, %c0_93, %c0_94] : memref<8x8x32xf32, #tpu.memory_space<vmem>>, vector<1x8x32xf32>
    %263 = vector.shape_cast %262 : vector<1x8x32xf32> to vector<8x32xf32>
    %264 = vector.shape_cast %239 : vector<8x32xf32> to vector<1x8x32xf32>
    tpu.vector_store %arg18[%261, %c0_93, %c0_94], %264 {strides = array<i32>} : memref<8x8x32xf32, #tpu.memory_space<vmem>>, vector<1x8x32xf32>,
    %265 = arith.index_cast %218 : i32 to index
    %c0_95 = arith.constant 0 : index
    %c0_96 = arith.constant 0 : index
    %266 = vector.load %arg19[%265, %c0_95, %c0_96] : memref<8x8x32xf32, #tpu.memory_space<vmem>>, vector<1x8x32xf32>
    %267 = vector.shape_cast %266 : vector<1x8x32xf32> to vector<8x32xf32>
    %268 = vector.shape_cast %260 : vector<8x32xf32> to vector<1x8x32xf32>
    tpu.vector_store %arg19[%265, %c0_95, %c0_96], %268 {strides = array<i32>} : memref<8x8x32xf32, #tpu.memory_space<vmem>>, vector<1x8x32xf32>,
    %c5_i32 = arith.constant 5 : i32
    %c7_i32_97 = arith.constant 7 : i32
    %269 = arith.subi %c7_i32_97, %c5_i32 : i32
    %270 = arith.index_cast %c5_i32 : i32 to index
    %c0_98 = arith.constant 0 : index
    %c0_99 = arith.constant 0 : index
    %271 = vector.load %arg16[%270, %c0_98, %c0_99] : memref<8x8x128xf32, #tpu.memory_space<vmem>>, vector<1x8x128xf32>
    %272 = vector.shape_cast %271 : vector<1x8x128xf32> to vector<8x128xf32>
    %c0_100 = arith.constant 0 : index
    %c0_101 = arith.constant 0 : index
    %273 = vector.load %arg3[%c0_100, %c0_101] : memref<32x128xf32, #tpu.memory_space<vmem>>, vector<32x128xf32>
    %cst_102 = arith.constant dense<0.000000e+00> : vector<8x128xf32>
    %274 = tpu.matmul %239, %273, %cst_102 {dimension_numbers = #tpu.dot_dimension_numbers<[1], [0], [0], [1], [0, 0, 1, 1], [], []>} : vector<8x32xf32>, vector<32x128xf32>, vector<8x128xf32> -> vector<8x128xf32>
    %275 = arith.addf %272, %274 : vector<8x128xf32>
    %276 = arith.negf %275 : vector<8x128xf32>
    %277 = math.exp %276 : vector<8x128xf32>
    %cst_103 = arith.constant 1.000000e+00 : f32
    %278 = vector.broadcast %cst_103 : f32 to vector<8x128xf32>
    %279 = arith.addf %278, %277 : vector<8x128xf32>
    %280 = arith.divf %278, %279 : vector<8x128xf32>
    %281 = math.tanh %275 : vector<8x128xf32>
    %282 = vector.extract_strided_slice %280 {offsets = [0, 0], sizes = [8, 32], strides = [1, 1]} : vector<8x128xf32> to vector<8x32xf32>
    %283 = vector.extract_strided_slice %280 {offsets = [0, 32], sizes = [8, 32], strides = [1, 1]} : vector<8x128xf32> to vector<8x32xf32>
    %284 = vector.extract_strided_slice %280 {offsets = [0, 96], sizes = [8, 32], strides = [1, 1]} : vector<8x128xf32> to vector<8x32xf32>
    %285 = vector.extract_strided_slice %281 {offsets = [0, 64], sizes = [8, 32], strides = [1, 1]} : vector<8x128xf32> to vector<8x32xf32>
    %286 = arith.mulf %283, %237 : vector<8x32xf32>
    %287 = arith.mulf %282, %285 : vector<8x32xf32>
    %288 = arith.addf %286, %287 : vector<8x32xf32>
    %289 = math.tanh %288 : vector<8x32xf32>
    %290 = arith.mulf %284, %289 : vector<8x32xf32>
    %291 = arith.index_cast %269 : i32 to index
    %c0_104 = arith.constant 0 : index
    %c0_105 = arith.constant 0 : index
    %292 = vector.load %arg17[%291, %c0_104, %c0_105] : memref<8x8x128xf32, #tpu.memory_space<vmem>>, vector<1x8x128xf32>
    %293 = vector.shape_cast %292 : vector<1x8x128xf32> to vector<8x128xf32>
    %c0_106 = arith.constant 0 : index
    %c0_107 = arith.constant 0 : index
    %294 = vector.load %arg4[%c0_106, %c0_107] : memref<32x128xf32, #tpu.memory_space<vmem>>, vector<32x128xf32>
    %cst_108 = arith.constant dense<0.000000e+00> : vector<8x128xf32>
    %295 = tpu.matmul %260, %294, %cst_108 {dimension_numbers = #tpu.dot_dimension_numbers<[1], [0], [0], [1], [0, 0, 1, 1], [], []>} : vector<8x32xf32>, vector<32x128xf32>, vector<8x128xf32> -> vector<8x128xf32>
    %296 = arith.addf %293, %295 : vector<8x128xf32>
    %297 = arith.negf %296 : vector<8x128xf32>
    %298 = math.exp %297 : vector<8x128xf32>
    %cst_109 = arith.constant 1.000000e+00 : f32
    %299 = vector.broadcast %cst_109 : f32 to vector<8x128xf32>
    %300 = arith.addf %299, %298 : vector<8x128xf32>
    %301 = arith.divf %299, %300 : vector<8x128xf32>
    %302 = math.tanh %296 : vector<8x128xf32>
    %303 = vector.extract_strided_slice %301 {offsets = [0, 0], sizes = [8, 32], strides = [1, 1]} : vector<8x128xf32> to vector<8x32xf32>
    %304 = vector.extract_strided_slice %301 {offsets = [0, 32], sizes = [8, 32], strides = [1, 1]} : vector<8x128xf32> to vector<8x32xf32>
    %305 = vector.extract_strided_slice %301 {offsets = [0, 96], sizes = [8, 32], strides = [1, 1]} : vector<8x128xf32> to vector<8x32xf32>
    %306 = vector.extract_strided_slice %302 {offsets = [0, 64], sizes = [8, 32], strides = [1, 1]} : vector<8x128xf32> to vector<8x32xf32>
    %307 = arith.mulf %304, %258 : vector<8x32xf32>
    %308 = arith.mulf %303, %306 : vector<8x32xf32>
    %309 = arith.addf %307, %308 : vector<8x32xf32>
    %310 = math.tanh %309 : vector<8x32xf32>
    %311 = arith.mulf %305, %310 : vector<8x32xf32>
    %312 = arith.index_cast %c5_i32 : i32 to index
    %c0_110 = arith.constant 0 : index
    %c0_111 = arith.constant 0 : index
    %313 = vector.load %arg18[%312, %c0_110, %c0_111] : memref<8x8x32xf32, #tpu.memory_space<vmem>>, vector<1x8x32xf32>
    %314 = vector.shape_cast %313 : vector<1x8x32xf32> to vector<8x32xf32>
    %315 = vector.shape_cast %290 : vector<8x32xf32> to vector<1x8x32xf32>
    tpu.vector_store %arg18[%312, %c0_110, %c0_111], %315 {strides = array<i32>} : memref<8x8x32xf32, #tpu.memory_space<vmem>>, vector<1x8x32xf32>,
    %316 = arith.index_cast %269 : i32 to index
    %c0_112 = arith.constant 0 : index
    %c0_113 = arith.constant 0 : index
    %317 = vector.load %arg19[%316, %c0_112, %c0_113] : memref<8x8x32xf32, #tpu.memory_space<vmem>>, vector<1x8x32xf32>
    %318 = vector.shape_cast %317 : vector<1x8x32xf32> to vector<8x32xf32>
    %319 = vector.shape_cast %311 : vector<8x32xf32> to vector<1x8x32xf32>
    tpu.vector_store %arg19[%316, %c0_112, %c0_113], %319 {strides = array<i32>} : memref<8x8x32xf32, #tpu.memory_space<vmem>>, vector<1x8x32xf32>,
    %c6_i32 = arith.constant 6 : i32
    %c7_i32_114 = arith.constant 7 : i32
    %320 = arith.subi %c7_i32_114, %c6_i32 : i32
    %321 = arith.index_cast %c6_i32 : i32 to index
    %c0_115 = arith.constant 0 : index
    %c0_116 = arith.constant 0 : index
    %322 = vector.load %arg16[%321, %c0_115, %c0_116] : memref<8x8x128xf32, #tpu.memory_space<vmem>>, vector<1x8x128xf32>
    %323 = vector.shape_cast %322 : vector<1x8x128xf32> to vector<8x128xf32>
    %c0_117 = arith.constant 0 : index
    %c0_118 = arith.constant 0 : index
    %324 = vector.load %arg3[%c0_117, %c0_118] : memref<32x128xf32, #tpu.memory_space<vmem>>, vector<32x128xf32>
    %cst_119 = arith.constant dense<0.000000e+00> : vector<8x128xf32>
    %325 = tpu.matmul %290, %324, %cst_119 {dimension_numbers = #tpu.dot_dimension_numbers<[1], [0], [0], [1], [0, 0, 1, 1], [], []>} : vector<8x32xf32>, vector<32x128xf32>, vector<8x128xf32> -> vector<8x128xf32>
    %326 = arith.addf %323, %325 : vector<8x128xf32>
    %327 = arith.negf %326 : vector<8x128xf32>
    %328 = math.exp %327 : vector<8x128xf32>
    %cst_120 = arith.constant 1.000000e+00 : f32
    %329 = vector.broadcast %cst_120 : f32 to vector<8x128xf32>
    %330 = arith.addf %329, %328 : vector<8x128xf32>
    %331 = arith.divf %329, %330 : vector<8x128xf32>
    %332 = math.tanh %326 : vector<8x128xf32>
    %333 = vector.extract_strided_slice %331 {offsets = [0, 0], sizes = [8, 32], strides = [1, 1]} : vector<8x128xf32> to vector<8x32xf32>
    %334 = vector.extract_strided_slice %331 {offsets = [0, 32], sizes = [8, 32], strides = [1, 1]} : vector<8x128xf32> to vector<8x32xf32>
    %335 = vector.extract_strided_slice %331 {offsets = [0, 96], sizes = [8, 32], strides = [1, 1]} : vector<8x128xf32> to vector<8x32xf32>
    %336 = vector.extract_strided_slice %332 {offsets = [0, 64], sizes = [8, 32], strides = [1, 1]} : vector<8x128xf32> to vector<8x32xf32>
    %337 = arith.mulf %334, %288 : vector<8x32xf32>
    %338 = arith.mulf %333, %336 : vector<8x32xf32>
    %339 = arith.addf %337, %338 : vector<8x32xf32>
    %340 = math.tanh %339 : vector<8x32xf32>
    %341 = arith.mulf %335, %340 : vector<8x32xf32>
    %342 = arith.index_cast %320 : i32 to index
    %c0_121 = arith.constant 0 : index
    %c0_122 = arith.constant 0 : index
    %343 = vector.load %arg17[%342, %c0_121, %c0_122] : memref<8x8x128xf32, #tpu.memory_space<vmem>>, vector<1x8x128xf32>
    %344 = vector.shape_cast %343 : vector<1x8x128xf32> to vector<8x128xf32>
    %c0_123 = arith.constant 0 : index
    %c0_124 = arith.constant 0 : index
    %345 = vector.load %arg4[%c0_123, %c0_124] : memref<32x128xf32, #tpu.memory_space<vmem>>, vector<32x128xf32>
    %cst_125 = arith.constant dense<0.000000e+00> : vector<8x128xf32>
    %346 = tpu.matmul %311, %345, %cst_125 {dimension_numbers = #tpu.dot_dimension_numbers<[1], [0], [0], [1], [0, 0, 1, 1], [], []>} : vector<8x32xf32>, vector<32x128xf32>, vector<8x128xf32> -> vector<8x128xf32>
    %347 = arith.addf %344, %346 : vector<8x128xf32>
    %348 = arith.negf %347 : vector<8x128xf32>
    %349 = math.exp %348 : vector<8x128xf32>
    %cst_126 = arith.constant 1.000000e+00 : f32
    %350 = vector.broadcast %cst_126 : f32 to vector<8x128xf32>
    %351 = arith.addf %350, %349 : vector<8x128xf32>
    %352 = arith.divf %350, %351 : vector<8x128xf32>
    %353 = math.tanh %347 : vector<8x128xf32>
    %354 = vector.extract_strided_slice %352 {offsets = [0, 0], sizes = [8, 32], strides = [1, 1]} : vector<8x128xf32> to vector<8x32xf32>
    %355 = vector.extract_strided_slice %352 {offsets = [0, 32], sizes = [8, 32], strides = [1, 1]} : vector<8x128xf32> to vector<8x32xf32>
    %356 = vector.extract_strided_slice %352 {offsets = [0, 96], sizes = [8, 32], strides = [1, 1]} : vector<8x128xf32> to vector<8x32xf32>
    %357 = vector.extract_strided_slice %353 {offsets = [0, 64], sizes = [8, 32], strides = [1, 1]} : vector<8x128xf32> to vector<8x32xf32>
    %358 = arith.mulf %355, %309 : vector<8x32xf32>
    %359 = arith.mulf %354, %357 : vector<8x32xf32>
    %360 = arith.addf %358, %359 : vector<8x32xf32>
    %361 = math.tanh %360 : vector<8x32xf32>
    %362 = arith.mulf %356, %361 : vector<8x32xf32>
    %363 = arith.index_cast %c6_i32 : i32 to index
    %c0_127 = arith.constant 0 : index
    %c0_128 = arith.constant 0 : index
    %364 = vector.load %arg18[%363, %c0_127, %c0_128] : memref<8x8x32xf32, #tpu.memory_space<vmem>>, vector<1x8x32xf32>
    %365 = vector.shape_cast %364 : vector<1x8x32xf32> to vector<8x32xf32>
    %366 = vector.shape_cast %341 : vector<8x32xf32> to vector<1x8x32xf32>
    tpu.vector_store %arg18[%363, %c0_127, %c0_128], %366 {strides = array<i32>} : memref<8x8x32xf32, #tpu.memory_space<vmem>>, vector<1x8x32xf32>,
    %367 = arith.index_cast %320 : i32 to index
    %c0_129 = arith.constant 0 : index
    %c0_130 = arith.constant 0 : index
    %368 = vector.load %arg19[%367, %c0_129, %c0_130] : memref<8x8x32xf32, #tpu.memory_space<vmem>>, vector<1x8x32xf32>
    %369 = vector.shape_cast %368 : vector<1x8x32xf32> to vector<8x32xf32>
    %370 = vector.shape_cast %362 : vector<8x32xf32> to vector<1x8x32xf32>
    tpu.vector_store %arg19[%367, %c0_129, %c0_130], %370 {strides = array<i32>} : memref<8x8x32xf32, #tpu.memory_space<vmem>>, vector<1x8x32xf32>,
    %c7_i32_131 = arith.constant 7 : i32
    %c7_i32_132 = arith.constant 7 : i32
    %371 = arith.subi %c7_i32_132, %c7_i32_131 : i32
    %372 = arith.index_cast %c7_i32_131 : i32 to index
    %c0_133 = arith.constant 0 : index
    %c0_134 = arith.constant 0 : index
    %373 = vector.load %arg16[%372, %c0_133, %c0_134] : memref<8x8x128xf32, #tpu.memory_space<vmem>>, vector<1x8x128xf32>
    %374 = vector.shape_cast %373 : vector<1x8x128xf32> to vector<8x128xf32>
    %c0_135 = arith.constant 0 : index
    %c0_136 = arith.constant 0 : index
    %375 = vector.load %arg3[%c0_135, %c0_136] : memref<32x128xf32, #tpu.memory_space<vmem>>, vector<32x128xf32>
    %cst_137 = arith.constant dense<0.000000e+00> : vector<8x128xf32>
    %376 = tpu.matmul %341, %375, %cst_137 {dimension_numbers = #tpu.dot_dimension_numbers<[1], [0], [0], [1], [0, 0, 1, 1], [], []>} : vector<8x32xf32>, vector<32x128xf32>, vector<8x128xf32> -> vector<8x128xf32>
    %377 = arith.addf %374, %376 : vector<8x128xf32>
    %378 = arith.negf %377 : vector<8x128xf32>
    %379 = math.exp %378 : vector<8x128xf32>
    %cst_138 = arith.constant 1.000000e+00 : f32
    %380 = vector.broadcast %cst_138 : f32 to vector<8x128xf32>
    %381 = arith.addf %380, %379 : vector<8x128xf32>
    %382 = arith.divf %380, %381 : vector<8x128xf32>
    %383 = math.tanh %377 : vector<8x128xf32>
    %384 = vector.extract_strided_slice %382 {offsets = [0, 0], sizes = [8, 32], strides = [1, 1]} : vector<8x128xf32> to vector<8x32xf32>
    %385 = vector.extract_strided_slice %382 {offsets = [0, 32], sizes = [8, 32], strides = [1, 1]} : vector<8x128xf32> to vector<8x32xf32>
    %386 = vector.extract_strided_slice %382 {offsets = [0, 96], sizes = [8, 32], strides = [1, 1]} : vector<8x128xf32> to vector<8x32xf32>
    %387 = vector.extract_strided_slice %383 {offsets = [0, 64], sizes = [8, 32], strides = [1, 1]} : vector<8x128xf32> to vector<8x32xf32>
    %388 = arith.mulf %385, %339 : vector<8x32xf32>
    %389 = arith.mulf %384, %387 : vector<8x32xf32>
    %390 = arith.addf %388, %389 : vector<8x32xf32>
    %391 = math.tanh %390 : vector<8x32xf32>
    %392 = arith.mulf %386, %391 : vector<8x32xf32>
    %393 = arith.index_cast %371 : i32 to index
    %c0_139 = arith.constant 0 : index
    %c0_140 = arith.constant 0 : index
    %394 = vector.load %arg17[%393, %c0_139, %c0_140] : memref<8x8x128xf32, #tpu.memory_space<vmem>>, vector<1x8x128xf32>
    %395 = vector.shape_cast %394 : vector<1x8x128xf32> to vector<8x128xf32>
    %c0_141 = arith.constant 0 : index
    %c0_142 = arith.constant 0 : index
    %396 = vector.load %arg4[%c0_141, %c0_142] : memref<32x128xf32, #tpu.memory_space<vmem>>, vector<32x128xf32>
    %cst_143 = arith.constant dense<0.000000e+00> : vector<8x128xf32>
    %397 = tpu.matmul %362, %396, %cst_143 {dimension_numbers = #tpu.dot_dimension_numbers<[1], [0], [0], [1], [0, 0, 1, 1], [], []>} : vector<8x32xf32>, vector<32x128xf32>, vector<8x128xf32> -> vector<8x128xf32>
    %398 = arith.addf %395, %397 : vector<8x128xf32>
    %399 = arith.negf %398 : vector<8x128xf32>
    %400 = math.exp %399 : vector<8x128xf32>
    %cst_144 = arith.constant 1.000000e+00 : f32
    %401 = vector.broadcast %cst_144 : f32 to vector<8x128xf32>
    %402 = arith.addf %401, %400 : vector<8x128xf32>
    %403 = arith.divf %401, %402 : vector<8x128xf32>
    %404 = math.tanh %398 : vector<8x128xf32>
    %405 = vector.extract_strided_slice %403 {offsets = [0, 0], sizes = [8, 32], strides = [1, 1]} : vector<8x128xf32> to vector<8x32xf32>
    %406 = vector.extract_strided_slice %403 {offsets = [0, 32], sizes = [8, 32], strides = [1, 1]} : vector<8x128xf32> to vector<8x32xf32>
    %407 = vector.extract_strided_slice %403 {offsets = [0, 96], sizes = [8, 32], strides = [1, 1]} : vector<8x128xf32> to vector<8x32xf32>
    %408 = vector.extract_strided_slice %404 {offsets = [0, 64], sizes = [8, 32], strides = [1, 1]} : vector<8x128xf32> to vector<8x32xf32>
    %409 = arith.mulf %406, %360 : vector<8x32xf32>
    %410 = arith.mulf %405, %408 : vector<8x32xf32>
    %411 = arith.addf %409, %410 : vector<8x32xf32>
    %412 = math.tanh %411 : vector<8x32xf32>
    %413 = arith.mulf %407, %412 : vector<8x32xf32>
    %414 = arith.index_cast %c7_i32_131 : i32 to index
    %c0_145 = arith.constant 0 : index
    %c0_146 = arith.constant 0 : index
    %415 = vector.load %arg18[%414, %c0_145, %c0_146] : memref<8x8x32xf32, #tpu.memory_space<vmem>>, vector<1x8x32xf32>
    %416 = vector.shape_cast %415 : vector<1x8x32xf32> to vector<8x32xf32>
    %417 = vector.shape_cast %392 : vector<8x32xf32> to vector<1x8x32xf32>
    tpu.vector_store %arg18[%414, %c0_145, %c0_146], %417 {strides = array<i32>} : memref<8x8x32xf32, #tpu.memory_space<vmem>>, vector<1x8x32xf32>,
    %418 = arith.index_cast %371 : i32 to index
    %c0_147 = arith.constant 0 : index
    %c0_148 = arith.constant 0 : index
    %419 = vector.load %arg19[%418, %c0_147, %c0_148] : memref<8x8x32xf32, #tpu.memory_space<vmem>>, vector<1x8x32xf32>
    %420 = vector.shape_cast %419 : vector<1x8x32xf32> to vector<8x32xf32>
    %421 = vector.shape_cast %413 : vector<8x32xf32> to vector<1x8x32xf32>
    tpu.vector_store %arg19[%418, %c0_147, %c0_148], %421 {strides = array<i32>} : memref<8x8x32xf32, #tpu.memory_space<vmem>>, vector<1x8x32xf32>,
    %c8_i32 = arith.constant 8 : i32
    %c0_149 = arith.constant 0 : index
    %c0_150 = arith.constant 0 : index
    %c0_151 = arith.constant 0 : index
    %422 = vector.load %arg18[%c0_149, %c0_150, %c0_151] : memref<8x8x32xf32, #tpu.memory_space<vmem>>, vector<8x8x32xf32>
    %423 = vector.shape_cast %422 : vector<8x8x32xf32> to vector<64x32xf32>
    %c0_152 = arith.constant 0 : index
    %c0_153 = arith.constant 0 : index
    %c0_154 = arith.constant 0 : index
    %424 = vector.load %arg19[%c0_152, %c0_153, %c0_154] : memref<8x8x32xf32, #tpu.memory_space<vmem>>, vector<8x8x32xf32>
    %425 = vector.shape_cast %424 : vector<8x8x32xf32> to vector<64x32xf32>
    %c0_155 = arith.constant 0 : index
    %c0_156 = arith.constant 0 : index
    %426 = vector.load %arg6[%c0_155, %c0_156] : memref<32x256xf32, #tpu.memory_space<vmem>>, vector<32x256xf32>
    %cst_157 = arith.constant dense<0.000000e+00> : vector<64x256xf32>
    %427 = tpu.matmul %423, %426, %cst_157 {dimension_numbers = #tpu.dot_dimension_numbers<[1], [0], [0], [1], [0, 0, 1, 1], [], []>} : vector<64x32xf32>, vector<32x256xf32>, vector<64x256xf32> -> vector<64x256xf32>
    %c0_158 = arith.constant 0 : index
    %c0_159 = arith.constant 0 : index
    %428 = vector.load %arg7[%c0_158, %c0_159] : memref<32x256xf32, #tpu.memory_space<vmem>>, vector<32x256xf32>
    %cst_160 = arith.constant dense<0.000000e+00> : vector<64x256xf32>
    %429 = tpu.matmul %425, %428, %cst_160 {dimension_numbers = #tpu.dot_dimension_numbers<[1], [0], [0], [1], [0, 0, 1, 1], [], []>} : vector<64x32xf32>, vector<32x256xf32>, vector<64x256xf32> -> vector<64x256xf32>
    %430 = arith.addf %427, %429 : vector<64x256xf32>
    %c0_161 = arith.constant 0 : index
    %c0_162 = arith.constant 0 : index
    %431 = vector.load %arg10[%c0_161, %c0_162] : memref<1x256xf32, #tpu.memory_space<vmem>>, vector<1x256xf32>
    %432 = vector.broadcast %431 : vector<1x256xf32> to vector<64x256xf32>
    %433 = arith.addf %430, %432 : vector<64x256xf32>
    %434 = vector.extract_strided_slice %433 {offsets = [0, 0], sizes = [64, 128], strides = [1, 1]} : vector<64x256xf32> to vector<64x128xf32>
    %435 = vector.shape_cast %434 : vector<64x128xf32> to vector<8x8x128xf32>
    %c0_163 = arith.constant 0 : index
    %c0_164 = arith.constant 0 : index
    %c0_165 = arith.constant 0 : index
    %436 = vector.load %arg16[%c0_163, %c0_164, %c0_165] : memref<8x8x128xf32, #tpu.memory_space<vmem>>, vector<8x8x128xf32>
    tpu.vector_store %arg16[%c0_163, %c0_164, %c0_165], %435 {strides = array<i32>} : memref<8x8x128xf32, #tpu.memory_space<vmem>>, vector<8x8x128xf32>,
    %437 = vector.extract_strided_slice %433 {offsets = [0, 128], sizes = [64, 128], strides = [1, 1]} : vector<64x256xf32> to vector<64x128xf32>
    %438 = vector.shape_cast %437 : vector<64x128xf32> to vector<8x8x128xf32>
    %c0_166 = arith.constant 0 : index
    %c0_167 = arith.constant 0 : index
    %c0_168 = arith.constant 0 : index
    %439 = vector.load %arg17[%c0_166, %c0_167, %c0_168] : memref<8x8x128xf32, #tpu.memory_space<vmem>>, vector<8x8x128xf32>
    tpu.vector_store %arg17[%c0_166, %c0_167, %c0_168], %438 {strides = array<i32>} : memref<8x8x128xf32, #tpu.memory_space<vmem>>, vector<8x8x128xf32>,
    %cst_169 = arith.constant 0xFF800000 : f32
    %440 = vector.broadcast %cst_169 : f32 to vector<8x32xf32>
    %c0_i32_170 = arith.constant 0 : i32
    %c7_i32_171 = arith.constant 7 : i32
    %441 = arith.subi %c7_i32_171, %c0_i32_170 : i32
    %442 = arith.index_cast %c0_i32_170 : i32 to index
    %c0_172 = arith.constant 0 : index
    %c0_173 = arith.constant 0 : index
    %443 = vector.load %arg16[%442, %c0_172, %c0_173] : memref<8x8x128xf32, #tpu.memory_space<vmem>>, vector<1x8x128xf32>
    %444 = vector.shape_cast %443 : vector<1x8x128xf32> to vector<8x128xf32>
    %c0_174 = arith.constant 0 : index
    %c0_175 = arith.constant 0 : index
    %445 = vector.load %arg8[%c0_174, %c0_175] : memref<32x128xf32, #tpu.memory_space<vmem>>, vector<32x128xf32>
    %cst_176 = arith.constant dense<0.000000e+00> : vector<8x128xf32>
    %446 = tpu.matmul %0, %445, %cst_176 {dimension_numbers = #tpu.dot_dimension_numbers<[1], [0], [0], [1], [0, 0, 1, 1], [], []>} : vector<8x32xf32>, vector<32x128xf32>, vector<8x128xf32> -> vector<8x128xf32>
    %447 = arith.addf %444, %446 : vector<8x128xf32>
    %448 = arith.negf %447 : vector<8x128xf32>
    %449 = math.exp %448 : vector<8x128xf32>
    %cst_177 = arith.constant 1.000000e+00 : f32
    %450 = vector.broadcast %cst_177 : f32 to vector<8x128xf32>
    %451 = arith.addf %450, %449 : vector<8x128xf32>
    %452 = arith.divf %450, %451 : vector<8x128xf32>
    %453 = math.tanh %447 : vector<8x128xf32>
    %454 = vector.extract_strided_slice %452 {offsets = [0, 0], sizes = [8, 32], strides = [1, 1]} : vector<8x128xf32> to vector<8x32xf32>
    %455 = vector.extract_strided_slice %452 {offsets = [0, 32], sizes = [8, 32], strides = [1, 1]} : vector<8x128xf32> to vector<8x32xf32>
    %456 = vector.extract_strided_slice %452 {offsets = [0, 96], sizes = [8, 32], strides = [1, 1]} : vector<8x128xf32> to vector<8x32xf32>
    %457 = vector.extract_strided_slice %453 {offsets = [0, 64], sizes = [8, 32], strides = [1, 1]} : vector<8x128xf32> to vector<8x32xf32>
    %458 = arith.mulf %455, %0 : vector<8x32xf32>
    %459 = arith.mulf %454, %457 : vector<8x32xf32>
    %460 = arith.addf %458, %459 : vector<8x32xf32>
    %461 = math.tanh %460 : vector<8x32xf32>
    %462 = arith.mulf %456, %461 : vector<8x32xf32>
    %463 = arith.index_cast %441 : i32 to index
    %c0_178 = arith.constant 0 : index
    %c0_179 = arith.constant 0 : index
    %464 = vector.load %arg17[%463, %c0_178, %c0_179] : memref<8x8x128xf32, #tpu.memory_space<vmem>>, vector<1x8x128xf32>
    %465 = vector.shape_cast %464 : vector<1x8x128xf32> to vector<8x128xf32>
    %c0_180 = arith.constant 0 : index
    %c0_181 = arith.constant 0 : index
    %466 = vector.load %arg9[%c0_180, %c0_181] : memref<32x128xf32, #tpu.memory_space<vmem>>, vector<32x128xf32>
    %cst_182 = arith.constant dense<0.000000e+00> : vector<8x128xf32>
    %467 = tpu.matmul %0, %466, %cst_182 {dimension_numbers = #tpu.dot_dimension_numbers<[1], [0], [0], [1], [0, 0, 1, 1], [], []>} : vector<8x32xf32>, vector<32x128xf32>, vector<8x128xf32> -> vector<8x128xf32>
    %468 = arith.addf %465, %467 : vector<8x128xf32>
    %469 = arith.negf %468 : vector<8x128xf32>
    %470 = math.exp %469 : vector<8x128xf32>
    %cst_183 = arith.constant 1.000000e+00 : f32
    %471 = vector.broadcast %cst_183 : f32 to vector<8x128xf32>
    %472 = arith.addf %471, %470 : vector<8x128xf32>
    %473 = arith.divf %471, %472 : vector<8x128xf32>
    %474 = math.tanh %468 : vector<8x128xf32>
    %475 = vector.extract_strided_slice %473 {offsets = [0, 0], sizes = [8, 32], strides = [1, 1]} : vector<8x128xf32> to vector<8x32xf32>
    %476 = vector.extract_strided_slice %473 {offsets = [0, 32], sizes = [8, 32], strides = [1, 1]} : vector<8x128xf32> to vector<8x32xf32>
    %477 = vector.extract_strided_slice %473 {offsets = [0, 96], sizes = [8, 32], strides = [1, 1]} : vector<8x128xf32> to vector<8x32xf32>
    %478 = vector.extract_strided_slice %474 {offsets = [0, 64], sizes = [8, 32], strides = [1, 1]} : vector<8x128xf32> to vector<8x32xf32>
    %479 = arith.mulf %476, %0 : vector<8x32xf32>
    %480 = arith.mulf %475, %478 : vector<8x32xf32>
    %481 = arith.addf %479, %480 : vector<8x32xf32>
    %482 = math.tanh %481 : vector<8x32xf32>
    %483 = arith.mulf %477, %482 : vector<8x32xf32>
    %484 = arith.addf %0, %462 : vector<8x32xf32>
    %485 = arith.addf %0, %483 : vector<8x32xf32>
    %486 = arith.maximumf %440, %462 : vector<8x32xf32>
    %487 = arith.maximumf %440, %483 : vector<8x32xf32>
    %c1_i32_184 = arith.constant 1 : i32
    %c7_i32_185 = arith.constant 7 : i32
    %488 = arith.subi %c7_i32_185, %c1_i32_184 : i32
    %489 = arith.index_cast %c1_i32_184 : i32 to index
    %c0_186 = arith.constant 0 : index
    %c0_187 = arith.constant 0 : index
    %490 = vector.load %arg16[%489, %c0_186, %c0_187] : memref<8x8x128xf32, #tpu.memory_space<vmem>>, vector<1x8x128xf32>
    %491 = vector.shape_cast %490 : vector<1x8x128xf32> to vector<8x128xf32>
    %c0_188 = arith.constant 0 : index
    %c0_189 = arith.constant 0 : index
    %492 = vector.load %arg8[%c0_188, %c0_189] : memref<32x128xf32, #tpu.memory_space<vmem>>, vector<32x128xf32>
    %cst_190 = arith.constant dense<0.000000e+00> : vector<8x128xf32>
    %493 = tpu.matmul %462, %492, %cst_190 {dimension_numbers = #tpu.dot_dimension_numbers<[1], [0], [0], [1], [0, 0, 1, 1], [], []>} : vector<8x32xf32>, vector<32x128xf32>, vector<8x128xf32> -> vector<8x128xf32>
    %494 = arith.addf %491, %493 : vector<8x128xf32>
    %495 = arith.negf %494 : vector<8x128xf32>
    %496 = math.exp %495 : vector<8x128xf32>
    %cst_191 = arith.constant 1.000000e+00 : f32
    %497 = vector.broadcast %cst_191 : f32 to vector<8x128xf32>
    %498 = arith.addf %497, %496 : vector<8x128xf32>
    %499 = arith.divf %497, %498 : vector<8x128xf32>
    %500 = math.tanh %494 : vector<8x128xf32>
    %501 = vector.extract_strided_slice %499 {offsets = [0, 0], sizes = [8, 32], strides = [1, 1]} : vector<8x128xf32> to vector<8x32xf32>
    %502 = vector.extract_strided_slice %499 {offsets = [0, 32], sizes = [8, 32], strides = [1, 1]} : vector<8x128xf32> to vector<8x32xf32>
    %503 = vector.extract_strided_slice %499 {offsets = [0, 96], sizes = [8, 32], strides = [1, 1]} : vector<8x128xf32> to vector<8x32xf32>
    %504 = vector.extract_strided_slice %500 {offsets = [0, 64], sizes = [8, 32], strides = [1, 1]} : vector<8x128xf32> to vector<8x32xf32>
    %505 = arith.mulf %502, %460 : vector<8x32xf32>
    %506 = arith.mulf %501, %504 : vector<8x32xf32>
    %507 = arith.addf %505, %506 : vector<8x32xf32>
    %508 = math.tanh %507 : vector<8x32xf32>
    %509 = arith.mulf %503, %508 : vector<8x32xf32>
    %510 = arith.index_cast %488 : i32 to index
    %c0_192 = arith.constant 0 : index
    %c0_193 = arith.constant 0 : index
    %511 = vector.load %arg17[%510, %c0_192, %c0_193] : memref<8x8x128xf32, #tpu.memory_space<vmem>>, vector<1x8x128xf32>
    %512 = vector.shape_cast %511 : vector<1x8x128xf32> to vector<8x128xf32>
    %c0_194 = arith.constant 0 : index
    %c0_195 = arith.constant 0 : index
    %513 = vector.load %arg9[%c0_194, %c0_195] : memref<32x128xf32, #tpu.memory_space<vmem>>, vector<32x128xf32>
    %cst_196 = arith.constant dense<0.000000e+00> : vector<8x128xf32>
    %514 = tpu.matmul %483, %513, %cst_196 {dimension_numbers = #tpu.dot_dimension_numbers<[1], [0], [0], [1], [0, 0, 1, 1], [], []>} : vector<8x32xf32>, vector<32x128xf32>, vector<8x128xf32> -> vector<8x128xf32>
    %515 = arith.addf %512, %514 : vector<8x128xf32>
    %516 = arith.negf %515 : vector<8x128xf32>
    %517 = math.exp %516 : vector<8x128xf32>
    %cst_197 = arith.constant 1.000000e+00 : f32
    %518 = vector.broadcast %cst_197 : f32 to vector<8x128xf32>
    %519 = arith.addf %518, %517 : vector<8x128xf32>
    %520 = arith.divf %518, %519 : vector<8x128xf32>
    %521 = math.tanh %515 : vector<8x128xf32>
    %522 = vector.extract_strided_slice %520 {offsets = [0, 0], sizes = [8, 32], strides = [1, 1]} : vector<8x128xf32> to vector<8x32xf32>
    %523 = vector.extract_strided_slice %520 {offsets = [0, 32], sizes = [8, 32], strides = [1, 1]} : vector<8x128xf32> to vector<8x32xf32>
    %524 = vector.extract_strided_slice %520 {offsets = [0, 96], sizes = [8, 32], strides = [1, 1]} : vector<8x128xf32> to vector<8x32xf32>
    %525 = vector.extract_strided_slice %521 {offsets = [0, 64], sizes = [8, 32], strides = [1, 1]} : vector<8x128xf32> to vector<8x32xf32>
    %526 = arith.mulf %523, %481 : vector<8x32xf32>
    %527 = arith.mulf %522, %525 : vector<8x32xf32>
    %528 = arith.addf %526, %527 : vector<8x32xf32>
    %529 = math.tanh %528 : vector<8x32xf32>
    %530 = arith.mulf %524, %529 : vector<8x32xf32>
    %531 = arith.addf %484, %509 : vector<8x32xf32>
    %532 = arith.addf %485, %530 : vector<8x32xf32>
    %533 = arith.maximumf %486, %509 : vector<8x32xf32>
    %534 = arith.maximumf %487, %530 : vector<8x32xf32>
    %c2_i32_198 = arith.constant 2 : i32
    %c7_i32_199 = arith.constant 7 : i32
    %535 = arith.subi %c7_i32_199, %c2_i32_198 : i32
    %536 = arith.index_cast %c2_i32_198 : i32 to index
    %c0_200 = arith.constant 0 : index
    %c0_201 = arith.constant 0 : index
    %537 = vector.load %arg16[%536, %c0_200, %c0_201] : memref<8x8x128xf32, #tpu.memory_space<vmem>>, vector<1x8x128xf32>
    %538 = vector.shape_cast %537 : vector<1x8x128xf32> to vector<8x128xf32>
    %c0_202 = arith.constant 0 : index
    %c0_203 = arith.constant 0 : index
    %539 = vector.load %arg8[%c0_202, %c0_203] : memref<32x128xf32, #tpu.memory_space<vmem>>, vector<32x128xf32>
    %cst_204 = arith.constant dense<0.000000e+00> : vector<8x128xf32>
    %540 = tpu.matmul %509, %539, %cst_204 {dimension_numbers = #tpu.dot_dimension_numbers<[1], [0], [0], [1], [0, 0, 1, 1], [], []>} : vector<8x32xf32>, vector<32x128xf32>, vector<8x128xf32> -> vector<8x128xf32>
    %541 = arith.addf %538, %540 : vector<8x128xf32>
    %542 = arith.negf %541 : vector<8x128xf32>
    %543 = math.exp %542 : vector<8x128xf32>
    %cst_205 = arith.constant 1.000000e+00 : f32
    %544 = vector.broadcast %cst_205 : f32 to vector<8x128xf32>
    %545 = arith.addf %544, %543 : vector<8x128xf32>
    %546 = arith.divf %544, %545 : vector<8x128xf32>
    %547 = math.tanh %541 : vector<8x128xf32>
    %548 = vector.extract_strided_slice %546 {offsets = [0, 0], sizes = [8, 32], strides = [1, 1]} : vector<8x128xf32> to vector<8x32xf32>
    %549 = vector.extract_strided_slice %546 {offsets = [0, 32], sizes = [8, 32], strides = [1, 1]} : vector<8x128xf32> to vector<8x32xf32>
    %550 = vector.extract_strided_slice %546 {offsets = [0, 96], sizes = [8, 32], strides = [1, 1]} : vector<8x128xf32> to vector<8x32xf32>
    %551 = vector.extract_strided_slice %547 {offsets = [0, 64], sizes = [8, 32], strides = [1, 1]} : vector<8x128xf32> to vector<8x32xf32>
    %552 = arith.mulf %549, %507 : vector<8x32xf32>
    %553 = arith.mulf %548, %551 : vector<8x32xf32>
    %554 = arith.addf %552, %553 : vector<8x32xf32>
    %555 = math.tanh %554 : vector<8x32xf32>
    %556 = arith.mulf %550, %555 : vector<8x32xf32>
    %557 = arith.index_cast %535 : i32 to index
    %c0_206 = arith.constant 0 : index
    %c0_207 = arith.constant 0 : index
    %558 = vector.load %arg17[%557, %c0_206, %c0_207] : memref<8x8x128xf32, #tpu.memory_space<vmem>>, vector<1x8x128xf32>
    %559 = vector.shape_cast %558 : vector<1x8x128xf32> to vector<8x128xf32>
    %c0_208 = arith.constant 0 : index
    %c0_209 = arith.constant 0 : index
    %560 = vector.load %arg9[%c0_208, %c0_209] : memref<32x128xf32, #tpu.memory_space<vmem>>, vector<32x128xf32>
    %cst_210 = arith.constant dense<0.000000e+00> : vector<8x128xf32>
    %561 = tpu.matmul %530, %560, %cst_210 {dimension_numbers = #tpu.dot_dimension_numbers<[1], [0], [0], [1], [0, 0, 1, 1], [], []>} : vector<8x32xf32>, vector<32x128xf32>, vector<8x128xf32> -> vector<8x128xf32>
    %562 = arith.addf %559, %561 : vector<8x128xf32>
    %563 = arith.negf %562 : vector<8x128xf32>
    %564 = math.exp %563 : vector<8x128xf32>
    %cst_211 = arith.constant 1.000000e+00 : f32
    %565 = vector.broadcast %cst_211 : f32 to vector<8x128xf32>
    %566 = arith.addf %565, %564 : vector<8x128xf32>
    %567 = arith.divf %565, %566 : vector<8x128xf32>
    %568 = math.tanh %562 : vector<8x128xf32>
    %569 = vector.extract_strided_slice %567 {offsets = [0, 0], sizes = [8, 32], strides = [1, 1]} : vector<8x128xf32> to vector<8x32xf32>
    %570 = vector.extract_strided_slice %567 {offsets = [0, 32], sizes = [8, 32], strides = [1, 1]} : vector<8x128xf32> to vector<8x32xf32>
    %571 = vector.extract_strided_slice %567 {offsets = [0, 96], sizes = [8, 32], strides = [1, 1]} : vector<8x128xf32> to vector<8x32xf32>
    %572 = vector.extract_strided_slice %568 {offsets = [0, 64], sizes = [8, 32], strides = [1, 1]} : vector<8x128xf32> to vector<8x32xf32>
    %573 = arith.mulf %570, %528 : vector<8x32xf32>
    %574 = arith.mulf %569, %572 : vector<8x32xf32>
    %575 = arith.addf %573, %574 : vector<8x32xf32>
    %576 = math.tanh %575 : vector<8x32xf32>
    %577 = arith.mulf %571, %576 : vector<8x32xf32>
    %578 = arith.addf %531, %556 : vector<8x32xf32>
    %579 = arith.addf %532, %577 : vector<8x32xf32>
    %580 = arith.maximumf %533, %556 : vector<8x32xf32>
    %581 = arith.maximumf %534, %577 : vector<8x32xf32>
    %c3_i32_212 = arith.constant 3 : i32
    %c7_i32_213 = arith.constant 7 : i32
    %582 = arith.subi %c7_i32_213, %c3_i32_212 : i32
    %583 = arith.index_cast %c3_i32_212 : i32 to index
    %c0_214 = arith.constant 0 : index
    %c0_215 = arith.constant 0 : index
    %584 = vector.load %arg16[%583, %c0_214, %c0_215] : memref<8x8x128xf32, #tpu.memory_space<vmem>>, vector<1x8x128xf32>
    %585 = vector.shape_cast %584 : vector<1x8x128xf32> to vector<8x128xf32>
    %c0_216 = arith.constant 0 : index
    %c0_217 = arith.constant 0 : index
    %586 = vector.load %arg8[%c0_216, %c0_217] : memref<32x128xf32, #tpu.memory_space<vmem>>, vector<32x128xf32>
    %cst_218 = arith.constant dense<0.000000e+00> : vector<8x128xf32>
    %587 = tpu.matmul %556, %586, %cst_218 {dimension_numbers = #tpu.dot_dimension_numbers<[1], [0], [0], [1], [0, 0, 1, 1], [], []>} : vector<8x32xf32>, vector<32x128xf32>, vector<8x128xf32> -> vector<8x128xf32>
    %588 = arith.addf %585, %587 : vector<8x128xf32>
    %589 = arith.negf %588 : vector<8x128xf32>
    %590 = math.exp %589 : vector<8x128xf32>
    %cst_219 = arith.constant 1.000000e+00 : f32
    %591 = vector.broadcast %cst_219 : f32 to vector<8x128xf32>
    %592 = arith.addf %591, %590 : vector<8x128xf32>
    %593 = arith.divf %591, %592 : vector<8x128xf32>
    %594 = math.tanh %588 : vector<8x128xf32>
    %595 = vector.extract_strided_slice %593 {offsets = [0, 0], sizes = [8, 32], strides = [1, 1]} : vector<8x128xf32> to vector<8x32xf32>
    %596 = vector.extract_strided_slice %593 {offsets = [0, 32], sizes = [8, 32], strides = [1, 1]} : vector<8x128xf32> to vector<8x32xf32>
    %597 = vector.extract_strided_slice %593 {offsets = [0, 96], sizes = [8, 32], strides = [1, 1]} : vector<8x128xf32> to vector<8x32xf32>
    %598 = vector.extract_strided_slice %594 {offsets = [0, 64], sizes = [8, 32], strides = [1, 1]} : vector<8x128xf32> to vector<8x32xf32>
    %599 = arith.mulf %596, %554 : vector<8x32xf32>
    %600 = arith.mulf %595, %598 : vector<8x32xf32>
    %601 = arith.addf %599, %600 : vector<8x32xf32>
    %602 = math.tanh %601 : vector<8x32xf32>
    %603 = arith.mulf %597, %602 : vector<8x32xf32>
    %604 = arith.index_cast %582 : i32 to index
    %c0_220 = arith.constant 0 : index
    %c0_221 = arith.constant 0 : index
    %605 = vector.load %arg17[%604, %c0_220, %c0_221] : memref<8x8x128xf32, #tpu.memory_space<vmem>>, vector<1x8x128xf32>
    %606 = vector.shape_cast %605 : vector<1x8x128xf32> to vector<8x128xf32>
    %c0_222 = arith.constant 0 : index
    %c0_223 = arith.constant 0 : index
    %607 = vector.load %arg9[%c0_222, %c0_223] : memref<32x128xf32, #tpu.memory_space<vmem>>, vector<32x128xf32>
    %cst_224 = arith.constant dense<0.000000e+00> : vector<8x128xf32>
    %608 = tpu.matmul %577, %607, %cst_224 {dimension_numbers = #tpu.dot_dimension_numbers<[1], [0], [0], [1], [0, 0, 1, 1], [], []>} : vector<8x32xf32>, vector<32x128xf32>, vector<8x128xf32> -> vector<8x128xf32>
    %609 = arith.addf %606, %608 : vector<8x128xf32>
    %610 = arith.negf %609 : vector<8x128xf32>
    %611 = math.exp %610 : vector<8x128xf32>
    %cst_225 = arith.constant 1.000000e+00 : f32
    %612 = vector.broadcast %cst_225 : f32 to vector<8x128xf32>
    %613 = arith.addf %612, %611 : vector<8x128xf32>
    %614 = arith.divf %612, %613 : vector<8x128xf32>
    %615 = math.tanh %609 : vector<8x128xf32>
    %616 = vector.extract_strided_slice %614 {offsets = [0, 0], sizes = [8, 32], strides = [1, 1]} : vector<8x128xf32> to vector<8x32xf32>
    %617 = vector.extract_strided_slice %614 {offsets = [0, 32], sizes = [8, 32], strides = [1, 1]} : vector<8x128xf32> to vector<8x32xf32>
    %618 = vector.extract_strided_slice %614 {offsets = [0, 96], sizes = [8, 32], strides = [1, 1]} : vector<8x128xf32> to vector<8x32xf32>
    %619 = vector.extract_strided_slice %615 {offsets = [0, 64], sizes = [8, 32], strides = [1, 1]} : vector<8x128xf32> to vector<8x32xf32>
    %620 = arith.mulf %617, %575 : vector<8x32xf32>
    %621 = arith.mulf %616, %619 : vector<8x32xf32>
    %622 = arith.addf %620, %621 : vector<8x32xf32>
    %623 = math.tanh %622 : vector<8x32xf32>
    %624 = arith.mulf %618, %623 : vector<8x32xf32>
    %625 = arith.addf %578, %603 : vector<8x32xf32>
    %626 = arith.addf %579, %624 : vector<8x32xf32>
    %627 = arith.maximumf %580, %603 : vector<8x32xf32>
    %628 = arith.maximumf %581, %624 : vector<8x32xf32>
    %c4_i32_226 = arith.constant 4 : i32
    %c7_i32_227 = arith.constant 7 : i32
    %629 = arith.subi %c7_i32_227, %c4_i32_226 : i32
    %630 = arith.index_cast %c4_i32_226 : i32 to index
    %c0_228 = arith.constant 0 : index
    %c0_229 = arith.constant 0 : index
    %631 = vector.load %arg16[%630, %c0_228, %c0_229] : memref<8x8x128xf32, #tpu.memory_space<vmem>>, vector<1x8x128xf32>
    %632 = vector.shape_cast %631 : vector<1x8x128xf32> to vector<8x128xf32>
    %c0_230 = arith.constant 0 : index
    %c0_231 = arith.constant 0 : index
    %633 = vector.load %arg8[%c0_230, %c0_231] : memref<32x128xf32, #tpu.memory_space<vmem>>, vector<32x128xf32>
    %cst_232 = arith.constant dense<0.000000e+00> : vector<8x128xf32>
    %634 = tpu.matmul %603, %633, %cst_232 {dimension_numbers = #tpu.dot_dimension_numbers<[1], [0], [0], [1], [0, 0, 1, 1], [], []>} : vector<8x32xf32>, vector<32x128xf32>, vector<8x128xf32> -> vector<8x128xf32>
    %635 = arith.addf %632, %634 : vector<8x128xf32>
    %636 = arith.negf %635 : vector<8x128xf32>
    %637 = math.exp %636 : vector<8x128xf32>
    %cst_233 = arith.constant 1.000000e+00 : f32
    %638 = vector.broadcast %cst_233 : f32 to vector<8x128xf32>
    %639 = arith.addf %638, %637 : vector<8x128xf32>
    %640 = arith.divf %638, %639 : vector<8x128xf32>
    %641 = math.tanh %635 : vector<8x128xf32>
    %642 = vector.extract_strided_slice %640 {offsets = [0, 0], sizes = [8, 32], strides = [1, 1]} : vector<8x128xf32> to vector<8x32xf32>
    %643 = vector.extract_strided_slice %640 {offsets = [0, 32], sizes = [8, 32], strides = [1, 1]} : vector<8x128xf32> to vector<8x32xf32>
    %644 = vector.extract_strided_slice %640 {offsets = [0, 96], sizes = [8, 32], strides = [1, 1]} : vector<8x128xf32> to vector<8x32xf32>
    %645 = vector.extract_strided_slice %641 {offsets = [0, 64], sizes = [8, 32], strides = [1, 1]} : vector<8x128xf32> to vector<8x32xf32>
    %646 = arith.mulf %643, %601 : vector<8x32xf32>
    %647 = arith.mulf %642, %645 : vector<8x32xf32>
    %648 = arith.addf %646, %647 : vector<8x32xf32>
    %649 = math.tanh %648 : vector<8x32xf32>
    %650 = arith.mulf %644, %649 : vector<8x32xf32>
    %651 = arith.index_cast %629 : i32 to index
    %c0_234 = arith.constant 0 : index
    %c0_235 = arith.constant 0 : index
    %652 = vector.load %arg17[%651, %c0_234, %c0_235] : memref<8x8x128xf32, #tpu.memory_space<vmem>>, vector<1x8x128xf32>
    %653 = vector.shape_cast %652 : vector<1x8x128xf32> to vector<8x128xf32>
    %c0_236 = arith.constant 0 : index
    %c0_237 = arith.constant 0 : index
    %654 = vector.load %arg9[%c0_236, %c0_237] : memref<32x128xf32, #tpu.memory_space<vmem>>, vector<32x128xf32>
    %cst_238 = arith.constant dense<0.000000e+00> : vector<8x128xf32>
    %655 = tpu.matmul %624, %654, %cst_238 {dimension_numbers = #tpu.dot_dimension_numbers<[1], [0], [0], [1], [0, 0, 1, 1], [], []>} : vector<8x32xf32>, vector<32x128xf32>, vector<8x128xf32> -> vector<8x128xf32>
    %656 = arith.addf %653, %655 : vector<8x128xf32>
    %657 = arith.negf %656 : vector<8x128xf32>
    %658 = math.exp %657 : vector<8x128xf32>
    %cst_239 = arith.constant 1.000000e+00 : f32
    %659 = vector.broadcast %cst_239 : f32 to vector<8x128xf32>
    %660 = arith.addf %659, %658 : vector<8x128xf32>
    %661 = arith.divf %659, %660 : vector<8x128xf32>
    %662 = math.tanh %656 : vector<8x128xf32>
    %663 = vector.extract_strided_slice %661 {offsets = [0, 0], sizes = [8, 32], strides = [1, 1]} : vector<8x128xf32> to vector<8x32xf32>
    %664 = vector.extract_strided_slice %661 {offsets = [0, 32], sizes = [8, 32], strides = [1, 1]} : vector<8x128xf32> to vector<8x32xf32>
    %665 = vector.extract_strided_slice %661 {offsets = [0, 96], sizes = [8, 32], strides = [1, 1]} : vector<8x128xf32> to vector<8x32xf32>
    %666 = vector.extract_strided_slice %662 {offsets = [0, 64], sizes = [8, 32], strides = [1, 1]} : vector<8x128xf32> to vector<8x32xf32>
    %667 = arith.mulf %664, %622 : vector<8x32xf32>
    %668 = arith.mulf %663, %666 : vector<8x32xf32>
    %669 = arith.addf %667, %668 : vector<8x32xf32>
    %670 = math.tanh %669 : vector<8x32xf32>
    %671 = arith.mulf %665, %670 : vector<8x32xf32>
    %672 = arith.addf %625, %650 : vector<8x32xf32>
    %673 = arith.addf %626, %671 : vector<8x32xf32>
    %674 = arith.maximumf %627, %650 : vector<8x32xf32>
    %675 = arith.maximumf %628, %671 : vector<8x32xf32>
    %c5_i32_240 = arith.constant 5 : i32
    %c7_i32_241 = arith.constant 7 : i32
    %676 = arith.subi %c7_i32_241, %c5_i32_240 : i32
    %677 = arith.index_cast %c5_i32_240 : i32 to index
    %c0_242 = arith.constant 0 : index
    %c0_243 = arith.constant 0 : index
    %678 = vector.load %arg16[%677, %c0_242, %c0_243] : memref<8x8x128xf32, #tpu.memory_space<vmem>>, vector<1x8x128xf32>
    %679 = vector.shape_cast %678 : vector<1x8x128xf32> to vector<8x128xf32>
    %c0_244 = arith.constant 0 : index
    %c0_245 = arith.constant 0 : index
    %680 = vector.load %arg8[%c0_244, %c0_245] : memref<32x128xf32, #tpu.memory_space<vmem>>, vector<32x128xf32>
    %cst_246 = arith.constant dense<0.000000e+00> : vector<8x128xf32>
    %681 = tpu.matmul %650, %680, %cst_246 {dimension_numbers = #tpu.dot_dimension_numbers<[1], [0], [0], [1], [0, 0, 1, 1], [], []>} : vector<8x32xf32>, vector<32x128xf32>, vector<8x128xf32> -> vector<8x128xf32>
    %682 = arith.addf %679, %681 : vector<8x128xf32>
    %683 = arith.negf %682 : vector<8x128xf32>
    %684 = math.exp %683 : vector<8x128xf32>
    %cst_247 = arith.constant 1.000000e+00 : f32
    %685 = vector.broadcast %cst_247 : f32 to vector<8x128xf32>
    %686 = arith.addf %685, %684 : vector<8x128xf32>
    %687 = arith.divf %685, %686 : vector<8x128xf32>
    %688 = math.tanh %682 : vector<8x128xf32>
    %689 = vector.extract_strided_slice %687 {offsets = [0, 0], sizes = [8, 32], strides = [1, 1]} : vector<8x128xf32> to vector<8x32xf32>
    %690 = vector.extract_strided_slice %687 {offsets = [0, 32], sizes = [8, 32], strides = [1, 1]} : vector<8x128xf32> to vector<8x32xf32>
    %691 = vector.extract_strided_slice %687 {offsets = [0, 96], sizes = [8, 32], strides = [1, 1]} : vector<8x128xf32> to vector<8x32xf32>
    %692 = vector.extract_strided_slice %688 {offsets = [0, 64], sizes = [8, 32], strides = [1, 1]} : vector<8x128xf32> to vector<8x32xf32>
    %693 = arith.mulf %690, %648 : vector<8x32xf32>
    %694 = arith.mulf %689, %692 : vector<8x32xf32>
    %695 = arith.addf %693, %694 : vector<8x32xf32>
    %696 = math.tanh %695 : vector<8x32xf32>
    %697 = arith.mulf %691, %696 : vector<8x32xf32>
    %698 = arith.index_cast %676 : i32 to index
    %c0_248 = arith.constant 0 : index
    %c0_249 = arith.constant 0 : index
    %699 = vector.load %arg17[%698, %c0_248, %c0_249] : memref<8x8x128xf32, #tpu.memory_space<vmem>>, vector<1x8x128xf32>
    %700 = vector.shape_cast %699 : vector<1x8x128xf32> to vector<8x128xf32>
    %c0_250 = arith.constant 0 : index
    %c0_251 = arith.constant 0 : index
    %701 = vector.load %arg9[%c0_250, %c0_251] : memref<32x128xf32, #tpu.memory_space<vmem>>, vector<32x128xf32>
    %cst_252 = arith.constant dense<0.000000e+00> : vector<8x128xf32>
    %702 = tpu.matmul %671, %701, %cst_252 {dimension_numbers = #tpu.dot_dimension_numbers<[1], [0], [0], [1], [0, 0, 1, 1], [], []>} : vector<8x32xf32>, vector<32x128xf32>, vector<8x128xf32> -> vector<8x128xf32>
    %703 = arith.addf %700, %702 : vector<8x128xf32>
    %704 = arith.negf %703 : vector<8x128xf32>
    %705 = math.exp %704 : vector<8x128xf32>
    %cst_253 = arith.constant 1.000000e+00 : f32
    %706 = vector.broadcast %cst_253 : f32 to vector<8x128xf32>
    %707 = arith.addf %706, %705 : vector<8x128xf32>
    %708 = arith.divf %706, %707 : vector<8x128xf32>
    %709 = math.tanh %703 : vector<8x128xf32>
    %710 = vector.extract_strided_slice %708 {offsets = [0, 0], sizes = [8, 32], strides = [1, 1]} : vector<8x128xf32> to vector<8x32xf32>
    %711 = vector.extract_strided_slice %708 {offsets = [0, 32], sizes = [8, 32], strides = [1, 1]} : vector<8x128xf32> to vector<8x32xf32>
    %712 = vector.extract_strided_slice %708 {offsets = [0, 96], sizes = [8, 32], strides = [1, 1]} : vector<8x128xf32> to vector<8x32xf32>
    %713 = vector.extract_strided_slice %709 {offsets = [0, 64], sizes = [8, 32], strides = [1, 1]} : vector<8x128xf32> to vector<8x32xf32>
    %714 = arith.mulf %711, %669 : vector<8x32xf32>
    %715 = arith.mulf %710, %713 : vector<8x32xf32>
    %716 = arith.addf %714, %715 : vector<8x32xf32>
    %717 = math.tanh %716 : vector<8x32xf32>
    %718 = arith.mulf %712, %717 : vector<8x32xf32>
    %719 = arith.addf %672, %697 : vector<8x32xf32>
    %720 = arith.addf %673, %718 : vector<8x32xf32>
    %721 = arith.maximumf %674, %697 : vector<8x32xf32>
    %722 = arith.maximumf %675, %718 : vector<8x32xf32>
    %c6_i32_254 = arith.constant 6 : i32
    %c7_i32_255 = arith.constant 7 : i32
    %723 = arith.subi %c7_i32_255, %c6_i32_254 : i32
    %724 = arith.index_cast %c6_i32_254 : i32 to index
    %c0_256 = arith.constant 0 : index
    %c0_257 = arith.constant 0 : index
    %725 = vector.load %arg16[%724, %c0_256, %c0_257] : memref<8x8x128xf32, #tpu.memory_space<vmem>>, vector<1x8x128xf32>
    %726 = vector.shape_cast %725 : vector<1x8x128xf32> to vector<8x128xf32>
    %c0_258 = arith.constant 0 : index
    %c0_259 = arith.constant 0 : index
    %727 = vector.load %arg8[%c0_258, %c0_259] : memref<32x128xf32, #tpu.memory_space<vmem>>, vector<32x128xf32>
    %cst_260 = arith.constant dense<0.000000e+00> : vector<8x128xf32>
    %728 = tpu.matmul %697, %727, %cst_260 {dimension_numbers = #tpu.dot_dimension_numbers<[1], [0], [0], [1], [0, 0, 1, 1], [], []>} : vector<8x32xf32>, vector<32x128xf32>, vector<8x128xf32> -> vector<8x128xf32>
    %729 = arith.addf %726, %728 : vector<8x128xf32>
    %730 = arith.negf %729 : vector<8x128xf32>
    %731 = math.exp %730 : vector<8x128xf32>
    %cst_261 = arith.constant 1.000000e+00 : f32
    %732 = vector.broadcast %cst_261 : f32 to vector<8x128xf32>
    %733 = arith.addf %732, %731 : vector<8x128xf32>
    %734 = arith.divf %732, %733 : vector<8x128xf32>
    %735 = math.tanh %729 : vector<8x128xf32>
    %736 = vector.extract_strided_slice %734 {offsets = [0, 0], sizes = [8, 32], strides = [1, 1]} : vector<8x128xf32> to vector<8x32xf32>
    %737 = vector.extract_strided_slice %734 {offsets = [0, 32], sizes = [8, 32], strides = [1, 1]} : vector<8x128xf32> to vector<8x32xf32>
    %738 = vector.extract_strided_slice %734 {offsets = [0, 96], sizes = [8, 32], strides = [1, 1]} : vector<8x128xf32> to vector<8x32xf32>
    %739 = vector.extract_strided_slice %735 {offsets = [0, 64], sizes = [8, 32], strides = [1, 1]} : vector<8x128xf32> to vector<8x32xf32>
    %740 = arith.mulf %737, %695 : vector<8x32xf32>
    %741 = arith.mulf %736, %739 : vector<8x32xf32>
    %742 = arith.addf %740, %741 : vector<8x32xf32>
    %743 = math.tanh %742 : vector<8x32xf32>
    %744 = arith.mulf %738, %743 : vector<8x32xf32>
    %745 = arith.index_cast %723 : i32 to index
    %c0_262 = arith.constant 0 : index
    %c0_263 = arith.constant 0 : index
    %746 = vector.load %arg17[%745, %c0_262, %c0_263] : memref<8x8x128xf32, #tpu.memory_space<vmem>>, vector<1x8x128xf32>
    %747 = vector.shape_cast %746 : vector<1x8x128xf32> to vector<8x128xf32>
    %c0_264 = arith.constant 0 : index
    %c0_265 = arith.constant 0 : index
    %748 = vector.load %arg9[%c0_264, %c0_265] : memref<32x128xf32, #tpu.memory_space<vmem>>, vector<32x128xf32>
    %cst_266 = arith.constant dense<0.000000e+00> : vector<8x128xf32>
    %749 = tpu.matmul %718, %748, %cst_266 {dimension_numbers = #tpu.dot_dimension_numbers<[1], [0], [0], [1], [0, 0, 1, 1], [], []>} : vector<8x32xf32>, vector<32x128xf32>, vector<8x128xf32> -> vector<8x128xf32>
    %750 = arith.addf %747, %749 : vector<8x128xf32>
    %751 = arith.negf %750 : vector<8x128xf32>
    %752 = math.exp %751 : vector<8x128xf32>
    %cst_267 = arith.constant 1.000000e+00 : f32
    %753 = vector.broadcast %cst_267 : f32 to vector<8x128xf32>
    %754 = arith.addf %753, %752 : vector<8x128xf32>
    %755 = arith.divf %753, %754 : vector<8x128xf32>
    %756 = math.tanh %750 : vector<8x128xf32>
    %757 = vector.extract_strided_slice %755 {offsets = [0, 0], sizes = [8, 32], strides = [1, 1]} : vector<8x128xf32> to vector<8x32xf32>
    %758 = vector.extract_strided_slice %755 {offsets = [0, 32], sizes = [8, 32], strides = [1, 1]} : vector<8x128xf32> to vector<8x32xf32>
    %759 = vector.extract_strided_slice %755 {offsets = [0, 96], sizes = [8, 32], strides = [1, 1]} : vector<8x128xf32> to vector<8x32xf32>
    %760 = vector.extract_strided_slice %756 {offsets = [0, 64], sizes = [8, 32], strides = [1, 1]} : vector<8x128xf32> to vector<8x32xf32>
    %761 = arith.mulf %758, %716 : vector<8x32xf32>
    %762 = arith.mulf %757, %760 : vector<8x32xf32>
    %763 = arith.addf %761, %762 : vector<8x32xf32>
    %764 = math.tanh %763 : vector<8x32xf32>
    %765 = arith.mulf %759, %764 : vector<8x32xf32>
    %766 = arith.addf %719, %744 : vector<8x32xf32>
    %767 = arith.addf %720, %765 : vector<8x32xf32>
    %768 = arith.maximumf %721, %744 : vector<8x32xf32>
    %769 = arith.maximumf %722, %765 : vector<8x32xf32>
    %c7_i32_268 = arith.constant 7 : i32
    %c7_i32_269 = arith.constant 7 : i32
    %770 = arith.subi %c7_i32_269, %c7_i32_268 : i32
    %771 = arith.index_cast %c7_i32_268 : i32 to index
    %c0_270 = arith.constant 0 : index
    %c0_271 = arith.constant 0 : index
    %772 = vector.load %arg16[%771, %c0_270, %c0_271] : memref<8x8x128xf32, #tpu.memory_space<vmem>>, vector<1x8x128xf32>
    %773 = vector.shape_cast %772 : vector<1x8x128xf32> to vector<8x128xf32>
    %c0_272 = arith.constant 0 : index
    %c0_273 = arith.constant 0 : index
    %774 = vector.load %arg8[%c0_272, %c0_273] : memref<32x128xf32, #tpu.memory_space<vmem>>, vector<32x128xf32>
    %cst_274 = arith.constant dense<0.000000e+00> : vector<8x128xf32>
    %775 = tpu.matmul %744, %774, %cst_274 {dimension_numbers = #tpu.dot_dimension_numbers<[1], [0], [0], [1], [0, 0, 1, 1], [], []>} : vector<8x32xf32>, vector<32x128xf32>, vector<8x128xf32> -> vector<8x128xf32>
    %776 = arith.addf %773, %775 : vector<8x128xf32>
    %777 = arith.negf %776 : vector<8x128xf32>
    %778 = math.exp %777 : vector<8x128xf32>
    %cst_275 = arith.constant 1.000000e+00 : f32
    %779 = vector.broadcast %cst_275 : f32 to vector<8x128xf32>
    %780 = arith.addf %779, %778 : vector<8x128xf32>
    %781 = arith.divf %779, %780 : vector<8x128xf32>
    %782 = math.tanh %776 : vector<8x128xf32>
    %783 = vector.extract_strided_slice %781 {offsets = [0, 0], sizes = [8, 32], strides = [1, 1]} : vector<8x128xf32> to vector<8x32xf32>
    %784 = vector.extract_strided_slice %781 {offsets = [0, 32], sizes = [8, 32], strides = [1, 1]} : vector<8x128xf32> to vector<8x32xf32>
    %785 = vector.extract_strided_slice %781 {offsets = [0, 96], sizes = [8, 32], strides = [1, 1]} : vector<8x128xf32> to vector<8x32xf32>
    %786 = vector.extract_strided_slice %782 {offsets = [0, 64], sizes = [8, 32], strides = [1, 1]} : vector<8x128xf32> to vector<8x32xf32>
    %787 = arith.mulf %784, %742 : vector<8x32xf32>
    %788 = arith.mulf %783, %786 : vector<8x32xf32>
    %789 = arith.addf %787, %788 : vector<8x32xf32>
    %790 = math.tanh %789 : vector<8x32xf32>
    %791 = arith.mulf %785, %790 : vector<8x32xf32>
    %792 = arith.index_cast %770 : i32 to index
    %c0_276 = arith.constant 0 : index
    %c0_277 = arith.constant 0 : index
    %793 = vector.load %arg17[%792, %c0_276, %c0_277] : memref<8x8x128xf32, #tpu.memory_space<vmem>>, vector<1x8x128xf32>
    %794 = vector.shape_cast %793 : vector<1x8x128xf32> to vector<8x128xf32>
    %c0_278 = arith.constant 0 : index
    %c0_279 = arith.constant 0 : index
    %795 = vector.load %arg9[%c0_278, %c0_279] : memref<32x128xf32, #tpu.memory_space<vmem>>, vector<32x128xf32>
    %cst_280 = arith.constant dense<0.000000e+00> : vector<8x128xf32>
    %796 = tpu.matmul %765, %795, %cst_280 {dimension_numbers = #tpu.dot_dimension_numbers<[1], [0], [0], [1], [0, 0, 1, 1], [], []>} : vector<8x32xf32>, vector<32x128xf32>, vector<8x128xf32> -> vector<8x128xf32>
    %797 = arith.addf %794, %796 : vector<8x128xf32>
    %798 = arith.negf %797 : vector<8x128xf32>
    %799 = math.exp %798 : vector<8x128xf32>
    %cst_281 = arith.constant 1.000000e+00 : f32
    %800 = vector.broadcast %cst_281 : f32 to vector<8x128xf32>
    %801 = arith.addf %800, %799 : vector<8x128xf32>
    %802 = arith.divf %800, %801 : vector<8x128xf32>
    %803 = math.tanh %797 : vector<8x128xf32>
    %804 = vector.extract_strided_slice %802 {offsets = [0, 0], sizes = [8, 32], strides = [1, 1]} : vector<8x128xf32> to vector<8x32xf32>
    %805 = vector.extract_strided_slice %802 {offsets = [0, 32], sizes = [8, 32], strides = [1, 1]} : vector<8x128xf32> to vector<8x32xf32>
    %806 = vector.extract_strided_slice %802 {offsets = [0, 96], sizes = [8, 32], strides = [1, 1]} : vector<8x128xf32> to vector<8x32xf32>
    %807 = vector.extract_strided_slice %803 {offsets = [0, 64], sizes = [8, 32], strides = [1, 1]} : vector<8x128xf32> to vector<8x32xf32>
    %808 = arith.mulf %805, %763 : vector<8x32xf32>
    %809 = arith.mulf %804, %807 : vector<8x32xf32>
    %810 = arith.addf %808, %809 : vector<8x32xf32>
    %811 = math.tanh %810 : vector<8x32xf32>
    %812 = arith.mulf %806, %811 : vector<8x32xf32>
    %813 = arith.addf %766, %791 : vector<8x32xf32>
    %814 = arith.addf %767, %812 : vector<8x32xf32>
    %815 = arith.maximumf %768, %791 : vector<8x32xf32>
    %816 = arith.maximumf %769, %812 : vector<8x32xf32>
    %c8_i32_282 = arith.constant 8 : i32
    %cst_283 = arith.constant 1.250000e-01 : f32
    %817 = vector.broadcast %cst_283 : f32 to vector<8x32xf32>
    %818 = arith.mulf %813, %817 : vector<8x32xf32>
    %cst_284 = arith.constant 1.250000e-01 : f32
    %819 = vector.broadcast %cst_284 : f32 to vector<8x32xf32>
    %820 = arith.mulf %814, %819 : vector<8x32xf32>
    %821 = tpu.concatenate %815, %816, %818, %820 in 1 : vector<8x32xf32>, vector<8x32xf32>, vector<8x32xf32>, vector<8x32xf32> -> vector<8x128xf32>
    %c0_285 = arith.constant 0 : index
    %c0_286 = arith.constant 0 : index
    %822 = vector.load %arg11[%c0_285, %c0_286] : memref<128x256xf32, #tpu.memory_space<vmem>>, vector<128x256xf32>
    %cst_287 = arith.constant dense<0.000000e+00> : vector<8x256xf32>
    %823 = tpu.matmul %821, %822, %cst_287 {dimension_numbers = #tpu.dot_dimension_numbers<[1], [0], [0], [1], [0, 0, 1, 1], [], []>} : vector<8x128xf32>, vector<128x256xf32>, vector<8x256xf32> -> vector<8x256xf32>
    %c0_288 = arith.constant 0 : index
    %c0_289 = arith.constant 0 : index
    %824 = vector.load %arg12[%c0_288, %c0_289] : memref<1x256xf32, #tpu.memory_space<vmem>>, vector<1x256xf32>
    %825 = vector.broadcast %824 : vector<1x256xf32> to vector<8x256xf32>
    %826 = arith.addf %823, %825 : vector<8x256xf32>
    %cst_290 = arith.constant 0.000000e+00 : f32
    %827 = vector.broadcast %cst_290 : f32 to vector<8x256xf32>
    %828 = arith.maximumf %826, %827 : vector<8x256xf32>
    %829 = vector.extract_strided_slice %828 {offsets = [0, 0], sizes = [8, 128], strides = [1, 1]} : vector<8x256xf32> to vector<8x128xf32>
    %830 = arith.addf %821, %829 : vector<8x128xf32>
    %831 = vector.extract_strided_slice %828 {offsets = [0, 128], sizes = [8, 128], strides = [1, 1]} : vector<8x256xf32> to vector<8x128xf32>
    %832 = arith.addf %830, %831 : vector<8x128xf32>
    %c0_291 = arith.constant 0 : index
    %c0_292 = arith.constant 0 : index
    %833 = vector.load %arg13[%c0_291, %c0_292] : memref<128x1xf32, #tpu.memory_space<vmem>>, vector<128x1xf32>
    %cst_293 = arith.constant dense<0.000000e+00> : vector<8x1xf32>
    %834 = tpu.matmul %832, %833, %cst_293 {dimension_numbers = #tpu.dot_dimension_numbers<[1], [0], [0], [1], [0, 0, 1, 1], [], []>} : vector<8x128xf32>, vector<128x1xf32>, vector<8x1xf32> -> vector<8x1xf32>
    %c0_294 = arith.constant 0 : index
    %c0_295 = arith.constant 0 : index
    %835 = vector.load %arg14[%c0_294, %c0_295] : memref<1x1xf32, #tpu.memory_space<vmem>>, vector<1x1xf32>
    %836 = vector.broadcast %835 : vector<1x1xf32> to vector<8x1xf32>
    %837 = arith.addf %834, %836 : vector<8x1xf32>
    %c0_296 = arith.constant 0 : index
    %c0_297 = arith.constant 0 : index
    %838 = vector.load %arg15[%c0_296, %c0_297] : memref<8x1xf32, #tpu.memory_space<vmem>>, vector<8x1xf32>
    tpu.vector_store %arg15[%c0_296, %c0_297], %837 {strides = array<i32>} : memref<8x1xf32, #tpu.memory_space<vmem>>, vector<8x1xf32>,
    return
  }
  func.func @transform_0(%arg0: i32) -> (i32, i32, i32) {
    %c0_i32 = arith.constant 0 : i32
    %c0_i32_0 = arith.constant 0 : i32
    %c0_i32_1 = arith.constant 0 : i32
    return %c0_i32, %arg0, %c0_i32_0 : i32, i32, i32
  }
  func.func @transform_1(%arg0: i32) -> (i32, i32) {
    %c0_i32 = arith.constant 0 : i32
    %c0_i32_0 = arith.constant 0 : i32
    %c0_i32_1 = arith.constant 0 : i32
    return %c0_i32, %c0_i32_0 : i32, i32
  }
  func.func @transform_2(%arg0: i32) -> (i32, i32) {
    %c0_i32 = arith.constant 0 : i32
    %c0_i32_0 = arith.constant 0 : i32
    %c0_i32_1 = arith.constant 0 : i32
    return %c0_i32, %c0_i32_0 : i32, i32
  }
  func.func @transform_3(%arg0: i32) -> (i32, i32) {
    %c0_i32 = arith.constant 0 : i32
    %c0_i32_0 = arith.constant 0 : i32
    %c0_i32_1 = arith.constant 0 : i32
    return %c0_i32, %c0_i32_0 : i32, i32
  }
  func.func @transform_4(%arg0: i32) -> (i32, i32) {
    %c0_i32 = arith.constant 0 : i32
    %c0_i32_0 = arith.constant 0 : i32
    %c0_i32_1 = arith.constant 0 : i32
    return %c0_i32, %c0_i32_0 : i32, i32
  }
  func.func @transform_5(%arg0: i32) -> (i32, i32) {
    %c0_i32 = arith.constant 0 : i32
    %c0_i32_0 = arith.constant 0 : i32
    %c0_i32_1 = arith.constant 0 : i32
    return %c0_i32, %c0_i32_0 : i32, i32
  }
  func.func @transform_6(%arg0: i32) -> (i32, i32) {
    %c0_i32 = arith.constant 0 : i32
    %c0_i32_0 = arith.constant 0 : i32
    %c0_i32_1 = arith.constant 0 : i32
    return %c0_i32, %c0_i32_0 : i32, i32
  }
  func.func @transform_7(%arg0: i32) -> (i32, i32) {
    %c0_i32 = arith.constant 0 : i32
    %c0_i32_0 = arith.constant 0 : i32
    %c0_i32_1 = arith.constant 0 : i32
    return %c0_i32, %c0_i32_0 : i32, i32
  }
  func.func @transform_8(%arg0: i32) -> (i32, i32) {
    %c0_i32 = arith.constant 0 : i32
    %c0_i32_0 = arith.constant 0 : i32
    %c0_i32_1 = arith.constant 0 : i32
    return %c0_i32, %c0_i32_0 : i32, i32
  }
  func.func @transform_9(%arg0: i32) -> (i32, i32) {
    %c0_i32 = arith.constant 0 : i32
    %c0_i32_0 = arith.constant 0 : i32
    %c0_i32_1 = arith.constant 0 : i32
    return %c0_i32, %c0_i32_0 : i32, i32
  }
  func.func @transform_10(%arg0: i32) -> (i32, i32) {
    %c0_i32 = arith.constant 0 : i32
    %c0_i32_0 = arith.constant 0 : i32
    %c0_i32_1 = arith.constant 0 : i32
    return %c0_i32, %c0_i32_0 : i32, i32
  }
  func.func @transform_11(%arg0: i32) -> (i32, i32) {
    %c0_i32 = arith.constant 0 : i32
    %c0_i32_0 = arith.constant 0 : i32
    %c0_i32_1 = arith.constant 0 : i32
    return %c0_i32, %c0_i32_0 : i32, i32
  }
  func.func @transform_12(%arg0: i32) -> (i32, i32) {
    %c0_i32 = arith.constant 0 : i32
    %c0_i32_0 = arith.constant 0 : i32
    %c0_i32_1 = arith.constant 0 : i32
    return %c0_i32, %c0_i32_0 : i32, i32
  }
  func.func @transform_13(%arg0: i32) -> (i32, i32) {
    %c0_i32 = arith.constant 0 : i32
    %c0_i32_0 = arith.constant 0 : i32
    %c0_i32_1 = arith.constant 0 : i32
    return %c0_i32, %c0_i32_0 : i32, i32
  }
  func.func @transform_14(%arg0: i32) -> (i32, i32) {
    %c0_i32 = arith.constant 0 : i32
    %c0_i32_0 = arith.constant 0 : i32
    return %arg0, %c0_i32 : i32, i32
  }
}

</mosaic_0001>

<bundles_post_ra>
// kernel: neural_net_forward.1
= control target key start
LH: loop header
LB: loop body
LE: loop exit
PB: predicated region body
PF: predicated region fallthrough
CT: control target
= control target key end

     0   :  { %v5400_v3 = vmov 0.0|0.0   ;;  %v5401_v4 = vmov 0.0   ;;  %vm5402_vm0 = vmmov 0   ;;  %vm77_vm1 = vcmask 261120   ;;  %s6487_s1 = inlined_call_operand.vmem [shape: f32[32,256], index: 1, kind: input, shape index: {}]   ;;  %s6488_s2 = inlined_call_operand.vmem [shape: f32[32,128], index: 2, kind: input, shape index: {}]   ;;  %s6489_s3 = inlined_call_operand.vmem [shape: f32[32,128], index: 3, kind: input, shape index: {}]   ;;  %s6490_s0 = inlined_call_operand.vmem [shape: f32[8,8,32], index: 0, kind: input, shape index: {}]   ;;  %s6491_s4 = inlined_call_operand.vmem [shape: f32[1,256], index: 4, kind: input, shape index: {}]   ;;  %s6492_s6 = inlined_call_operand.vmem [shape: f32[32,256], index: 6, kind: input, shape index: {}]   ;;  %s6493_s5 = inlined_call_operand.vmem [shape: f32[32,256], index: 5, kind: input, shape index: {}]   ;;  %s6494_s7 = inlined_call_operand.vmem [shape: f32[32,128], index: 7, kind: input, shape index: {}]   ;;  %s6495_s8 = inlined_call_operand.vmem [shape: f32[32,128], index: 8, kind: input, shape index: {}]   ;;  %s6496_s9 = inlined_call_operand.vmem [shape: f32[1,256], index: 9, kind: input, shape index: {}]   ;;  %s6497_s10 = inlined_call_operand.vmem [shape: f32[128,256], index: 10, kind: input, shape index: {}]   ;;  %s6498_s12 = inlined_call_operand.vmem [shape: f32[128,1], index: 12, kind: input, shape index: {}]   ;;  %s6499_s13 = inlined_call_operand.<no memory space> [shape: f32[1,1], index: 13, kind: input, shape index: {}]   ;;  %s6500_s11 = inlined_call_operand.vmem [shape: f32[1,256], index: 11, kind: input, shape index: {}]   ;;  %s6501_s14 = inlined_call_operand.vmem [shape: f32[8,1], index: 14, kind: output, shape index: {}]  }
   0x1   :  { %v58_v0 = vld [vmem:[%s6487_s1 + $0x8] sm:$0xff]  ;;  %v60_v1 = vld [vmem:[%s6487_s1 + $0x18] sm:$0xff]  ;;  %v57_v2 = vld [vmem:[%s6487_s1] sm:$0xff]  ;;  %4858 = vmatprep.subr.bf16.mxu1 %v5400_v3  ;;  %166 = vmatprep.mubr.f32.mxu0 %v5401_v4  ;;  %v67_v34 = vlaneseq  ;;  %vm3979_vm2 = vcmask 523264   ;;  %vm3981_vm3 = vcmask 785408   ;;  %vm4195_vm4 = vcmask 7168  }
   0x2   :  { %v4850_v5 = vpack.c.bf16 %v60_v1, %v58_v0  ;;  %v59_v6 = vld [vmem:[%s6487_s1 + $0x10] sm:$0xff]  ;;  %v232_v7 = vld [vmem:[%s6488_s2] sm:$0xff]  ;;  %v233_v8 = vld [vmem:[%s6488_s2 + $0x8] sm:$0xff]  ;;  %4471 = vmatprep.mubr.msk.f32.mxu1 %vm5402_vm0, %v5401_v4 }
   0x3   :  { %v4852_v9 = vpack.c.bf16 %v59_v6, %v57_v2  ;;  %v5503_v10 = vpack.c.bf16 %v233_v8, %v232_v7  ;;  %v62_v11 = vld [vmem:[%s6487_s1 + $0x28] sm:$0xff]  ;;  %v64_v12 = vld [vmem:[%s6487_s1 + $0x38] sm:$0xff]  ;;  %v61_v13 = vld [vmem:[%s6487_s1 + $0x20] sm:$0xff]  ;;  %v68_v35 = vshrl.u32 %v67_v34, 7 }
   0x4   :  { %4851 = vmatprep.subr.bf16.mxu0 %v4850_v5  ;;  %v4854_v14 = vpack.c.bf16 %v64_v12, %v62_v11  ;;  %v63_v15 = vld [vmem:[%s6487_s1 + $0x30] sm:$0xff]  ;;  %v235_v17 = vld [vmem:[%s6488_s2 + $0x18] sm:$0xff]  ;;  %v336_v20 = vld [vmem:[%s6489_s3] sm:$0xff] }
   0x5   :  { %v234_v16 = vld [vmem:[%s6488_s2 + $0x10] sm:$0xff]  ;;  %4853 = vmatpush1.bf16.msra.mxu0 %v4852_v9  ;;  %4860 = vmatpush3.bf16.msra.mxu1 %v5503_v10  ;;  %v4856_v18 = vpack.c.bf16 %v63_v15, %v61_v13  ;;  %v337_v21 = vld [vmem:[%s6489_s3 + $0x8] sm:$0xff]  ;;  %v49_v22 = vld [vmem:[%s6490_s0] sm:$0xff]  ;;  %v5605_v36 = vsub.s32 0, %v68_v35  ;;  %v5610_v38 = vsub.s32 1, %v68_v35 }
   0x6   :  { %v5524_v19 = vpack.c.bf16 %v235_v17, %v234_v16  ;;  %4855 = vmatprep.subr.bf16.mxu0 %v4854_v14  ;;  %4861 = vmatprep.subr.bf16.mxu1 %v5400_v3  ;;  %v5537_v23 = vpack.c.bf16 %v337_v21, %v336_v20  ;;  %v338_v24 = vld [vmem:[%s6489_s3 + $0x10] sm:$0xff]  ;;  %v339_v25 = vld [vmem:[%s6489_s3 + $0x18] sm:$0xff]  ;;  %v50_v26 = vld [vmem:[%s6490_s0 + $0x8] sm:$0xff] }
   0x7   :  { %v5554_v27 = vpack.c.bf16 %v339_v25, %v338_v24  ;;  %v51_v28 = vld [vmem:[%s6490_s0 + $0x10] sm:$0xff]  ;;  %v52_v29 = vld [vmem:[%s6490_s0 + $0x18] sm:$0xff]  ;;  %v53_v30 = vld [vmem:[%s6490_s0 + $0x20] sm:$0xff] }
   0x8   :  { %v54_v31 = vld [vmem:[%s6490_s0 + $0x28] sm:$0xff]  ;;  %v55_v32 = vld [vmem:[%s6490_s0 + $0x30] sm:$0xff]  ;;  %v56_v33 = vld [vmem:[%s6490_s0 + $0x38] sm:$0xff]  ;;  %s5403_s0 = smov 64  }
   0x9   :  { %4857 = vmatpush1.bf16.msra.mxu0 %v4856_v18  ;;  %4863 = vmatpush3.bf16.msra.mxu1 %v5524_v19  ;;  %v65_v37 = vld [vmem:[%s6491_s4] sm:$0x3]  ;;  %s5404_s4 = smov 32  }
   0xa   :  { %4864 = vmatprep.subr.bf16.mxu1 %v5400_v3  ;;  %4882 = vmatprep.subr.bf16.mxu0 %v5400_v3  ;;  %v70_v39 = vrot.slane %v65_v37, %v5605_v36  ;;  %v74_v40 = vrot.slane %v65_v37, %v5610_v38 }
   0xc   :  { %4201 = vmatmul.mubr.msk.f32.vlgmr.msra.gmra.mrb[0].mxu0 %vm77_vm1, %v49_v22  ;;  %4472 = vmatmul.mubr.f32.vlgmr.msra.gmra.mrb[0].mxu1 %v5401_v4 }
   0xd   :  { %172 = vmatprep.mubr.f32.mxu0 %v5401_v4  ;;  %4866 = vmatpush3.bf16.msra.mxu1 %v5537_v23 }
   0xe   :  { %4867 = vmatprep.subr.bf16.mxu1 %v5400_v3  ;;  %4482 = vmatprep.mubr.msk.f32.mxu1 %vm5402_vm0, %v5401_v4 }
   0xf   :  { %4884 = vmatpush3.bf16.msra.mxu0 %v5503_v10 }
  0x10   :  { %4202 = vmatmul.mubr.msk.f32.gmra.mrb[2].mxu0 %vm77_vm1, %v50_v26  ;;  %4885 = vmatprep.subr.bf16.mxu0 %v5400_v3 }
  0x11   :  { %178 = vmatprep.mubr.f32.mxu0 %v5401_v4  ;;  %4869 = vmatpush3.bf16.msra.mxu1 %v5554_v27 }
  0x12   :  { %4870 = vmatprep.subr.bf16.mxu1 %v5400_v3 }
  0x13   :  { %4887 = vmatpush3.bf16.msra.mxu0 %v5524_v19 }
  0x14   :  { %4203 = vmatmul.mubr.msk.f32.gmra.mrb[4].mxu0 %vm77_vm1, %v51_v28  ;;  %4483 = vmatmul.mubr.f32.vlgmr.msra.gmra.mrb[2].mxu1 %v5401_v4 }
  0x15   :  { %184 = vmatprep.mubr.f32.mxu0 %v5401_v4  ;;  %4872 = vmatpush3.bf16.msra.mxu1 %v5503_v10 }
  0x16   :  { %4873 = vmatprep.subr.bf16.mxu1 %v5400_v3  ;;  %4493 = vmatprep.mubr.msk.f32.mxu1 %vm5402_vm0, %v5401_v4 }
  0x17   :  { %4894 = vmatprep.subr.bf16.mxu0 %v5400_v3 }
  0x18   :  { %4204 = vmatmul.mubr.msk.f32.gmra.mrb[6].mxu0 %vm77_vm1, %v52_v29 }
  0x19   :  { %190 = vmatprep.mubr.f32.mxu0 %v5401_v4  ;;  %4875 = vmatpush3.bf16.msra.mxu1 %v5524_v19 }
  0x1a   :  { %4876 = vmatprep.subr.bf16.mxu1 %v5400_v3 }
  0x1c   :  { %4205 = vmatmul.mubr.msk.f32.gmra.mrb[8].mxu0 %vm77_vm1, %v53_v30 }
  0x1d   :  { %196 = vmatprep.mubr.f32.mxu0 %v5401_v4 }
  0x20   :  { %4206 = vmatmul.mubr.msk.f32.gmra.mrb[10].mxu0 %vm77_vm1, %v54_v31 }
  0x21   :  { %202 = vmatprep.mubr.f32.mxu0 %v5401_v4 }
  0x24   :  { %4207 = vmatmul.mubr.msk.f32.gmra.mrb[12].mxu0 %vm77_vm1, %v55_v32 }
  0x25   :  { %208 = vmatprep.mubr.f32.mxu0 %v5401_v4 }
  0x28   :  { %4208 = vmatmul.mubr.msk.f32.gmra.mrb[14].mxu0 %vm77_vm1, %v56_v33 }
  0x29   :  { %4515 = vmatprep.mubr.msk.f32.mxu0 %vm5402_vm0, %v5401_v4 }
  0xdf   :  { %v168_v41 = vpop.f32.mrb[0].mxu0  ;;  %v305_v42 = vpop.f32.mrb[0].mxu1 }
  0xe0   :  { %v169_v43 = vadd.f32 %v168_v41, %v70_v39  ;;  %v170_v44 = vpop.f32.mrb[1].mxu0  ;;  %v4473_v45 = vpop.f32.mrb[1].mxu1 }
  0xe1   :  { %v5614_v46 = vadd.f32 %v170_v44, %v74_v40 }
  0xe2   :  { %v309_v47 = vadd.f32 %v305_v42, %v169_v43 }
  0xe3   :  { %v174_v48 = vpop.f32.mrb[2].mxu0 }
  0xe4   :  { %5144 = vtanh.f32 %v309_v47  ;;  %v5616_v49 = vadd.f32 %v174_v48, %v70_v39  ;;  %v176_v50 = vpop.f32.mrb[3].mxu0  ;;  %v4209_v21 = vmul.f32 -1.442695, %v309_v47 }
  0xe5   :  { %v5618_v51 = vadd.f32 %v176_v50, %v74_v40 }
  0xe7   :  { %v180_v52 = vpop.f32.mrb[4].mxu0  ;;  %v406_v53 = vpop.f32.mrb[2].mxu1 }
  0xe8   :  { %v5620_v54 = vadd.f32 %v180_v52, %v70_v39  ;;  %v182_v55 = vpop.f32.mrb[5].mxu0  ;;  %v4484_v56 = vpop.f32.mrb[3].mxu1 }
  0xe9   :  { %v5622_v57 = vadd.f32 %v182_v55, %v74_v40 }
  0xeb   :  { %v186_v58 = vpop.f32.mrb[6].mxu0 }
  0xec   :  { %v5624_v59 = vadd.f32 %v186_v58, %v70_v39  ;;  %v188_v60 = vpop.f32.mrb[7].mxu0 }
  0xed   :  { %v5626_v61 = vadd.f32 %v188_v60, %v74_v40 }
  0xee   :  { %v5145_v62 = vpop.eup %5144 }
  0xef   :  { %v192_v63 = vpop.f32.mrb[8].mxu0  ;;  %319 = vrot.lane.b32.xlu0 %v5145_v62, %s5403_s0 }
  0xf0   :  { %v5629_v0 = vadd.f32 %v192_v63, %v70_v39  ;;  %v194_v1 = vpop.f32.mrb[9].mxu0 }
  0xf1   :  { %v5631_v2 = vadd.f32 %v194_v1, %v74_v40 }
  0xf3   :  { %v198_v5 = vpop.f32.mrb[10].mxu0 }
  0xf4   :  { %v5633_v6 = vadd.f32 %v198_v5, %v70_v39  ;;  %v200_v7 = vpop.f32.mrb[11].mxu0 }
  0xf5   :  { %v5635_v8 = vadd.f32 %v200_v7, %v74_v40 }
  0xf7   :  { %v204_v9 = vpop.f32.mrb[12].mxu0 }
  0xf8   :  { %v5637_v11 = vadd.f32 %v204_v9, %v70_v39  ;;  %v206_v12 = vpop.f32.mrb[13].mxu0 }
  0xf9   :  { %v5639_v13 = vadd.f32 %v206_v12, %v74_v40 }
  0xfb   :  { %v210_v14 = vpop.f32.mrb[14].mxu0 }
  0xfc   :  { %v5641_v15 = vadd.f32 %v210_v14, %v70_v39  ;;  %v212_v16 = vpop.f32.mrb[15].mxu0 }
  0xfd   :  { %v213_v17 = vadd.f32 %v212_v16, %v74_v40 }
  0xff   :  { %v410_v18 = vadd.f32 %v406_v53, %v213_v17 }
 0x101   :  { %5146 = vtanh.f32 %v410_v18  ;;  %v4210_v25 = vmul.f32 -1.442695, %v410_v18 }
 0x102   :  { %5148 = vpow2.f32 %v4209_v21 }
 0x10b   :  { %v5147_v20 = vpop.eup %5146 }
 0x10c   :  { %420 = vrot.lane.b32.xlu0 %v5147_v20, %s5403_s0  ;;  %v5149_v22 = vpop.eup %5148 }
 0x10d   :  { %v313_v24 = vadd.f32 1.0, %v5149_v22 }
 0x10f   :  { %5150 = vrcp.f32 %v313_v24 }
 0x110   :  { %5152 = vpow2.f32 %v4210_v25 }
 0x119   :  { %v5151_v26 = vpop.eup %5150 }
 0x11a   :  { %v5153_v30 = vpop.eup %5152  ;;  %v317_v35 = vmul.f32 0.0, %v5151_v26 }
 0x11b   :  { %v414_v31 = vadd.f32 1.0, %v5153_v30 }
 0x11d   :  { %5154 = vrcp.f32 %v414_v31 }
 0x127   :  { %v5155_v32 = vpop.eup %5154 }
 0x128   :  { %v418_v41 = vmul.f32 0.0, %v5155_v32 }
 0x161   :  { %v320_v28 = vpop.permute.xlu0 %319 }
 0x162   :  { %v322_v29 = vmul.f32 %v5151_v26, %v320_v28 }
 0x164   :  { %324 = vrot.lane.b32.xlu1 %v322_v29, %s5404_s4 }
 0x17e   :  { %v421_v33 = vpop.permute.xlu0 %420 }
 0x17f   :  { %v423_v34 = vmul.f32 %v5155_v32, %v421_v33 }
 0x181   :  { %425 = vrot.lane.b32.xlu1 %v423_v34, %s5404_s4 }
 0x1d6   :  { %v325_v37 = vpop.permute.xlu1 %324 }
 0x1d7   :  { %v327_v39 = vadd.f32 %v325_v37, %v317_v35 }
 0x1d9   :  { %5156 = vtanh.f32 %v327_v39 }
 0x1e3   :  { %v5157_v40 = vpop.eup %5156 }
 0x1e4   :  { %330 = vrot.lane.b32.xlu0 %v5157_v40, %s5403_s0 }
 0x1f3   :  { %v426_v42 = vpop.permute.xlu1 %425 }
 0x1f4   :  { %v428_v43 = vadd.f32 %v426_v42, %v418_v41 }
 0x1f6   :  { %5158 = vtanh.f32 %v428_v43 }
 0x200   :  { %v5159_v44 = vpop.eup %5158 }
 0x201   :  { %431 = vrot.lane.b32.xlu1 %v5159_v44, %s5403_s0 }
 0x256   :  { %v331_v45 = vpop.permute.xlu0 %330 }
 0x257   :  { %v333_v47 = vmul.f32 %v5151_v26, %v331_v45 }
 0x259   :  { %436 = vrot.lane.b32.xlu0 %v333_v47, %s5404_s4 }
 0x273   :  { %v432_v48 = vpop.permute.xlu1 %431 }
 0x274   :  { %v434_v50 = vmul.f32 %v5155_v32, %v432_v48 }
 0x276   :  { %441 = vrot.lane.b32.xlu1 %v434_v50, %s5404_s4 }
 0x2cb   :  { %v437_v52 = vpop.permute.xlu0 %436 }
 0x2cc   :  { %439 = vst.msk [vmem:[#allocation4] sm:$0xff] %vm77_vm1, %v437_v52  ;;  %4494 = vmatmul.mubr.msk.f32.vlgmr.msra.gmra.mrb[4].mxu1 %vm77_vm1, %v437_v52 }
 0x2cd   :  { %4878 = vmatpush3.bf16.msra.mxu1 %v5537_v23  ;;  %4504 = vmatprep.mubr.msk.f32.mxu1 %vm5402_vm0, %v5401_v4 }
 0x2ce   :  { %4879 = vmatprep.subr.bf16.mxu1 %v5400_v3 }
 0x2d1   :  { %4881 = vmatpush3.bf16.msra.mxu1 %v5554_v27 }
 0x2d2   :  { %4888 = vmatprep.subr.bf16.mxu1 %v5400_v3 }
 0x2e8   :  { %v442_v53 = vpop.permute.xlu1 %441 }
 0x2e9   :  { %445 = vst.msk [vmem:[#allocation5 + $0x38] sm:$0xff] %vm77_vm1, %v442_v53  ;;  %4505 = vmatmul.mubr.msk.f32.vlgmr.msra.gmra.mrb[6].mxu1 %vm77_vm1, %v442_v53 }
 0x2ea   :  { %4890 = vmatpush3.bf16.msra.mxu1 %v5537_v23  ;;  %4526 = vmatprep.mubr.msk.f32.mxu1 %vm5402_vm0, %v5401_v4 }
 0x2eb   :  { %4891 = vmatprep.subr.bf16.mxu1 %v5400_v3 }
 0x2ee   :  { %4893 = vmatpush3.bf16.msra.mxu1 %v5554_v27 }
 0x2ef   :  { %4900 = vmatprep.subr.bf16.mxu1 %v5400_v3 }
 0x39f   :  { %v520_v55 = vpop.f32.mrb[4].mxu1 }
 0x3a0   :  { %v524_v56 = vadd.f32 %v520_v55, %v5616_v49  ;;  %v4495_v58 = vpop.f32.mrb[5].mxu1 }
 0x3a2   :  { %5160 = vtanh.f32 %v524_v56  ;;  %v4212_v7 = vmul.f32 -1.442695, %v524_v56 }
 0x3ac   :  { %v5161_v60 = vpop.eup %5160 }
 0x3ad   :  { %534 = vrot.lane.b32.xlu1 %v5161_v60, %s5403_s0 }
 0x3bc   :  { %v623_v62 = vpop.f32.mrb[6].mxu1 }
 0x3bd   :  { %v627_v63 = vadd.f32 %v623_v62, %v5639_v13  ;;  %v4506_v1 = vpop.f32.mrb[7].mxu1 }
 0x3bf   :  { %5162 = vtanh.f32 %v627_v63  ;;  %v4214_v14 = vmul.f32 -1.442695, %v627_v63 }
 0x3c0   :  { %5164 = vpow2.f32 %v4212_v7 }
 0x3c9   :  { %v5163_v5 = vpop.eup %5162 }
 0x3ca   :  { %637 = vrot.lane.b32.xlu0 %v5163_v5, %s5403_s0  ;;  %v5165_v9 = vpop.eup %5164 }
 0x3cb   :  { %v528_v12 = vadd.f32 1.0, %v5165_v9 }
 0x3cd   :  { %5166 = vrcp.f32 %v528_v12 }
 0x3ce   :  { %5168 = vpow2.f32 %v4214_v14 }
 0x3d7   :  { %v5167_v49 = vpop.eup %5166 }
 0x3d8   :  { %v5169_v18 = vpop.eup %5168  ;;  %v532_v24 = vmul.f32 %v5167_v49, %v327_v39 }
 0x3d9   :  { %v631_v20 = vadd.f32 1.0, %v5169_v18 }
 0x3db   :  { %5170 = vrcp.f32 %v631_v20 }
 0x3e5   :  { %v5171_v13 = vpop.eup %5170 }
 0x3e6   :  { %v635_v29 = vmul.f32 %v5171_v13, %v428_v43 }
 0x41f   :  { %v535_v16 = vpop.permute.xlu1 %534 }
 0x420   :  { %v537_v17 = vmul.f32 %v5167_v49, %v535_v16 }
 0x422   :  { %539 = vrot.lane.b32.xlu1 %v537_v17, %s5404_s4 }
 0x43c   :  { %v638_v21 = vpop.permute.xlu0 %637 }
 0x43d   :  { %v640_v22 = vmul.f32 %v5171_v13, %v638_v21 }
 0x43f   :  { %642 = vrot.lane.b32.xlu0 %v640_v22, %s5404_s4 }
 0x494   :  { %v540_v25 = vpop.permute.xlu1 %539 }
 0x495   :  { %v542_v26 = vadd.f32 %v540_v25, %v532_v24 }
 0x497   :  { %5172 = vtanh.f32 %v542_v26 }
 0x4a1   :  { %v5173_v28 = vpop.eup %5172 }
 0x4a2   :  { %545 = vrot.lane.b32.xlu1 %v5173_v28, %s5403_s0 }
 0x4b1   :  { %v643_v30 = vpop.permute.xlu0 %642 }
 0x4b2   :  { %v645_v31 = vadd.f32 %v643_v30, %v635_v29 }
 0x4b4   :  { %5174 = vtanh.f32 %v645_v31 }
 0x4be   :  { %v5175_v32 = vpop.eup %5174 }
 0x4bf   :  { %648 = vrot.lane.b32.xlu0 %v5175_v32, %s5403_s0 }
 0x514   :  { %v546_v33 = vpop.permute.xlu1 %545 }
 0x515   :  { %v548_v34 = vmul.f32 %v5167_v49, %v546_v33 }
 0x517   :  { %653 = vrot.lane.b32.xlu1 %v548_v34, %s5404_s4 }
 0x531   :  { %v649_v35 = vpop.permute.xlu0 %648 }
 0x532   :  { %v651_v37 = vmul.f32 %v5171_v13, %v649_v35 }
 0x534   :  { %659 = vrot.lane.b32.xlu0 %v651_v37, %s5404_s4 }
 0x589   :  { %v654_v39 = vpop.permute.xlu1 %653 }
 0x58a   :  { %657 = vst.msk [vmem:[#allocation4 + $0x8] sm:$0xff] %vm77_vm1, %v654_v39  ;;  %4516 = vmatmul.mubr.msk.f32.vlgmr.msra.gmra.mrb[16].mxu0 %vm77_vm1, %v654_v39 }
 0x58b   :  { %4896 = vmatpush3.bf16.msra.mxu0 %v5503_v10  ;;  %4537 = vmatprep.mubr.msk.f32.mxu0 %vm5402_vm0, %v5401_v4 }
 0x58c   :  { %4897 = vmatprep.subr.bf16.mxu0 %v5400_v3 }
 0x58f   :  { %4899 = vmatpush3.bf16.msra.mxu0 %v5524_v19 }
 0x590   :  { %4906 = vmatprep.subr.bf16.mxu0 %v5400_v3 }
 0x5a6   :  { %v660_v40 = vpop.permute.xlu0 %659 }
 0x5a7   :  { %663 = vst.msk [vmem:[#allocation5 + $0x30] sm:$0xff] %vm77_vm1, %v660_v40  ;;  %4527 = vmatmul.mubr.msk.f32.vlgmr.msra.gmra.mrb[8].mxu1 %vm77_vm1, %v660_v40 }
 0x5a8   :  { %4902 = vmatpush3.bf16.msra.mxu1 %v5537_v23  ;;  %4548 = vmatprep.mubr.msk.f32.mxu1 %vm5402_vm0, %v5401_v4 }
 0x5a9   :  { %4903 = vmatprep.subr.bf16.mxu1 %v5400_v3 }
 0x5ac   :  { %4905 = vmatpush3.bf16.msra.mxu1 %v5554_v27 }
 0x5ad   :  { %4912 = vmatprep.subr.bf16.mxu1 %v5400_v3 }
 0x65d   :  { %v738_v41 = vpop.f32.mrb[16].mxu0 }
 0x65e   :  { %v742_v42 = vadd.f32 %v738_v41, %v5620_v54  ;;  %v4517_v43 = vpop.f32.mrb[17].mxu0 }
 0x660   :  { %5176 = vtanh.f32 %v742_v42  ;;  %v4216_v52 = vmul.f32 -1.442695, %v742_v42 }
 0x66a   :  { %v5177_v44 = vpop.eup %5176 }
 0x66b   :  { %752 = vrot.lane.b32.xlu1 %v5177_v44, %s5403_s0 }
 0x67a   :  { %v841_v45 = vpop.f32.mrb[8].mxu1 }
 0x67b   :  { %v845_v47 = vadd.f32 %v841_v45, %v5635_v8  ;;  %v4528_v48 = vpop.f32.mrb[9].mxu1 }
 0x67d   :  { %5178 = vtanh.f32 %v845_v47  ;;  %v4218_v56 = vmul.f32 -1.442695, %v845_v47 }
 0x67e   :  { %5180 = vpow2.f32 %v4216_v52 }
 0x687   :  { %v5179_v50 = vpop.eup %5178 }
 0x688   :  { %855 = vrot.lane.b32.xlu0 %v5179_v50, %s5403_s0  ;;  %v5181_v53 = vpop.eup %5180 }
 0x689   :  { %v746_v55 = vadd.f32 1.0, %v5181_v53 }
 0x68b   :  { %5182 = vrcp.f32 %v746_v55 }
 0x68c   :  { %5184 = vpow2.f32 %v4218_v56 }
 0x695   :  { %v5183_v54 = vpop.eup %5182 }
 0x696   :  { %v5185_v62 = vpop.eup %5184  ;;  %v750_v7 = vmul.f32 %v5183_v54, %v542_v26 }
 0x697   :  { %v849_v63 = vadd.f32 1.0, %v5185_v62 }
 0x699   :  { %5186 = vrcp.f32 %v849_v63 }
 0x6a3   :  { %v5187_v8 = vpop.eup %5186 }
 0x6a4   :  { %v853_v49 = vmul.f32 %v5187_v8, %v645_v31 }
 0x6dd   :  { %v753_v58 = vpop.permute.xlu1 %752 }
 0x6de   :  { %v755_v60 = vmul.f32 %v5183_v54, %v753_v58 }
 0x6e0   :  { %757 = vrot.lane.b32.xlu1 %v755_v60, %s5404_s4 }
 0x6fa   :  { %v856_v1 = vpop.permute.xlu0 %855 }
 0x6fb   :  { %v858_v5 = vmul.f32 %v5187_v8, %v856_v1 }
 0x6fd   :  { %860 = vrot.lane.b32.xlu0 %v858_v5, %s5404_s4 }
 0x752   :  { %v758_v9 = vpop.permute.xlu1 %757 }
 0x753   :  { %v760_v12 = vadd.f32 %v758_v9, %v750_v7 }
 0x755   :  { %5188 = vtanh.f32 %v760_v12 }
 0x75f   :  { %v5189_v14 = vpop.eup %5188 }
 0x760   :  { %763 = vrot.lane.b32.xlu1 %v5189_v14, %s5403_s0 }
 0x76f   :  { %v861_v16 = vpop.permute.xlu0 %860 }
 0x770   :  { %v863_v17 = vadd.f32 %v861_v16, %v853_v49 }
 0x772   :  { %5190 = vtanh.f32 %v863_v17 }
 0x77c   :  { %v5191_v18 = vpop.eup %5190 }
 0x77d   :  { %866 = vrot.lane.b32.xlu0 %v5191_v18, %s5403_s0 }
 0x7d2   :  { %v764_v20 = vpop.permute.xlu1 %763 }
 0x7d3   :  { %v766_v13 = vmul.f32 %v5183_v54, %v764_v20 }
 0x7d5   :  { %871 = vrot.lane.b32.xlu1 %v766_v13, %s5404_s4 }
 0x7ef   :  { %v867_v21 = vpop.permute.xlu0 %866 }
 0x7f0   :  { %v869_v22 = vmul.f32 %v5187_v8, %v867_v21 }
 0x7f2   :  { %877 = vrot.lane.b32.xlu0 %v869_v22, %s5404_s4 }
 0x847   :  { %v872_v24 = vpop.permute.xlu1 %871 }
 0x848   :  { %875 = vst.msk [vmem:[#allocation4 + $0x10] sm:$0xff] %vm77_vm1, %v872_v24  ;;  %4538 = vmatmul.mubr.msk.f32.vlgmr.msra.gmra.mrb[18].mxu0 %vm77_vm1, %v872_v24 }
 0x849   :  { %4908 = vmatpush3.bf16.msra.mxu0 %v5503_v10  ;;  %4559 = vmatprep.mubr.msk.f32.mxu0 %vm5402_vm0, %v5401_v4 }
 0x84a   :  { %4909 = vmatprep.subr.bf16.mxu0 %v5400_v3 }
 0x84d   :  { %4911 = vmatpush3.bf16.msra.mxu0 %v5524_v19 }
 0x84e   :  { %4918 = vmatprep.subr.bf16.mxu0 %v5400_v3 }
 0x864   :  { %v878_v25 = vpop.permute.xlu0 %877 }
 0x865   :  { %881 = vst.msk [vmem:[#allocation5 + $0x28] sm:$0xff] %vm77_vm1, %v878_v25  ;;  %4549 = vmatmul.mubr.msk.f32.vlgmr.msra.gmra.mrb[10].mxu1 %vm77_vm1, %v878_v25 }
 0x866   :  { %4914 = vmatpush3.bf16.msra.mxu1 %v5537_v23  ;;  %4570 = vmatprep.mubr.msk.f32.mxu1 %vm5402_vm0, %v5401_v4 }
 0x867   :  { %4915 = vmatprep.subr.bf16.mxu1 %v5400_v3 }
 0x86a   :  { %4917 = vmatpush3.bf16.msra.mxu1 %v5554_v27 }
 0x86b   :  { %4924 = vmatprep.subr.bf16.mxu1 %v5400_v3 }
 0x91b   :  { %v956_v26 = vpop.f32.mrb[18].mxu0 }
 0x91c   :  { %v960_v28 = vadd.f32 %v956_v26, %v5624_v59  ;;  %v4539_v29 = vpop.f32.mrb[19].mxu0 }
 0x91e   :  { %5192 = vtanh.f32 %v960_v28  ;;  %v4220_v35 = vmul.f32 -1.442695, %v960_v28 }
 0x928   :  { %v5193_v30 = vpop.eup %5192 }
 0x929   :  { %970 = vrot.lane.b32.xlu1 %v5193_v30, %s5403_s0 }
 0x938   :  { %v1059_v31 = vpop.f32.mrb[10].mxu1 }
 0x939   :  { %v1063_v32 = vadd.f32 %v1059_v31, %v5631_v2  ;;  %v4550_v33 = vpop.f32.mrb[11].mxu1 }
 0x93b   :  { %5194 = vtanh.f32 %v1063_v32  ;;  %v4222_v40 = vmul.f32 -1.442695, %v1063_v32 }
 0x93c   :  { %5196 = vpow2.f32 %v4220_v35 }
 0x945   :  { %v5195_v34 = vpop.eup %5194 }
 0x946   :  { %1073 = vrot.lane.b32.xlu0 %v5195_v34, %s5403_s0  ;;  %v5197_v37 = vpop.eup %5196 }
 0x947   :  { %v964_v39 = vadd.f32 1.0, %v5197_v37 }
 0x949   :  { %5198 = vrcp.f32 %v964_v39 }
 0x94a   :  { %5200 = vpow2.f32 %v4222_v40 }
 0x953   :  { %v5199_v59 = vpop.eup %5198 }
 0x954   :  { %v5201_v43 = vpop.eup %5200  ;;  %v968_v48 = vmul.f32 %v5199_v59, %v760_v12 }
 0x955   :  { %v1067_v44 = vadd.f32 1.0, %v5201_v43 }
 0x957   :  { %5202 = vrcp.f32 %v1067_v44 }
 0x961   :  { %v5203_v2 = vpop.eup %5202 }
 0x962   :  { %v1071_v55 = vmul.f32 %v5203_v2, %v863_v17 }
 0x99b   :  { %v971_v41 = vpop.permute.xlu1 %970 }
 0x99c   :  { %v973_v42 = vmul.f32 %v5199_v59, %v971_v41 }
 0x99e   :  { %975 = vrot.lane.b32.xlu1 %v973_v42, %s5404_s4 }
 0x9b8   :  { %v1074_v45 = vpop.permute.xlu0 %1073 }
 0x9b9   :  { %v1076_v47 = vmul.f32 %v5203_v2, %v1074_v45 }
 0x9bb   :  { %1078 = vrot.lane.b32.xlu0 %v1076_v47, %s5404_s4 }
 0xa10   :  { %v976_v50 = vpop.permute.xlu1 %975 }
 0xa11   :  { %v978_v52 = vadd.f32 %v976_v50, %v968_v48 }
 0xa13   :  { %5204 = vtanh.f32 %v978_v52 }
 0xa1d   :  { %v5205_v53 = vpop.eup %5204 }
 0xa1e   :  { %981 = vrot.lane.b32.xlu1 %v5205_v53, %s5403_s0 }
 0xa2d   :  { %v1079_v56 = vpop.permute.xlu0 %1078 }
 0xa2e   :  { %v1081_v54 = vadd.f32 %v1079_v56, %v1071_v55 }
 0xa30   :  { %5206 = vtanh.f32 %v1081_v54 }
 0xa3a   :  { %v5207_v58 = vpop.eup %5206 }
 0xa3b   :  { %1084 = vrot.lane.b32.xlu0 %v5207_v58, %s5403_s0 }
 0xa90   :  { %v982_v60 = vpop.permute.xlu1 %981 }
 0xa91   :  { %v984_v62 = vmul.f32 %v5199_v59, %v982_v60 }
 0xa93   :  { %1089 = vrot.lane.b32.xlu1 %v984_v62, %s5404_s4 }
 0xaad   :  { %v1085_v63 = vpop.permute.xlu0 %1084 }
 0xaae   :  { %v1087_v8 = vmul.f32 %v5203_v2, %v1085_v63 }
 0xab0   :  { %1095 = vrot.lane.b32.xlu0 %v1087_v8, %s5404_s4 }
 0xb05   :  { %v1090_v1 = vpop.permute.xlu1 %1089 }
 0xb06   :  { %1093 = vst.msk [vmem:[#allocation4 + $0x18] sm:$0xff] %vm77_vm1, %v1090_v1  ;;  %4560 = vmatmul.mubr.msk.f32.vlgmr.msra.gmra.mrb[20].mxu0 %vm77_vm1, %v1090_v1 }
 0xb07   :  { %4920 = vmatpush3.bf16.msra.mxu0 %v5503_v10  ;;  %4581 = vmatprep.mubr.msk.f32.mxu0 %vm5402_vm0, %v5401_v4 }
 0xb08   :  { %4921 = vmatprep.subr.bf16.mxu0 %v5400_v3 }
 0xb0b   :  { %4923 = vmatpush3.bf16.msra.mxu0 %v5524_v19 }
 0xb0c   :  { %4930 = vmatprep.subr.bf16.mxu0 %v5400_v3 }
 0xb22   :  { %v1096_v5 = vpop.permute.xlu0 %1095 }
 0xb23   :  { %1099 = vst.msk [vmem:[#allocation5 + $0x20] sm:$0xff] %vm77_vm1, %v1096_v5  ;;  %4571 = vmatmul.mubr.msk.f32.vlgmr.msra.gmra.mrb[12].mxu1 %vm77_vm1, %v1096_v5 }
 0xb24   :  { %4926 = vmatpush3.bf16.msra.mxu1 %v5537_v23  ;;  %4592 = vmatprep.mubr.msk.f32.mxu1 %vm5402_vm0, %v5401_v4 }
 0xb25   :  { %4927 = vmatprep.subr.bf16.mxu1 %v5400_v3 }
 0xb28   :  { %4929 = vmatpush3.bf16.msra.mxu1 %v5554_v27 }
 0xb29   :  { %4936 = vmatprep.subr.bf16.mxu1 %v5400_v3 }
 0xbd9   :  { %v1174_v7 = vpop.f32.mrb[20].mxu0 }
 0xbda   :  { %v1178_v9 = vadd.f32 %v1174_v7, %v5629_v0  ;;  %v4561_v12 = vpop.f32.mrb[21].mxu0 }
 0xbdc   :  { %5208 = vtanh.f32 %v1178_v9  ;;  %v4224_v20 = vmul.f32 -1.442695, %v1178_v9 }
 0xbe6   :  { %v5209_v14 = vpop.eup %5208 }
 0xbe7   :  { %1188 = vrot.lane.b32.xlu1 %v5209_v14, %s5403_s0 }
 0xbf6   :  { %v1277_v49 = vpop.f32.mrb[12].mxu1 }
 0xbf7   :  { %v1281_v16 = vadd.f32 %v1277_v49, %v5626_v61  ;;  %v4572_v17 = vpop.f32.mrb[13].mxu1 }
 0xbf9   :  { %5210 = vtanh.f32 %v1281_v16  ;;  %v4226_v22 = vmul.f32 -1.442695, %v1281_v16 }
 0xbfa   :  { %5212 = vpow2.f32 %v4224_v20 }
 0xc03   :  { %v5211_v18 = vpop.eup %5210 }
 0xc04   :  { %1291 = vrot.lane.b32.xlu0 %v5211_v18, %s5403_s0  ;;  %v5213_v13 = vpop.eup %5212 }
 0xc05   :  { %v1182_v21 = vadd.f32 1.0, %v5213_v13 }
 0xc07   :  { %5214 = vrcp.f32 %v1182_v21 }
 0xc08   :  { %5216 = vpow2.f32 %v4226_v22 }
 0xc11   :  { %v5215_v0 = vpop.eup %5214 }
 0xc12   :  { %v5217_v26 = vpop.eup %5216  ;;  %v1186_v31 = vmul.f32 %v5215_v0, %v978_v52 }
 0xc13   :  { %v1285_v28 = vadd.f32 1.0, %v5217_v26 }
 0xc15   :  { %5218 = vrcp.f32 %v1285_v28 }
 0xc1f   :  { %v5219_v61 = vpop.eup %5218 }
 0xc20   :  { %v1289_v35 = vmul.f32 %v5219_v61, %v1081_v54 }
 0xc59   :  { %v1189_v24 = vpop.permute.xlu1 %1188 }
 0xc5a   :  { %v1191_v25 = vmul.f32 %v5215_v0, %v1189_v24 }
 0xc5c   :  { %1193 = vrot.lane.b32.xlu1 %v1191_v25, %s5404_s4 }
 0xc76   :  { %v1292_v29 = vpop.permute.xlu0 %1291 }
 0xc77   :  { %v1294_v30 = vmul.f32 %v5219_v61, %v1292_v29 }
 0xc79   :  { %1296 = vrot.lane.b32.xlu0 %v1294_v30, %s5404_s4 }
 0xcce   :  { %v1194_v32 = vpop.permute.xlu1 %1193 }
 0xccf   :  { %v1196_v33 = vadd.f32 %v1194_v32, %v1186_v31 }
 0xcd1   :  { %5220 = vtanh.f32 %v1196_v33 }
 0xcdb   :  { %v5221_v34 = vpop.eup %5220 }
 0xcdc   :  { %1199 = vrot.lane.b32.xlu1 %v5221_v34, %s5403_s0 }
 0xceb   :  { %v1297_v37 = vpop.permute.xlu0 %1296 }
 0xcec   :  { %v1299_v39 = vadd.f32 %v1297_v37, %v1289_v35 }
 0xcee   :  { %5222 = vtanh.f32 %v1299_v39 }
 0xcf8   :  { %v5223_v40 = vpop.eup %5222 }
 0xcf9   :  { %1302 = vrot.lane.b32.xlu0 %v5223_v40, %s5403_s0 }
 0xd4e   :  { %v1200_v59 = vpop.permute.xlu1 %1199 }
 0xd4f   :  { %v1202_v41 = vmul.f32 %v5215_v0, %v1200_v59 }
 0xd51   :  { %1307 = vrot.lane.b32.xlu1 %v1202_v41, %s5404_s4 }
 0xd6b   :  { %v1303_v42 = vpop.permute.xlu0 %1302 }
 0xd6c   :  { %v1305_v43 = vmul.f32 %v5219_v61, %v1303_v42 }
 0xd6e   :  { %1313 = vrot.lane.b32.xlu0 %v1305_v43, %s5404_s4 }
 0xdc3   :  { %v1308_v44 = vpop.permute.xlu1 %1307 }
 0xdc4   :  { %1311 = vst.msk [vmem:[#allocation4 + $0x20] sm:$0xff] %vm77_vm1, %v1308_v44  ;;  %4582 = vmatmul.mubr.msk.f32.vlgmr.msra.gmra.mrb[22].mxu0 %vm77_vm1, %v1308_v44 }
 0xdc5   :  { %4932 = vmatpush3.bf16.msra.mxu0 %v5503_v10  ;;  %4603 = vmatprep.mubr.msk.f32.mxu0 %vm5402_vm0, %v5401_v4 }
 0xdc6   :  { %4933 = vmatprep.subr.bf16.mxu0 %v5400_v3 }
 0xdc9   :  { %4935 = vmatpush3.bf16.msra.mxu0 %v5524_v19 }
 0xdca   :  { %4942 = vmatprep.subr.bf16.mxu0 %v5400_v3 }
 0xde0   :  { %v1314_v2 = vpop.permute.xlu0 %1313 }
 0xde1   :  { %1317 = vst.msk [vmem:[#allocation5 + $0x18] sm:$0xff] %vm77_vm1, %v1314_v2  ;;  %4593 = vmatmul.mubr.msk.f32.vlgmr.msra.gmra.mrb[14].mxu1 %vm77_vm1, %v1314_v2 }
 0xde2   :  { %4938 = vmatpush3.bf16.msra.mxu1 %v5537_v23  ;;  %4614 = vmatprep.mubr.msk.f32.mxu1 %vm5402_vm0, %v5401_v4 }
 0xde3   :  { %4939 = vmatprep.subr.bf16.mxu1 %v5400_v3 }
 0xde6   :  { %4941 = vmatpush3.bf16.msra.mxu1 %v5554_v27 }
 0xde7   :  { %4948 = vmatprep.subr.bf16.mxu1 %v5400_v3 }
 0xe97   :  { %v1392_v10 = vpop.f32.mrb[22].mxu0 }
 0xe98   :  { %v1396_v19 = vadd.f32 %v1392_v10, %v5633_v6  ;;  %v4583_v45 = vpop.f32.mrb[23].mxu0 }
 0xe9a   :  { %5224 = vtanh.f32 %v1396_v19  ;;  %v4228_v53 = vmul.f32 -1.442695, %v1396_v19 }
 0xea4   :  { %v5225_v47 = vpop.eup %5224 }
 0xea5   :  { %1406 = vrot.lane.b32.xlu1 %v5225_v47, %s5403_s0  ;;  %v1756_v47 = vld [vmem:[%s6488_s2] sm:$0xff] }
 0xeb4   :  { %v1495_v48 = vpop.f32.mrb[14].mxu1 }
 0xeb5   :  { %v1499_v23 = vadd.f32 %v1495_v48, %v5622_v57  ;;  %v4594_v50 = vpop.f32.mrb[15].mxu1  ;;  %v1757_v48 = vld [vmem:[%s6488_s2 + $0x8] sm:$0xff] }
 0xeb6   :  { %v4943_v50 = vpack.c.bf16 %v1757_v48, %v1756_v47  ;;  %v1987_v47 = vld [vmem:[%s6493_s5 + $0x8] sm:$0xff]  ;;  %v1989_v48 = vld [vmem:[%s6493_s5 + $0x18] sm:$0xff] }
 0xeb7   :  { %5226 = vtanh.f32 %v1499_v23  ;;  %v4230_v56 = vmul.f32 -1.442695, %v1499_v23  ;;  %v1758_v23 = vld [vmem:[%s6488_s2 + $0x10] sm:$0xff] }
 0xeb8   :  { %5228 = vpow2.f32 %v4228_v53 }
 0xec1   :  { %v5227_v52 = vpop.eup %5226 }
 0xec2   :  { %1509 = vrot.lane.b32.xlu0 %v5227_v52, %s5403_s0  ;;  %v5229_v27 = vpop.eup %5228  ;;  %v1759_v52 = vld [vmem:[%s6488_s2 + $0x18] sm:$0xff] }
 0xec3   :  { %v1400_v55 = vadd.f32 1.0, %v5229_v27  ;;  %v4946_v53 = vpack.c.bf16 %v1759_v52, %v1758_v23 }
 0xec5   :  { %5230 = vrcp.f32 %v1400_v55  ;;  %v1858_v55 = vld [vmem:[%s6489_s3] sm:$0xff] }
 0xec6   :  { %5232 = vpow2.f32 %v4230_v56  ;;  %v1859_v56 = vld [vmem:[%s6489_s3 + $0x8] sm:$0xff] }
 0xecf   :  { %v5231_v6 = vpop.eup %5230 }
 0xed0   :  { %v5233_v60 = vpop.eup %5232  ;;  %v1404_v1 = vmul.f32 %v5231_v6, %v1196_v33 }
 0xed1   :  { %v1503_v62 = vadd.f32 1.0, %v5233_v60 }
 0xed3   :  { %5234 = vrcp.f32 %v1503_v62 }
 0xedd   :  { %v5235_v57 = vpop.eup %5234 }
 0xede   :  { %v1507_v12 = vmul.f32 %v5235_v57, %v1299_v39 }
 0xf17   :  { %v1407_v54 = vpop.permute.xlu1 %1406 }
 0xf18   :  { %v1409_v58 = vmul.f32 %v5231_v6, %v1407_v54  ;;  %v4949_v54 = vpack.c.bf16 %v1859_v56, %v1858_v55  ;;  %v2322_v55 = vld [vmem:[%s6494_s7 + $0x8] sm:$0xff] }
 0xf1a   :  { %1411 = vrot.lane.b32.xlu1 %v1409_v58, %s5404_s4  ;;  %v1861_v58 = vld [vmem:[%s6489_s3 + $0x18] sm:$0xff] }
 0xf34   :  { %v1510_v63 = vpop.permute.xlu0 %1509 }
 0xf35   :  { %v1512_v8 = vmul.f32 %v5235_v57, %v1510_v63 }
 0xf37   :  { %1514 = vrot.lane.b32.xlu0 %v1512_v8, %s5404_s4 }
 0xf8c   :  { %v1412_v5 = vpop.permute.xlu1 %1411 }
 0xf8d   :  { %v1414_v7 = vadd.f32 %v1412_v5, %v1404_v1 }
 0xf8f   :  { %5236 = vtanh.f32 %v1414_v7 }
 0xf99   :  { %v5237_v9 = vpop.eup %5236 }
 0xf9a   :  { %1417 = vrot.lane.b32.xlu1 %v5237_v9, %s5403_s0 }
 0xfa9   :  { %v1515_v14 = vpop.permute.xlu0 %1514 }
 0xfaa   :  { %v1517_v49 = vadd.f32 %v1515_v14, %v1507_v12 }
 0xfac   :  { %5238 = vtanh.f32 %v1517_v49 }
 0xfb6   :  { %v5239_v16 = vpop.eup %5238 }
 0xfb7   :  { %1520 = vrot.lane.b32.xlu0 %v5239_v16, %s5403_s0 }
0x100c   :  { %v1418_v17 = vpop.permute.xlu1 %1417 }
0x100d   :  { %v1420_v18 = vmul.f32 %v5231_v6, %v1418_v17  ;;  %v1860_v6 = vld [vmem:[%s6489_s3 + $0x10] sm:$0xff] }
0x100e   :  { %v4952_v60 = vpack.c.bf16 %v1861_v58, %v1860_v6  ;;  %v2323_v6 = vld [vmem:[%s6494_s7 + $0x10] sm:$0xff] }
0x100f   :  { %1525 = vrot.lane.b32.xlu1 %v1420_v18, %s5404_s4 }
0x1029   :  { %v1521_v20 = vpop.permute.xlu0 %1520 }
0x102a   :  { %v1523_v13 = vmul.f32 %v5235_v57, %v1521_v20 }
0x102c   :  { %1531 = vrot.lane.b32.xlu0 %v1523_v13, %s5404_s4 }
0x1081   :  { %v1526_v21 = vpop.permute.xlu1 %1525 }
0x1082   :  { %1529 = vst.msk [vmem:[#allocation4 + $0x28] sm:$0xff] %vm77_vm1, %v1526_v21  ;;  %4604 = vmatmul.mubr.msk.f32.vlgmr.msra.gmra.mrb[24].mxu0 %vm77_vm1, %v1526_v21 }
0x1083   :  { %4625 = vmatprep.mubr.msk.f32.mxu0 %vm5402_vm0, %v5401_v4  ;;  %4944 = vmatpush3.bf16.msra.mxu0 %v4943_v50  ;;  %v4962_v50 = vpack.c.bf16 %v1989_v48, %v1987_v47 }
0x1084   :  { %4945 = vmatprep.subr.bf16.mxu0 %v5400_v3 }
0x1087   :  { %4947 = vmatpush3.bf16.msra.mxu0 %v4946_v53 }
0x109e   :  { %v1532_v22 = vpop.permute.xlu0 %1531 }
0x109f   :  { %1535 = vst.msk [vmem:[#allocation5 + $0x10] sm:$0xff] %vm77_vm1, %v1532_v22  ;;  %4615 = vmatmul.mubr.msk.f32.vlgmr.msra.gmra.mrb[16].mxu1 %vm77_vm1, %v1532_v22 }
0x10a0   :  { %4636 = vmatprep.mubr.msk.f32.mxu1 %vm5402_vm0, %v5401_v4  ;;  %4950 = vmatpush3.bf16.msra.mxu1 %v4949_v54  ;;  %v2324_v54 = vld [vmem:[%s6494_s7 + $0x18] sm:$0xff] }
0x10a1   :  { %4951 = vmatprep.subr.bf16.mxu1 %v5400_v3  ;;  %v5896_v58 = vpack.c.bf16 %v2324_v54, %v2323_v6 }
0x10a4   :  { %4953 = vmatpush3.bf16.msra.mxu1 %v4952_v60  ;;  %v2421_v60 = vld [vmem:[%s6495_s8] sm:$0xff] }
0x10a5   :  { %4970 = vmatprep.subr.bf16.mxu1 %v5400_v3 }
0x1155   :  { %v1610_v0 = vpop.f32.mrb[24].mxu0 }
0x1156   :  { %v1614_v24 = vadd.f32 %v1610_v0, %v5637_v11  ;;  %v4605_v25 = vpop.f32.mrb[25].mxu0 }
0x1158   :  { %5240 = vtanh.f32 %v1614_v24  ;;  %v4232_v31 = vmul.f32 -1.442695, %v1614_v24 }
0x1162   :  { %v5241_v26 = vpop.eup %5240 }
0x1163   :  { %1624 = vrot.lane.b32.xlu1 %v5241_v26, %s5403_s0 }
0x1172   :  { %v1713_v28 = vpop.f32.mrb[16].mxu1 }
0x1173   :  { %v1717_v61 = vadd.f32 %v1713_v28, %v5618_v51  ;;  %v4616_v29 = vpop.f32.mrb[17].mxu1 }
0x1175   :  { %5242 = vtanh.f32 %v1717_v61  ;;  %v4234_v34 = vmul.f32 -1.442695, %v1717_v61 }
0x1176   :  { %5244 = vpow2.f32 %v4232_v31 }
0x117f   :  { %v5243_v30 = vpop.eup %5242 }
0x1180   :  { %1727 = vrot.lane.b32.xlu0 %v5243_v30, %s5403_s0  ;;  %v5245_v32 = vpop.eup %5244 }
0x1181   :  { %v1618_v33 = vadd.f32 1.0, %v5245_v32 }
0x1183   :  { %5246 = vrcp.f32 %v1618_v33 }
0x1184   :  { %5248 = vpow2.f32 %v4234_v34 }
0x118d   :  { %v5247_v11 = vpop.eup %5246 }
0x118e   :  { %v5249_v39 = vpop.eup %5248  ;;  %v1622_v42 = vmul.f32 %v5247_v11, %v1414_v7 }
0x118f   :  { %v1721_v40 = vadd.f32 1.0, %v5249_v39  ;;  %v1997_v39 = vld [vmem:[%s6492_s6 + $0x18] sm:$0xff] }
0x1191   :  { %5250 = vrcp.f32 %v1721_v40 }
0x119b   :  { %v5251_v51 = vpop.eup %5250 }
0x119c   :  { %v1725_v10 = vmul.f32 %v5251_v51, %v1517_v49 }
0x11d5   :  { %v1625_v35 = vpop.permute.xlu1 %1624 }
0x11d6   :  { %v1627_v37 = vmul.f32 %v5247_v11, %v1625_v35 }
0x11d8   :  { %1629 = vrot.lane.b32.xlu1 %v1627_v37, %s5404_s4  ;;  %v1995_v37 = vld [vmem:[%s6492_s6 + $0x8] sm:$0xff] }
0x11d9   :  { %v4954_v40 = vpack.c.bf16 %v1997_v39, %v1995_v37 }
0x11db   :  { %4955 = vmatprep.subr.bf16.mxu0 %v4954_v40  ;;  %v2276_v40 = vld [vmem:[%s6496_s9] sm:$0x3] }
0x11f2   :  { %v1728_v59 = vpop.permute.xlu0 %1727 }
0x11f3   :  { %v1730_v41 = vmul.f32 %v5251_v51, %v1728_v59 }
0x11f5   :  { %1732 = vrot.lane.b32.xlu0 %v1730_v41, %s5404_s4  ;;  %v1994_v41 = vld [vmem:[%s6492_s6] sm:$0xff] }
0x124a   :  { %v1630_v43 = vpop.permute.xlu1 %1629 }
0x124b   :  { %v5794_v44 = vadd.f32 %v1630_v43, %v1622_v42  ;;  %v1996_v42 = vld [vmem:[%s6492_s6 + $0x10] sm:$0xff] }
0x124c   :  { %v4956_v43 = vpack.c.bf16 %v1996_v42, %v1994_v41 }
0x124d   :  { %5252 = vtanh.f32 %v5794_v44 }
0x1257   :  { %v5253_v2 = vpop.eup %5252 }
0x1258   :  { %1635 = vrot.lane.b32.xlu1 %v5253_v2, %s5403_s0  ;;  %v2001_v2 = vld [vmem:[%s6492_s6 + $0x38] sm:$0xff] }
0x1267   :  { %v1733_v19 = vpop.permute.xlu0 %1732 }
0x1268   :  { %v5798_v45 = vadd.f32 %v1733_v19, %v1725_v10  ;;  %v1998_v10 = vld [vmem:[%s6492_s6 + $0x20] sm:$0xff] }
0x126a   :  { %5254 = vtanh.f32 %v5798_v45 }
0x1274   :  { %v5255_v27 = vpop.eup %5254 }
0x1275   :  { %1738 = vrot.lane.b32.xlu0 %v5255_v27, %s5403_s0  ;;  %v2321_v27 = vld [vmem:[%s6494_s7] sm:$0xff] }
0x1276   :  { %v5886_v56 = vpack.c.bf16 %v2322_v55, %v2321_v27 }
0x12ca   :  { %v1636_v62 = vpop.permute.xlu1 %1635 }
0x12cb   :  { %v1638_v57 = vmul.f32 %v5247_v11, %v1636_v62  ;;  %v2422_v62 = vld [vmem:[%s6495_s8 + $0x8] sm:$0xff] }
0x12cd   :  { %1743 = vrot.lane.b32.xlu1 %v1638_v57, %s5404_s4  ;;  %v5909_v57 = vpack.c.bf16 %v2422_v62, %v2421_v60 }
0x12e7   :  { %v1739_v63 = vpop.permute.xlu0 %1738 }
0x12e8   :  { %v1741_v8 = vmul.f32 %v5251_v51, %v1739_v63  ;;  %v2423_v63 = vld [vmem:[%s6495_s8 + $0x10] sm:$0xff] }
0x12ea   :  { %1749 = vrot.lane.b32.xlu0 %v1741_v8, %s5404_s4  ;;  %v2424_v8 = vld [vmem:[%s6495_s8 + $0x18] sm:$0xff] }
0x133f   :  { %v1744_v1 = vpop.permute.xlu1 %1743 }
0x1340   :  { %1747 = vst.msk [vmem:[#allocation4 + $0x30] sm:$0xff] %vm77_vm1, %v1744_v1  ;;  %4626 = vmatmul.mubr.msk.f32.vlgmr.msra.gmra.mrb[26].mxu0 %vm77_vm1, %v1744_v1  ;;  %v5919_v1 = vpack.c.bf16 %v2424_v8, %v2423_v63 }
0x1341   :  { %2090 = vmatprep.mubr.f32.mxu0 %v5401_v4  ;;  %4957 = vmatpush1.bf16.msra.mxu0 %v4956_v43 }
0x135c   :  { %v1750_v5 = vpop.permute.xlu0 %1749 }
0x135d   :  { %1753 = vst.msk [vmem:[#allocation5 + $0x8] sm:$0xff] %vm77_vm1, %v1750_v5  ;;  %4637 = vmatmul.mubr.msk.f32.vlgmr.msra.gmra.mrb[18].mxu1 %vm77_vm1, %v1750_v5 }
0x135e   :  { %4647 = vmatprep.mubr.msk.f32.mxu1 %vm5402_vm0, %v5401_v4  ;;  %4972 = vmatpush3.bf16.msra.mxu1 %v5886_v56 }
0x135f   :  { %4973 = vmatprep.subr.bf16.mxu1 %v5400_v3 }
0x1362   :  { %4975 = vmatpush3.bf16.msra.mxu1 %v5896_v58 }
0x1363   :  { %4976 = vmatprep.subr.bf16.mxu1 %v5400_v3 }
0x1365   :  { %4648 = vmatmul.mubr.f32.vlgmr.msra.gmra.mrb[20].mxu1 %v5401_v4 }
0x1366   :  { %4658 = vmatprep.mubr.msk.f32.mxu1 %vm5402_vm0, %v5401_v4  ;;  %4978 = vmatpush3.bf16.msra.mxu1 %v5909_v57 }
0x1367   :  { %4979 = vmatprep.subr.bf16.mxu1 %v5400_v3 }
0x136a   :  { %4981 = vmatpush3.bf16.msra.mxu1 %v5919_v1 }
0x136b   :  { %4982 = vmatprep.subr.bf16.mxu1 %v5400_v3 }
0x136d   :  { %4659 = vmatmul.mubr.f32.vlgmr.msra.gmra.mrb[22].mxu1 %v5401_v4 }
0x136e   :  { %4984 = vmatpush3.bf16.msra.mxu1 %v5886_v56  ;;  %4669 = vmatprep.mubr.msk.f32.mxu1 %vm5402_vm0, %v5401_v4 }
0x136f   :  { %4985 = vmatprep.subr.bf16.mxu1 %v5400_v3 }
0x1372   :  { %4987 = vmatpush3.bf16.msra.mxu1 %v5896_v58 }
0x1373   :  { %4988 = vmatprep.subr.bf16.mxu1 %v5400_v3 }
0x1413   :  { %v1828_v7 = vpop.f32.mrb[26].mxu0 }
0x1414   :  { %v1832_v9 = vadd.f32 %v1828_v7, %v5641_v15  ;;  %v4627_v12 = vpop.f32.mrb[27].mxu0 }
0x1415   :  { %v1988_v12 = vld [vmem:[%s6493_s5 + $0x10] sm:$0xff] }
0x1416   :  { %5256 = vtanh.f32 %v1832_v9  ;;  %v4236_v20 = vmul.f32 -1.442695, %v1832_v9  ;;  %v1986_v9 = vld [vmem:[%s6493_s5] sm:$0xff] }
0x1420   :  { %v5257_v14 = vpop.eup %5256 }
0x1421   :  { %1842 = vrot.lane.b32.xlu1 %v5257_v14, %s5403_s0  ;;  %v1991_v14 = vld [vmem:[%s6493_s5 + $0x28] sm:$0xff] }
0x1430   :  { %v1930_v49 = vpop.f32.mrb[18].mxu1 }
0x1431   :  { %v1934_v16 = vadd.f32 %v1930_v49, %v5614_v46  ;;  %v4638_v17 = vpop.f32.mrb[19].mxu1  ;;  %v1993_v49 = vld [vmem:[%s6493_s5 + $0x38] sm:$0xff] }
0x1432   :  { %v4966_v17 = vpack.c.bf16 %v1993_v49, %v1991_v14 }
0x1433   :  { %5258 = vtanh.f32 %v1934_v16  ;;  %v4238_v22 = vmul.f32 -1.442695, %v1934_v16  ;;  %v4964_v16 = vpack.c.bf16 %v1988_v12, %v1986_v9 }
0x1434   :  { %5260 = vpow2.f32 %v4236_v20  ;;  %v1992_v20 = vld [vmem:[%s6493_s5 + $0x30] sm:$0xff] }
0x143d   :  { %v5259_v18 = vpop.eup %5258 }
0x143e   :  { %1944 = vrot.lane.b32.xlu0 %v5259_v18, %s5403_s0  ;;  %v5261_v13 = vpop.eup %5260  ;;  %v1990_v18 = vld [vmem:[%s6493_s5 + $0x20] sm:$0xff] }
0x143f   :  { %v1836_v21 = vadd.f32 1.0, %v5261_v13 }
0x1441   :  { %5262 = vrcp.f32 %v1836_v21  ;;  %v4968_v21 = vpack.c.bf16 %v1992_v20, %v1990_v18 }
0x1442   :  { %5264 = vpow2.f32 %v4238_v22  ;;  %v1979_v22 = vld [vmem:[#allocation5 + $0x8] sm:$0xff] }
0x144b   :  { %v5263_v15 = vpop.eup %5262 }
0x144c   :  { %v5265_v25 = vpop.eup %5264  ;;  %v1840_v29 = vmul.f32 %v5263_v15, %v5794_v44  ;;  %v1999_v44 = vld [vmem:[%s6492_s6 + $0x28] sm:$0xff] }
0x144d   :  { %v1938_v26 = vadd.f32 1.0, %v5265_v25  ;;  %v4958_v19 = vpack.c.bf16 %v2001_v2, %v1999_v44  ;;  %v1983_v25 = vld [vmem:[#allocation5 + $0x28] sm:$0xff] }
0x144f   :  { %5266 = vrcp.f32 %v1938_v26  ;;  %4959 = vmatprep.subr.bf16.mxu0 %v4958_v19  ;;  %v1984_v26 = vld [vmem:[#allocation5 + $0x30] sm:$0xff] }
0x1459   :  { %v5267_v46 = vpop.eup %5266 }
0x145a   :  { %v1942_v33 = vmul.f32 %v5267_v46, %v5798_v45  ;;  %v2000_v45 = vld [vmem:[%s6492_s6 + $0x30] sm:$0xff] }
0x145b   :  { %v4960_v23 = vpack.c.bf16 %v2000_v45, %v1998_v10 }
0x145d   :  { %4961 = vmatpush1.bf16.msra.mxu0 %v4960_v23 }
0x145e   :  { %4963 = vmatprep.subr.bf16.mxu0 %v4962_v50 }
0x1493   :  { %v1843_v0 = vpop.permute.xlu1 %1842 }
0x1494   :  { %v1845_v24 = vmul.f32 %v5263_v15, %v1843_v0  ;;  %v1981_v0 = vld [vmem:[#allocation5 + $0x18] sm:$0xff] }
0x1496   :  { %1847 = vrot.lane.b32.xlu1 %v1845_v24, %s5404_s4  ;;  %v1982_v24 = vld [vmem:[#allocation5 + $0x20] sm:$0xff] }
0x14b0   :  { %v1945_v28 = vpop.permute.xlu0 %1944 }
0x14b1   :  { %v1947_v61 = vmul.f32 %v5267_v46, %v1945_v28  ;;  %v1970_v28 = vld [vmem:[#allocation4] sm:$0xff] }
0x14b3   :  { %1949 = vrot.lane.b32.xlu0 %v1947_v61, %s5404_s4  ;;  %v1971_v61 = vld [vmem:[#allocation4 + $0x8] sm:$0xff] }
0x1508   :  { %v1848_v30 = vpop.permute.xlu1 %1847 }
0x1509   :  { %v1850_v31 = vadd.f32 %v1848_v30, %v1840_v29  ;;  %v1972_v29 = vld [vmem:[#allocation4 + $0x10] sm:$0xff]  ;;  %v1973_v30 = vld [vmem:[#allocation4 + $0x18] sm:$0xff] }
0x150b   :  { %5268 = vtanh.f32 %v1850_v31  ;;  %v1974_v31 = vld [vmem:[#allocation4 + $0x20] sm:$0xff] }
0x1515   :  { %v5269_v32 = vpop.eup %5268 }
0x1516   :  { %1853 = vrot.lane.b32.xlu1 %v5269_v32, %s5403_s0  ;;  %v1975_v32 = vld [vmem:[#allocation4 + $0x28] sm:$0xff] }
0x1525   :  { %v1950_v34 = vpop.permute.xlu0 %1949 }
0x1526   :  { %v1952_v11 = vadd.f32 %v1950_v34, %v1942_v33  ;;  %v1976_v33 = vld [vmem:[#allocation4 + $0x30] sm:$0xff] }
0x1528   :  { %5270 = vtanh.f32 %v1952_v11  ;;  %v2391_v11 = vpop.f32.mrb[20].mxu1 }
0x1532   :  { %v5271_v35 = vpop.eup %5270 }
0x1533   :  { %1955 = vrot.lane.b32.xlu0 %v5271_v35, %s5403_s0  ;;  %v4649_v35 = vpop.f32.mrb[21].mxu1 }
0x1534   :  { %v2491_v37 = vpop.f32.mrb[22].mxu1 }
0x1535   :  { %v4660_v39 = vpop.f32.mrb[23].mxu1 }
0x1588   :  { %v1854_v51 = vpop.permute.xlu1 %1853 }
0x1589   :  { %v1856_v59 = vmul.f32 %v5263_v15, %v1854_v51  ;;  %v1980_v15 = vld [vmem:[#allocation5 + $0x10] sm:$0xff]  ;;  %v2281_v51 = vrot.slane %v2276_v40, %v5605_v36 }
0x158b   :  { %1960 = vrot.lane.b32.xlu1 %v1856_v59, %s5404_s4  ;;  %v2285_v59 = vrot.slane %v2276_v40, %v5610_v38 }
0x15a5   :  { %v1956_v52 = vpop.permute.xlu0 %1955 }
0x15a6   :  { %v1958_v53 = vmul.f32 %v5267_v46, %v1956_v52  ;;  %v1985_v46 = vld [vmem:[#allocation5 + $0x38] sm:$0xff] }
0x15a8   :  { %1966 = vrot.lane.b32.xlu0 %v1958_v53, %s5404_s4 }
0x15fd   :  { %v1961_v5 = vpop.permute.xlu1 %1960 }
0x15fe   :  { %1964 = vst.msk [vmem:[#allocation4 + $0x38] sm:$0xff] %vm77_vm1, %v1961_v5 }
0x1605   :  { %v1977_v34 = vld [vmem:[#allocation4 + $0x38] sm:$0xff] }
0x161a   :  { %v1967_v7 = vpop.permute.xlu0 %1966 }
0x161b   :  { %1969 = vst.msk [vmem:[#allocation5] sm:$0xff] %vm77_vm1, %v1967_v7 }
0x1622   :  { %v1978_v13 = vld [vmem:[#allocation5] sm:$0xff] }
0x1623   :  { %4239 = vmatmul.mubr.msk.f32.vlgmr.msra.gmra.mrb[28].mxu0 %vm77_vm1, %v1978_v13 }
0x1624   :  { %4965 = vmatpush1.bf16.msra.mxu0 %v4964_v16  ;;  %2096 = vmatprep.mubr.f32.mxu0 %v5401_v4 }
0x1625   :  { %4967 = vmatprep.subr.bf16.mxu0 %v4966_v17 }
0x1627   :  { %4240 = vmatmul.mubr.msk.f32.gmra.mrb[30].mxu0 %vm77_vm1, %v1979_v22 }
0x1628   :  { %2102 = vmatprep.mubr.f32.mxu0 %v5401_v4  ;;  %4969 = vmatpush1.bf16.msra.mxu0 %v4968_v21 }
0x1629   :  { %5018 = vmatprep.subr.bf16.mxu0 %v5400_v3 }
0x162b   :  { %4241 = vmatmul.mubr.msk.f32.gmra.mrb[32].mxu0 %vm77_vm1, %v1980_v15 }
0x162c   :  { %2108 = vmatprep.mubr.f32.mxu0 %v5401_v4 }
0x162f   :  { %4242 = vmatmul.mubr.msk.f32.gmra.mrb[34].mxu0 %vm77_vm1, %v1981_v0 }
0x1630   :  { %2114 = vmatprep.mubr.f32.mxu0 %v5401_v4 }
0x1633   :  { %4243 = vmatmul.mubr.msk.f32.gmra.mrb[36].mxu0 %vm77_vm1, %v1982_v24 }
0x1634   :  { %2120 = vmatprep.mubr.f32.mxu0 %v5401_v4 }
0x1637   :  { %4244 = vmatmul.mubr.msk.f32.gmra.mrb[38].mxu0 %vm77_vm1, %v1983_v25 }
0x1638   :  { %2126 = vmatprep.mubr.f32.mxu0 %v5401_v4 }
0x163b   :  { %4245 = vmatmul.mubr.msk.f32.gmra.mrb[40].mxu0 %vm77_vm1, %v1984_v26 }
0x163c   :  { %2132 = vmatprep.mubr.f32.mxu0 %v5401_v4 }
0x163f   :  { %4246 = vmatmul.mubr.msk.f32.gmra.mrb[42].mxu0 %vm77_vm1, %v1985_v46 }
0x1640   :  { %2227 = vmatprep.mubr.f32.mxu0 %v5401_v4 }
0x1643   :  { %4247 = vmatmul.mubr.msk.f32.vlgmr.msra.gmra.mrb[28].mxu0 %vm77_vm1, %v1970_v28 }
0x1644   :  { %2233 = vmatprep.mubr.f32.mxu0 %v5401_v4  ;;  %5020 = vmatpush3.bf16.msra.mxu0 %v5886_v56 }
0x1645   :  { %5021 = vmatprep.subr.bf16.mxu0 %v5400_v3 }
0x1647   :  { %4248 = vmatmul.mubr.msk.f32.gmra.mrb[30].mxu0 %vm77_vm1, %v1971_v61 }
0x1648   :  { %2239 = vmatprep.mubr.f32.mxu0 %v5401_v4  ;;  %5023 = vmatpush3.bf16.msra.mxu0 %v5896_v58 }
0x1649   :  { %5030 = vmatprep.subr.bf16.mxu0 %v5400_v3 }
0x164b   :  { %4249 = vmatmul.mubr.msk.f32.gmra.mrb[32].mxu0 %vm77_vm1, %v1972_v29 }
0x164c   :  { %2245 = vmatprep.mubr.f32.mxu0 %v5401_v4 }
0x164f   :  { %4250 = vmatmul.mubr.msk.f32.gmra.mrb[34].mxu0 %vm77_vm1, %v1973_v30 }
0x1650   :  { %2251 = vmatprep.mubr.f32.mxu0 %v5401_v4 }
0x1653   :  { %4251 = vmatmul.mubr.msk.f32.gmra.mrb[36].mxu0 %vm77_vm1, %v1974_v31 }
0x1654   :  { %2257 = vmatprep.mubr.f32.mxu0 %v5401_v4 }
0x1657   :  { %4252 = vmatmul.mubr.msk.f32.gmra.mrb[38].mxu0 %vm77_vm1, %v1975_v32 }
0x1658   :  { %2263 = vmatprep.mubr.f32.mxu0 %v5401_v4 }
0x165b   :  { %4253 = vmatmul.mubr.msk.f32.gmra.mrb[40].mxu0 %vm77_vm1, %v1976_v33 }
0x165c   :  { %2269 = vmatprep.mubr.f32.mxu0 %v5401_v4 }
0x165f   :  { %4254 = vmatmul.mubr.msk.f32.gmra.mrb[42].mxu0 %vm77_vm1, %v1977_v34 }
0x1660   :  { %4735 = vmatprep.mubr.msk.f32.mxu0 %vm5402_vm0, %v5401_v4 }
0x1716   :  { %v2229_v41 = vpop.f32.mrb[28].mxu0 }
0x1717   :  { %v2288_v42 = vadd.f32 %v2281_v51, %v2229_v41  ;;  %v2231_v43 = vpop.f32.mrb[29].mxu0 }
0x1718   :  { %v5993_v44 = vadd.f32 %v2285_v59, %v2231_v43 }
0x1719   :  { %v2395_v2 = vadd.f32 %v2391_v11, %v2288_v42 }
0x171a   :  { %v2235_v10 = vpop.f32.mrb[30].mxu0 }
0x171b   :  { %5272 = vtanh.f32 %v2395_v2  ;;  %v5995_v19 = vadd.f32 %v2281_v51, %v2235_v10  ;;  %v2237_v45 = vpop.f32.mrb[31].mxu0  ;;  %v4255_v0 = vmul.f32 -1.442695, %v2395_v2 }
0x171c   :  { %v5997_v47 = vadd.f32 %v2285_v59, %v2237_v45 }
0x171e   :  { %v2241_v48 = vpop.f32.mrb[32].mxu0 }
0x171f   :  { %v5999_v23 = vadd.f32 %v2281_v51, %v2241_v48  ;;  %v2243_v50 = vpop.f32.mrb[33].mxu0 }
0x1720   :  { %v6001_v52 = vadd.f32 %v2285_v59, %v2243_v50 }
0x1722   :  { %v2247_v53 = vpop.f32.mrb[34].mxu0 }
0x1723   :  { %v6003_v27 = vadd.f32 %v2281_v51, %v2247_v53  ;;  %v2249_v55 = vpop.f32.mrb[35].mxu0 }
0x1724   :  { %v6005_v6 = vadd.f32 %v2285_v59, %v2249_v55 }
0x1725   :  { %v5273_v54 = vpop.eup %5272 }
0x1726   :  { %2405 = vrot.lane.b32.xlu0 %v5273_v54, %s5403_s0  ;;  %v2253_v60 = vpop.f32.mrb[36].mxu0 }
0x1727   :  { %v6008_v62 = vadd.f32 %v2281_v51, %v2253_v60  ;;  %v2255_v63 = vpop.f32.mrb[37].mxu0 }
0x1728   :  { %v6010_v8 = vadd.f32 %v2285_v59, %v2255_v63 }
0x172a   :  { %v2259_v5 = vpop.f32.mrb[38].mxu0 }
0x172b   :  { %v6012_v7 = vadd.f32 %v2281_v51, %v2259_v5  ;;  %v2261_v9 = vpop.f32.mrb[39].mxu0 }
0x172c   :  { %v6014_v12 = vadd.f32 %v2285_v59, %v2261_v9 }
0x172e   :  { %v2265_v14 = vpop.f32.mrb[40].mxu0 }
0x172f   :  { %v6016_v49 = vadd.f32 %v2281_v51, %v2265_v14  ;;  %v2267_v16 = vpop.f32.mrb[41].mxu0 }
0x1730   :  { %v6018_v17 = vadd.f32 %v2285_v59, %v2267_v16 }
0x1732   :  { %v2271_v18 = vpop.f32.mrb[42].mxu0 }
0x1733   :  { %v6020_v20 = vadd.f32 %v2281_v51, %v2271_v18  ;;  %v2273_v13 = vpop.f32.mrb[43].mxu0 }
0x1734   :  { %v2303_v21 = vadd.f32 %v2285_v59, %v2273_v13 }
0x1736   :  { %v2495_v22 = vadd.f32 %v2491_v37, %v2303_v21 }
0x1738   :  { %5274 = vtanh.f32 %v2495_v22  ;;  %v4256_v26 = vmul.f32 -1.442695, %v2495_v22 }
0x1739   :  { %5276 = vpow2.f32 %v4255_v0 }
0x1742   :  { %v5275_v15 = vpop.eup %5274 }
0x1743   :  { %2505 = vrot.lane.b32.xlu1 %v5275_v15, %s5403_s0  ;;  %v5277_v24 = vpop.eup %5276 }
0x1744   :  { %v2399_v25 = vadd.f32 1.0, %v5277_v24 }
0x1746   :  { %5278 = vrcp.f32 %v2399_v25 }
0x1747   :  { %5280 = vpow2.f32 %v4256_v26 }
0x1750   :  { %v5279_v46 = vpop.eup %5278 }
0x1751   :  { %v5281_v29 = vpop.eup %5280  ;;  %v2403_v34 = vmul.f32 0.0, %v5279_v46 }
0x1752   :  { %v2499_v30 = vadd.f32 1.0, %v5281_v29 }
0x1754   :  { %5282 = vrcp.f32 %v2499_v30 }
0x175e   :  { %v5283_v31 = vpop.eup %5282 }
0x175f   :  { %v2503_v39 = vmul.f32 0.0, %v5283_v31 }
0x1798   :  { %v2406_v28 = vpop.permute.xlu0 %2405 }
0x1799   :  { %v2408_v61 = vmul.f32 %v5279_v46, %v2406_v28 }
0x179b   :  { %2410 = vrot.lane.b32.xlu0 %v2408_v61, %s5404_s4 }
0x17b5   :  { %v2506_v32 = vpop.permute.xlu1 %2505 }
0x17b6   :  { %v2508_v33 = vmul.f32 %v5283_v31, %v2506_v32 }
0x17b8   :  { %2510 = vrot.lane.b32.xlu1 %v2508_v33, %s5404_s4 }
0x180d   :  { %v2411_v11 = vpop.permute.xlu0 %2410 }
0x180e   :  { %v2413_v35 = vadd.f32 %v2411_v11, %v2403_v34 }
0x1810   :  { %5284 = vtanh.f32 %v2413_v35 }
0x181a   :  { %v5285_v37 = vpop.eup %5284 }
0x181b   :  { %2416 = vrot.lane.b32.xlu0 %v5285_v37, %s5403_s0 }
0x182a   :  { %v2511_v40 = vpop.permute.xlu1 %2510 }
0x182b   :  { %v2513_v51 = vadd.f32 %v2511_v40, %v2503_v39 }
0x182d   :  { %5286 = vtanh.f32 %v2513_v51 }
0x1837   :  { %v5287_v59 = vpop.eup %5286 }
0x1838   :  { %2516 = vrot.lane.b32.xlu1 %v5287_v59, %s5403_s0 }
0x188d   :  { %v2417_v41 = vpop.permute.xlu0 %2416 }
0x188e   :  { %v6027_v42 = vmul.f32 %v5279_v46, %v2417_v41 }
0x1890   :  { %2524 = vrot.lane.b32.xlu0 %v6027_v42, %s5404_s4 }
0x18aa   :  { %v2517_v43 = vpop.permute.xlu1 %2516 }
0x18ab   :  { %v6031_v2 = vmul.f32 %v5283_v31, %v2517_v43 }
0x18ad   :  { %2625 = vrot.lane.b32.xlu1 %v6031_v2, %s5404_s4 }
0x1902   :  { %v2525_v10 = vpop.permute.xlu0 %2524 }
0x1903   :  { %4670 = vmatmul.mubr.msk.f32.vlgmr.msra.gmra.mrb[24].mxu1 %vm77_vm1, %v2525_v10 }
0x1904   :  { %4990 = vmatpush3.bf16.msra.mxu1 %v5909_v57  ;;  %4680 = vmatprep.mubr.msk.f32.mxu1 %vm5402_vm0, %v5401_v4 }
0x1905   :  { %4991 = vmatprep.subr.bf16.mxu1 %v5400_v3 }
0x1908   :  { %4993 = vmatpush3.bf16.msra.mxu1 %v5919_v1 }
0x1909   :  { %4994 = vmatprep.subr.bf16.mxu1 %v5400_v3 }
0x191f   :  { %v2626_v45 = vpop.permute.xlu1 %2625 }
0x1920   :  { %4681 = vmatmul.mubr.msk.f32.vlgmr.msra.gmra.mrb[26].mxu1 %vm77_vm1, %v2626_v45 }
0x1921   :  { %4996 = vmatpush3.bf16.msra.mxu1 %v5886_v56  ;;  %4691 = vmatprep.mubr.msk.f32.mxu1 %vm5402_vm0, %v5401_v4 }
0x1922   :  { %4997 = vmatprep.subr.bf16.mxu1 %v5400_v3 }
0x1925   :  { %4999 = vmatpush3.bf16.msra.mxu1 %v5896_v58 }
0x1926   :  { %5000 = vmatprep.subr.bf16.mxu1 %v5400_v3 }
0x19d6   :  { %v2594_v48 = vpop.f32.mrb[24].mxu1 }
0x19d7   :  { %v2598_v50 = vadd.f32 %v2594_v48, %v5995_v19  ;;  %v4671_v53 = vpop.f32.mrb[25].mxu1 }
0x19d9   :  { %5288 = vtanh.f32 %v2598_v50  ;;  %v4258_v9 = vmul.f32 -1.442695, %v2598_v50 }
0x19e3   :  { %v5289_v55 = vpop.eup %5288 }
0x19e4   :  { %2608 = vrot.lane.b32.xlu0 %v5289_v55, %s5403_s0 }
0x19f3   :  { %v2695_v54 = vpop.f32.mrb[26].mxu1 }
0x19f4   :  { %v2699_v60 = vadd.f32 %v2695_v54, %v6018_v17  ;;  %v4682_v63 = vpop.f32.mrb[27].mxu1 }
0x19f6   :  { %5290 = vtanh.f32 %v2699_v60  ;;  %v4260_v18 = vmul.f32 -1.442695, %v2699_v60 }
0x19f7   :  { %5292 = vpow2.f32 %v4258_v9 }
0x1a00   :  { %v5291_v5 = vpop.eup %5290 }
0x1a01   :  { %2709 = vrot.lane.b32.xlu1 %v5291_v5, %s5403_s0  ;;  %v5293_v14 = vpop.eup %5292 }
0x1a02   :  { %v2602_v16 = vadd.f32 1.0, %v5293_v14 }
0x1a04   :  { %5294 = vrcp.f32 %v2602_v16 }
0x1a05   :  { %5296 = vpow2.f32 %v4260_v18 }
0x1a0e   :  { %v5295_v19 = vpop.eup %5294 }
0x1a0f   :  { %v5297_v22 = vpop.eup %5296  ;;  %v2606_v25 = vmul.f32 %v5295_v19, %v2413_v35 }
0x1a10   :  { %v2703_v15 = vadd.f32 1.0, %v5297_v22 }
0x1a12   :  { %5298 = vrcp.f32 %v2703_v15 }
0x1a1c   :  { %v5299_v17 = vpop.eup %5298 }
0x1a1d   :  { %v2707_v61 = vmul.f32 %v5299_v17, %v2513_v51 }
0x1a56   :  { %v2609_v13 = vpop.permute.xlu0 %2608 }
0x1a57   :  { %v2611_v21 = vmul.f32 %v5295_v19, %v2609_v13 }
0x1a59   :  { %2613 = vrot.lane.b32.xlu0 %v2611_v21, %s5404_s4 }
0x1a73   :  { %v2710_v0 = vpop.permute.xlu1 %2709 }
0x1a74   :  { %v2712_v24 = vmul.f32 %v5299_v17, %v2710_v0 }
0x1a76   :  { %2714 = vrot.lane.b32.xlu1 %v2712_v24, %s5404_s4 }
0x1acb   :  { %v2614_v26 = vpop.permute.xlu0 %2613 }
0x1acc   :  { %v2616_v46 = vadd.f32 %v2614_v26, %v2606_v25 }
0x1ace   :  { %5300 = vtanh.f32 %v2616_v46 }
0x1ad8   :  { %v5301_v28 = vpop.eup %5300 }
0x1ad9   :  { %2619 = vrot.lane.b32.xlu0 %v5301_v28, %s5403_s0 }
0x1ae8   :  { %v2715_v29 = vpop.permute.xlu1 %2714 }
0x1ae9   :  { %v2717_v30 = vadd.f32 %v2715_v29, %v2707_v61 }
0x1aeb   :  { %5302 = vtanh.f32 %v2717_v30 }
0x1af5   :  { %v5303_v31 = vpop.eup %5302 }
0x1af6   :  { %2720 = vrot.lane.b32.xlu1 %v5303_v31, %s5403_s0 }
0x1b4b   :  { %v2620_v32 = vpop.permute.xlu0 %2619 }
0x1b4c   :  { %v6057_v33 = vmul.f32 %v5295_v19, %v2620_v32 }
0x1b4e   :  { %2730 = vrot.lane.b32.xlu0 %v6057_v33, %s5404_s4  ;;  %v2724_v24 = vadd.f32 %v6057_v33, %v6027_v42  ;;  %v2726_v25 = vmax.f32 %v6027_v42, %v6057_v33 }
0x1b68   :  { %v2721_v34 = vpop.permute.xlu1 %2720 }
0x1b69   :  { %v6061_v11 = vmul.f32 %v5299_v17, %v2721_v34 }
0x1b6b   :  { %2831 = vrot.lane.b32.xlu1 %v6061_v11, %s5404_s4  ;;  %v2725_v29 = vadd.f32 %v6061_v11, %v6031_v2 }
0x1bc0   :  { %v2731_v35 = vpop.permute.xlu0 %2730 }
0x1bc1   :  { %4692 = vmatmul.mubr.msk.f32.vlgmr.msra.gmra.mrb[28].mxu1 %vm77_vm1, %v2731_v35 }
0x1bc2   :  { %5002 = vmatpush3.bf16.msra.mxu1 %v5909_v57  ;;  %4702 = vmatprep.mubr.msk.f32.mxu1 %vm5402_vm0, %v5401_v4 }
0x1bc3   :  { %5003 = vmatprep.subr.bf16.mxu1 %v5400_v3 }
0x1bc6   :  { %5005 = vmatpush3.bf16.msra.mxu1 %v5919_v1 }
0x1bc7   :  { %5006 = vmatprep.subr.bf16.mxu1 %v5400_v3 }
0x1bdd   :  { %v2832_v37 = vpop.permute.xlu1 %2831 }
0x1bde   :  { %4703 = vmatmul.mubr.msk.f32.vlgmr.msra.gmra.mrb[30].mxu1 %vm77_vm1, %v2832_v37 }
0x1bdf   :  { %5008 = vmatpush3.bf16.msra.mxu1 %v5886_v56  ;;  %4713 = vmatprep.mubr.msk.f32.mxu1 %vm5402_vm0, %v5401_v4 }
0x1be0   :  { %5009 = vmatprep.subr.bf16.mxu1 %v5400_v3 }
0x1be3   :  { %5011 = vmatpush3.bf16.msra.mxu1 %v5896_v58 }
0x1be4   :  { %5012 = vmatprep.subr.bf16.mxu1 %v5400_v3 }
0x1c94   :  { %v2800_v39 = vpop.f32.mrb[28].mxu1 }
0x1c95   :  { %v2804_v40 = vadd.f32 %v2800_v39, %v5999_v23  ;;  %v4693_v51 = vpop.f32.mrb[29].mxu1 }
0x1c97   :  { %5304 = vtanh.f32 %v2804_v40  ;;  %v4262_v48 = vmul.f32 -1.442695, %v2804_v40 }
0x1ca1   :  { %v5305_v59 = vpop.eup %5304 }
0x1ca2   :  { %2814 = vrot.lane.b32.xlu0 %v5305_v59, %s5403_s0 }
0x1cb1   :  { %v2901_v41 = vpop.f32.mrb[30].mxu1 }
0x1cb2   :  { %v2905_v43 = vadd.f32 %v2901_v41, %v6014_v12  ;;  %v4704_v10 = vpop.f32.mrb[31].mxu1 }
0x1cb4   :  { %5306 = vtanh.f32 %v2905_v43  ;;  %v4264_v55 = vmul.f32 -1.442695, %v2905_v43 }
0x1cb5   :  { %5308 = vpow2.f32 %v4262_v48 }
0x1cbe   :  { %v5307_v45 = vpop.eup %5306 }
0x1cbf   :  { %2915 = vrot.lane.b32.xlu1 %v5307_v45, %s5403_s0  ;;  %v5309_v50 = vpop.eup %5308 }
0x1cc0   :  { %v2808_v53 = vadd.f32 1.0, %v5309_v50 }
0x1cc2   :  { %5310 = vrcp.f32 %v2808_v53 }
0x1cc3   :  { %5312 = vpow2.f32 %v4264_v55 }
0x1ccc   :  { %v5311_v23 = vpop.eup %5310 }
0x1ccd   :  { %v5313_v63 = vpop.eup %5312  ;;  %v2812_v16 = vmul.f32 %v5311_v23, %v2616_v46 }
0x1cce   :  { %v2909_v5 = vadd.f32 1.0, %v5313_v63 }
0x1cd0   :  { %5314 = vrcp.f32 %v2909_v5 }
0x1cda   :  { %v5315_v12 = vpop.eup %5314 }
0x1cdb   :  { %v2913_v21 = vmul.f32 %v5315_v12, %v2717_v30  ;;  %v2727_v30 = vmax.f32 %v6031_v2, %v6061_v11 }
0x1d14   :  { %v2815_v54 = vpop.permute.xlu0 %2814 }
0x1d15   :  { %v2817_v60 = vmul.f32 %v5311_v23, %v2815_v54 }
0x1d17   :  { %2819 = vrot.lane.b32.xlu0 %v2817_v60, %s5404_s4 }
0x1d31   :  { %v2916_v9 = vpop.permute.xlu1 %2915 }
0x1d32   :  { %v2918_v14 = vmul.f32 %v5315_v12, %v2916_v9 }
0x1d34   :  { %2920 = vrot.lane.b32.xlu1 %v2918_v14, %s5404_s4 }
0x1d89   :  { %v2820_v18 = vpop.permute.xlu0 %2819 }
0x1d8a   :  { %v6085_v19 = vadd.f32 %v2820_v18, %v2812_v16 }
0x1d8c   :  { %5316 = vtanh.f32 %v6085_v19 }
0x1d96   :  { %v5317_v13 = vpop.eup %5316 }
0x1d97   :  { %2825 = vrot.lane.b32.xlu0 %v5317_v13, %s5403_s0 }
0x1da6   :  { %v2921_v22 = vpop.permute.xlu1 %2920 }
0x1da7   :  { %v6089_v15 = vadd.f32 %v2921_v22, %v2913_v21 }
0x1da9   :  { %5318 = vtanh.f32 %v6089_v15 }
0x1db3   :  { %v5319_v17 = vpop.eup %5318 }
0x1db4   :  { %2926 = vrot.lane.b32.xlu1 %v5319_v17, %s5403_s0 }
0x1e09   :  { %v2826_v0 = vpop.permute.xlu0 %2825 }
0x1e0a   :  { %v2828_v26 = vmul.f32 %v5311_v23, %v2826_v0 }
0x1e0c   :  { %v6097_v46 = vadd.f32 %v2828_v26, %v2724_v24  ;;  %v6099_v28 = vmax.f32 %v2726_v25, %v2828_v26  ;;  %2936 = vrot.lane.b32.xlu0 %v2828_v26, %s5404_s4 }
0x1e26   :  { %v2927_v61 = vpop.permute.xlu1 %2926 }
0x1e27   :  { %v2929_v31 = vmul.f32 %v5315_v12, %v2927_v61 }
0x1e29   :  { %v6106_v32 = vadd.f32 %v2929_v31, %v2725_v29  ;;  %v6108_v34 = vmax.f32 %v2727_v30, %v2929_v31  ;;  %3037 = vrot.lane.b32.xlu1 %v2929_v31, %s5404_s4 }
0x1e7e   :  { %v2937_v42 = vpop.permute.xlu0 %2936 }
0x1e7f   :  { %4714 = vmatmul.mubr.msk.f32.vlgmr.msra.gmra.mrb[32].mxu1 %vm77_vm1, %v2937_v42 }
0x1e80   :  { %5014 = vmatpush3.bf16.msra.mxu1 %v5909_v57  ;;  %4724 = vmatprep.mubr.msk.f32.mxu1 %vm5402_vm0, %v5401_v4 }
0x1e81   :  { %5015 = vmatprep.subr.bf16.mxu1 %v5400_v3 }
0x1e84   :  { %5017 = vmatpush3.bf16.msra.mxu1 %v5919_v1 }
0x1e85   :  { %5024 = vmatprep.subr.bf16.mxu1 %v5400_v3 }
0x1e9b   :  { %v3038_v2 = vpop.permute.xlu1 %3037 }
0x1e9c   :  { %4725 = vmatmul.mubr.msk.f32.vlgmr.msra.gmra.mrb[34].mxu1 %vm77_vm1, %v3038_v2 }
0x1e9d   :  { %5026 = vmatpush3.bf16.msra.mxu1 %v5909_v57  ;;  %4746 = vmatprep.mubr.msk.f32.mxu1 %vm5402_vm0, %v5401_v4 }
0x1e9e   :  { %5027 = vmatprep.subr.bf16.mxu1 %v5400_v3 }
0x1ea1   :  { %5029 = vmatpush3.bf16.msra.mxu1 %v5919_v1 }
0x1ea2   :  { %5036 = vmatprep.subr.bf16.mxu1 %v5400_v3 }
0x1f52   :  { %v3006_v33 = vpop.f32.mrb[32].mxu1 }
0x1f53   :  { %v3010_v11 = vadd.f32 %v3006_v33, %v6003_v27  ;;  %v4715_v35 = vpop.f32.mrb[33].mxu1 }
0x1f55   :  { %5320 = vtanh.f32 %v3010_v11  ;;  %v4266_v41 = vmul.f32 -1.442695, %v3010_v11 }
0x1f5f   :  { %v5321_v37 = vpop.eup %5320 }
0x1f60   :  { %3020 = vrot.lane.b32.xlu0 %v5321_v37, %s5403_s0 }
0x1f6f   :  { %v3107_v39 = vpop.f32.mrb[34].mxu1 }
0x1f70   :  { %v3111_v40 = vadd.f32 %v3107_v39, %v6010_v8  ;;  %v4726_v51 = vpop.f32.mrb[35].mxu1 }
0x1f72   :  { %5322 = vtanh.f32 %v3111_v40  ;;  %v4268_v45 = vmul.f32 -1.442695, %v3111_v40 }
0x1f73   :  { %5324 = vpow2.f32 %v4266_v41 }
0x1f7c   :  { %v5323_v59 = vpop.eup %5322 }
0x1f7d   :  { %3121 = vrot.lane.b32.xlu1 %v5323_v59, %s5403_s0  ;;  %v5325_v43 = vpop.eup %5324 }
0x1f7e   :  { %v3014_v10 = vadd.f32 1.0, %v5325_v43 }
0x1f80   :  { %5326 = vrcp.f32 %v3014_v10 }
0x1f81   :  { %5328 = vpow2.f32 %v4268_v45 }
0x1f8a   :  { %v5327_v27 = vpop.eup %5326 }
0x1f8b   :  { %v5329_v53 = vpop.eup %5328  ;;  %v3018_v60 = vmul.f32 %v5327_v27, %v6085_v19 }
0x1f8c   :  { %v3115_v55 = vadd.f32 1.0, %v5329_v53 }
0x1f8e   :  { %5330 = vrcp.f32 %v3115_v55 }
0x1f98   :  { %v5331_v8 = vpop.eup %5330 }
0x1f99   :  { %v3119_v9 = vmul.f32 %v5331_v8, %v6089_v15 }
0x1fd2   :  { %v3021_v48 = vpop.permute.xlu0 %3020 }
0x1fd3   :  { %v3023_v50 = vmul.f32 %v5327_v27, %v3021_v48 }
0x1fd5   :  { %3025 = vrot.lane.b32.xlu0 %v3023_v50, %s5404_s4 }
0x1fef   :  { %v3122_v23 = vpop.permute.xlu1 %3121 }
0x1ff0   :  { %v3124_v54 = vmul.f32 %v5331_v8, %v3122_v23 }
0x1ff2   :  { %3126 = vrot.lane.b32.xlu1 %v3124_v54, %s5404_s4 }
0x2047   :  { %v3026_v63 = vpop.permute.xlu0 %3025 }
0x2048   :  { %v6132_v5 = vadd.f32 %v3026_v63, %v3018_v60 }
0x204a   :  { %5332 = vtanh.f32 %v6132_v5 }
0x2054   :  { %v5333_v12 = vpop.eup %5332 }
0x2055   :  { %3031 = vrot.lane.b32.xlu0 %v5333_v12, %s5403_s0 }
0x2064   :  { %v3127_v14 = vpop.permute.xlu1 %3126 }
0x2065   :  { %v6137_v16 = vadd.f32 %v3127_v14, %v3119_v9 }
0x2067   :  { %5334 = vtanh.f32 %v6137_v16 }
0x2071   :  { %v5335_v18 = vpop.eup %5334 }
0x2072   :  { %3132 = vrot.lane.b32.xlu1 %v5335_v18, %s5403_s0 }
0x20c7   :  { %v3032_v13 = vpop.permute.xlu0 %3031 }
0x20c8   :  { %v6141_v19 = vmul.f32 %v5327_v27, %v3032_v13 }
0x20ca   :  { %v6145_v21 = vadd.f32 %v6141_v19, %v6097_v46  ;;  %v3138_v22 = vmax.f32 %v6099_v28, %v6141_v19  ;;  %3142 = vrot.lane.b32.xlu0 %v6141_v19, %s5404_s4 }
0x20e4   :  { %v3133_v15 = vpop.permute.xlu1 %3132 }
0x20e5   :  { %v6151_v17 = vmul.f32 %v5331_v8, %v3133_v15 }
0x20e7   :  { %v6155_v0 = vadd.f32 %v6151_v17, %v6106_v32  ;;  %v3139_v24 = vmax.f32 %v6108_v34, %v6151_v17  ;;  %3243 = vrot.lane.b32.xlu1 %v6151_v17, %s5404_s4 }
0x213c   :  { %v3143_v25 = vpop.permute.xlu0 %3142 }
0x213d   :  { %4736 = vmatmul.mubr.msk.f32.vlgmr.msra.gmra.mrb[44].mxu0 %vm77_vm1, %v3143_v25 }
0x213e   :  { %5032 = vmatpush3.bf16.msra.mxu0 %v5886_v56  ;;  %4757 = vmatprep.mubr.msk.f32.mxu0 %vm5402_vm0, %v5401_v4 }
0x213f   :  { %5033 = vmatprep.subr.bf16.mxu0 %v5400_v3 }
0x2142   :  { %5035 = vmatpush3.bf16.msra.mxu0 %v5896_v58 }
0x2143   :  { %5042 = vmatprep.subr.bf16.mxu0 %v5400_v3 }
0x2159   :  { %v3244_v26 = vpop.permute.xlu1 %3243 }
0x215a   :  { %4747 = vmatmul.mubr.msk.f32.vlgmr.msra.gmra.mrb[36].mxu1 %vm77_vm1, %v3244_v26 }
0x215b   :  { %5038 = vmatpush3.bf16.msra.mxu1 %v5909_v57  ;;  %4768 = vmatprep.mubr.msk.f32.mxu1 %vm5402_vm0, %v5401_v4 }
0x215c   :  { %5039 = vmatprep.subr.bf16.mxu1 %v5400_v3 }
0x215f   :  { %5041 = vmatpush3.bf16.msra.mxu1 %v5919_v1 }
0x2160   :  { %5048 = vmatprep.subr.bf16.mxu1 %v5400_v3 }
0x2210   :  { %v3212_v46 = vpop.f32.mrb[44].mxu0 }
0x2211   :  { %v3216_v61 = vadd.f32 %v3212_v46, %v6008_v62  ;;  %v4737_v29 = vpop.f32.mrb[45].mxu0 }
0x2213   :  { %5336 = vtanh.f32 %v3216_v61  ;;  %v4270_v33 = vmul.f32 -1.442695, %v3216_v61 }
0x221d   :  { %v5337_v30 = vpop.eup %5336 }
0x221e   :  { %3226 = vrot.lane.b32.xlu0 %v5337_v30, %s5403_s0 }
0x222d   :  { %v3313_v31 = vpop.f32.mrb[36].mxu1 }
0x222e   :  { %v3317_v32 = vadd.f32 %v3313_v31, %v6005_v6  ;;  %v4748_v42 = vpop.f32.mrb[37].mxu1 }
0x2230   :  { %5338 = vtanh.f32 %v3317_v32  ;;  %v4272_v37 = vmul.f32 -1.442695, %v3317_v32 }
0x2231   :  { %5340 = vpow2.f32 %v4270_v33 }
0x223a   :  { %v5339_v2 = vpop.eup %5338 }
0x223b   :  { %3327 = vrot.lane.b32.xlu1 %v5339_v2, %s5403_s0  ;;  %v5341_v11 = vpop.eup %5340 }
0x223c   :  { %v3220_v35 = vadd.f32 1.0, %v5341_v11 }
0x223e   :  { %5342 = vrcp.f32 %v3220_v35 }
0x223f   :  { %5344 = vpow2.f32 %v4272_v37 }
0x2248   :  { %v5343_v62 = vpop.eup %5342 }
0x2249   :  { %v5345_v51 = vpop.eup %5344  ;;  %v3224_v10 = vmul.f32 %v5343_v62, %v6132_v5 }
0x224a   :  { %v3321_v59 = vadd.f32 1.0, %v5345_v51 }
0x224c   :  { %5346 = vrcp.f32 %v3321_v59 }
0x2256   :  { %v5347_v6 = vpop.eup %5346 }
0x2257   :  { %v3325_v50 = vmul.f32 %v5347_v6, %v6137_v16 }
0x2290   :  { %v3227_v39 = vpop.permute.xlu0 %3226 }
0x2291   :  { %v3229_v40 = vmul.f32 %v5343_v62, %v3227_v39 }
0x2293   :  { %3231 = vrot.lane.b32.xlu0 %v3229_v40, %s5404_s4 }
0x22ad   :  { %v3328_v41 = vpop.permute.xlu1 %3327 }
0x22ae   :  { %v3330_v43 = vmul.f32 %v5347_v6, %v3328_v41 }
0x22b0   :  { %3332 = vrot.lane.b32.xlu1 %v3330_v43, %s5404_s4 }
0x2305   :  { %v3232_v45 = vpop.permute.xlu0 %3231 }
0x2306   :  { %v6182_v27 = vadd.f32 %v3232_v45, %v3224_v10 }
0x2308   :  { %5348 = vtanh.f32 %v6182_v27 }
0x2312   :  { %v5349_v48 = vpop.eup %5348 }
0x2313   :  { %3237 = vrot.lane.b32.xlu0 %v5349_v48, %s5403_s0 }
0x2322   :  { %v3333_v53 = vpop.permute.xlu1 %3332 }
0x2323   :  { %v6187_v55 = vadd.f32 %v3333_v53, %v3325_v50 }
0x2325   :  { %5350 = vtanh.f32 %v6187_v55 }
0x232f   :  { %v5351_v8 = vpop.eup %5350 }
0x2330   :  { %3338 = vrot.lane.b32.xlu1 %v5351_v8, %s5403_s0 }
0x2385   :  { %v3238_v23 = vpop.permute.xlu0 %3237 }
0x2386   :  { %v3240_v54 = vmul.f32 %v5343_v62, %v3238_v23 }
0x2388   :  { %v6192_v60 = vadd.f32 %v3240_v54, %v6145_v21  ;;  %v6197_v63 = vmax.f32 %v3138_v22, %v3240_v54  ;;  %3348 = vrot.lane.b32.xlu0 %v3240_v54, %s5404_s4 }
0x23a2   :  { %v3339_v5 = vpop.permute.xlu1 %3338 }
0x23a3   :  { %v3341_v12 = vmul.f32 %v5347_v6, %v3339_v5 }
0x23a5   :  { %v6201_v9 = vadd.f32 %v3341_v12, %v6155_v0  ;;  %v6206_v14 = vmax.f32 %v3139_v24, %v3341_v12  ;;  %3449 = vrot.lane.b32.xlu1 %v3341_v12, %s5404_s4 }
0x23fa   :  { %v3349_v16 = vpop.permute.xlu0 %3348 }
0x23fb   :  { %4758 = vmatmul.mubr.msk.f32.vlgmr.msra.gmra.mrb[46].mxu0 %vm77_vm1, %v3349_v16 }
0x23fc   :  { %5044 = vmatpush3.bf16.msra.mxu0 %v5886_v56  ;;  %4779 = vmatprep.mubr.msk.f32.mxu0 %vm5402_vm0, %v5401_v4 }
0x23fd   :  { %5045 = vmatprep.subr.bf16.mxu0 %v5400_v3 }
0x2400   :  { %5047 = vmatpush3.bf16.msra.mxu0 %v5896_v58 }
0x2401   :  { %5054 = vmatprep.subr.bf16.mxu0 %v5400_v3 }
0x2417   :  { %v3450_v28 = vpop.permute.xlu1 %3449 }
0x2418   :  { %4769 = vmatmul.mubr.msk.f32.vlgmr.msra.gmra.mrb[38].mxu1 %vm77_vm1, %v3450_v28 }
0x2419   :  { %5050 = vmatpush3.bf16.msra.mxu1 %v5909_v57  ;;  %4790 = vmatprep.mubr.msk.f32.mxu1 %vm5402_vm0, %v5401_v4 }
0x241a   :  { %5051 = vmatprep.subr.bf16.mxu1 %v5400_v3 }
0x241d   :  { %5053 = vmatpush3.bf16.msra.mxu1 %v5919_v1 }
0x241e   :  { %5060 = vmatprep.subr.bf16.mxu1 %v5400_v3 }
0x24ce   :  { %v3418_v34 = vpop.f32.mrb[46].mxu0 }
0x24cf   :  { %v3422_v18 = vadd.f32 %v3418_v34, %v6012_v7  ;;  %v4759_v13 = vpop.f32.mrb[47].mxu0 }
0x24d1   :  { %5352 = vtanh.f32 %v3422_v18  ;;  %v4274_v0 = vmul.f32 -1.442695, %v3422_v18 }
0x24db   :  { %v5353_v19 = vpop.eup %5352 }
0x24dc   :  { %3432 = vrot.lane.b32.xlu0 %v5353_v19, %s5403_s0 }
0x24eb   :  { %v3519_v21 = vpop.f32.mrb[38].mxu1 }
0x24ec   :  { %v3523_v22 = vadd.f32 %v3519_v21, %v6001_v52  ;;  %v4770_v15 = vpop.f32.mrb[39].mxu1 }
0x24ee   :  { %5354 = vtanh.f32 %v3523_v22  ;;  %v4276_v26 = vmul.f32 -1.442695, %v3523_v22 }
0x24ef   :  { %5356 = vpow2.f32 %v4274_v0 }
0x24f8   :  { %v5355_v17 = vpop.eup %5354 }
0x24f9   :  { %3533 = vrot.lane.b32.xlu1 %v5355_v17, %s5403_s0  ;;  %v5357_v24 = vpop.eup %5356 }
0x24fa   :  { %v3426_v25 = vadd.f32 1.0, %v5357_v24 }
0x24fc   :  { %5358 = vrcp.f32 %v3426_v25 }
0x24fd   :  { %5360 = vpow2.f32 %v4276_v26 }
0x2506   :  { %v5359_v7 = vpop.eup %5358 }
0x2507   :  { %v5361_v29 = vpop.eup %5360  ;;  %v3430_v42 = vmul.f32 %v5359_v7, %v6182_v27 }
0x2508   :  { %v3527_v30 = vadd.f32 1.0, %v5361_v29 }
0x250a   :  { %5362 = vrcp.f32 %v3527_v30 }
0x2514   :  { %v5363_v52 = vpop.eup %5362 }
0x2515   :  { %v3531_v35 = vmul.f32 %v5363_v52, %v6187_v55 }
0x254e   :  { %v3433_v46 = vpop.permute.xlu0 %3432 }
0x254f   :  { %v3435_v61 = vmul.f32 %v5359_v7, %v3433_v46 }
0x2551   :  { %3437 = vrot.lane.b32.xlu0 %v3435_v61, %s5404_s4 }
0x256b   :  { %v3534_v31 = vpop.permute.xlu1 %3533 }
0x256c   :  { %v3536_v32 = vmul.f32 %v5363_v52, %v3534_v31 }
0x256e   :  { %3538 = vrot.lane.b32.xlu1 %v3536_v32, %s5404_s4 }
0x25c3   :  { %v3438_v2 = vpop.permute.xlu0 %3437 }
0x25c4   :  { %v6230_v33 = vadd.f32 %v3438_v2, %v3430_v42 }
0x25c6   :  { %5364 = vtanh.f32 %v6230_v33 }
0x25d0   :  { %v5365_v11 = vpop.eup %5364 }
0x25d1   :  { %3443 = vrot.lane.b32.xlu0 %v5365_v11, %s5403_s0 }
0x25e0   :  { %v3539_v37 = vpop.permute.xlu1 %3538 }
0x25e1   :  { %v6235_v62 = vadd.f32 %v3539_v37, %v3531_v35 }
0x25e3   :  { %5366 = vtanh.f32 %v6235_v62 }
0x25ed   :  { %v5367_v39 = vpop.eup %5366 }
0x25ee   :  { %3544 = vrot.lane.b32.xlu1 %v5367_v39, %s5403_s0 }
0x2643   :  { %v3444_v40 = vpop.permute.xlu0 %3443 }
0x2644   :  { %v6239_v51 = vmul.f32 %v5359_v7, %v3444_v40 }
0x2646   :  { %v6243_v59 = vadd.f32 %v6239_v51, %v6192_v60  ;;  %v3550_v6 = vmax.f32 %v6197_v63, %v6239_v51  ;;  %3554 = vrot.lane.b32.xlu0 %v6239_v51, %s5404_s4 }
0x2660   :  { %v3545_v41 = vpop.permute.xlu1 %3544 }
0x2661   :  { %v6249_v43 = vmul.f32 %v5363_v52, %v3545_v41 }
0x2663   :  { %v6253_v10 = vadd.f32 %v6249_v43, %v6201_v9  ;;  %v3551_v45 = vmax.f32 %v6206_v14, %v6249_v43  ;;  %3655 = vrot.lane.b32.xlu1 %v6249_v43, %s5404_s4 }
0x26b8   :  { %v3555_v27 = vpop.permute.xlu0 %3554 }
0x26b9   :  { %4780 = vmatmul.mubr.msk.f32.vlgmr.msra.gmra.mrb[48].mxu0 %vm77_vm1, %v3555_v27 }
0x26ba   :  { %5056 = vmatpush3.bf16.msra.mxu0 %v5886_v56  ;;  %4801 = vmatprep.mubr.msk.f32.mxu0 %vm5402_vm0, %v5401_v4 }
0x26bb   :  { %5057 = vmatprep.subr.bf16.mxu0 %v5400_v3 }
0x26be   :  { %5059 = vmatpush3.bf16.msra.mxu0 %v5896_v58 }
0x26d5   :  { %v3656_v48 = vpop.permute.xlu1 %3655 }
0x26d6   :  { %4791 = vmatmul.mubr.msk.f32.vlgmr.msra.gmra.mrb[40].mxu1 %vm77_vm1, %v3656_v48 }
0x26d7   :  { %5062 = vmatpush3.bf16.msra.mxu1 %v5909_v57  ;;  %4812 = vmatprep.mubr.msk.f32.mxu1 %vm5402_vm0, %v5401_v4 }
0x26d8   :  { %5063 = vmatprep.subr.bf16.mxu1 %v5400_v3 }
0x26db   :  { %5065 = vmatpush3.bf16.msra.mxu1 %v5919_v1 }
0x26dc   :  { %5098 = vmatprep.subr.bf16.mxu1 %v5400_v3 }
0x278c   :  { %v3624_v56 = vpop.f32.mrb[48].mxu0 }
0x278d   :  { %v3628_v50 = vadd.f32 %v3624_v56, %v6016_v49  ;;  %v4781_v53 = vpop.f32.mrb[49].mxu0 }
0x278f   :  { %5368 = vtanh.f32 %v3628_v50  ;;  %v4278_v54 = vmul.f32 -1.442695, %v3628_v50 }
0x2799   :  { %v5369_v58 = vpop.eup %5368 }
0x279a   :  { %3638 = vrot.lane.b32.xlu0 %v5369_v58, %s5403_s0 }
0x27a9   :  { %v3725_v55 = vpop.f32.mrb[40].mxu1 }
0x27aa   :  { %v3729_v57 = vadd.f32 %v3725_v55, %v5997_v47  ;;  %v4792_v8 = vpop.f32.mrb[41].mxu1 }
0x27ab   :  { %v3986_v8 = vld [vmem:[%s6497_s10 + $0x18] sm:$0xff] }
0x27ac   :  { %5370 = vtanh.f32 %v3729_v57  ;;  %v4280_v5 = vmul.f32 -1.442695, %v3729_v57  ;;  %v3984_v57 = vld [vmem:[%s6497_s10 + $0x8] sm:$0xff] }
0x27ad   :  { %5372 = vpow2.f32 %v4278_v54  ;;  %v3983_v54 = vld [vmem:[%s6497_s10] sm:$0xff] }
0x27b6   :  { %v5371_v23 = vpop.eup %5370 }
0x27b7   :  { %3739 = vrot.lane.b32.xlu1 %v5371_v23, %s5403_s0  ;;  %v5373_v1 = vpop.eup %5372  ;;  %v5066_v23 = vpack.c.bf16 %v3986_v8, %v3984_v57 }
0x27b8   :  { %v3632_v60 = vadd.f32 1.0, %v5373_v1  ;;  %v3985_v1 = vld [vmem:[%s6497_s10 + $0x10] sm:$0xff] }
0x27b9   :  { %5067 = vmatprep.subr.bf16.mxu0 %v5066_v23  ;;  %v4106_v23 = vld [vmem:[%s6498_s12 + $0x20] sm:$0xff] }
0x27ba   :  { %5374 = vrcp.f32 %v3632_v60  ;;  %v5068_v60 = vpack.c.bf16 %v3985_v1, %v3983_v54  ;;  %v4107_v54 = vld [vmem:[%s6498_s12 + $0x28] sm:$0xff] }
0x27bb   :  { %5376 = vpow2.f32 %v4280_v5  ;;  %v3988_v5 = vld [vmem:[%s6497_s10 + $0x28] sm:$0xff] }
0x27c4   :  { %v5375_v49 = vpop.eup %5374 }
0x27c5   :  { %v5377_v16 = vpop.eup %5376  ;;  %v3636_v13 = vmul.f32 %v5375_v49, %v6230_v33 }
0x27c6   :  { %v3733_v28 = vadd.f32 1.0, %v5377_v16  ;;  %v3989_v16 = vld [vmem:[%s6497_s10 + $0x30] sm:$0xff] }
0x27c8   :  { %5378 = vrcp.f32 %v3733_v28 }
0x27d2   :  { %v5379_v47 = vpop.eup %5378 }
0x27d3   :  { %v3737_v15 = vmul.f32 %v5379_v47, %v6235_v62 }
0x280c   :  { %v3639_v12 = vpop.permute.xlu0 %3638 }
0x280d   :  { %v3641_v9 = vmul.f32 %v5375_v49, %v3639_v12 }
0x280f   :  { %3643 = vrot.lane.b32.xlu0 %v3641_v9, %s5404_s4  ;;  %v3987_v9 = vld [vmem:[%s6497_s10 + $0x20] sm:$0xff] }
0x2810   :  { %v5072_v28 = vpack.c.bf16 %v3989_v16, %v3987_v9  ;;  %v4109_v9 = vld [vmem:[%s6498_s12 + $0x38] sm:$0xff] }
0x2829   :  { %v3740_v34 = vpop.permute.xlu1 %3739 }
0x282a   :  { %v3742_v18 = vmul.f32 %v5379_v47, %v3740_v34  ;;  %v3994_v34 = vld [vmem:[%s6497_s10 + $0x58] sm:$0xff] }
0x282c   :  { %3744 = vrot.lane.b32.xlu1 %v3742_v18, %s5404_s4  ;;  %v3991_v18 = vld [vmem:[%s6497_s10 + $0x40] sm:$0xff] }
0x2881   :  { %v3644_v19 = vpop.permute.xlu0 %3643 }
0x2882   :  { %v3646_v21 = vadd.f32 %v3644_v19, %v3636_v13  ;;  %v3993_v19 = vld [vmem:[%s6497_s10 + $0x50] sm:$0xff] }
0x2884   :  { %5380 = vtanh.f32 %v3646_v21 }
0x288e   :  { %v5381_v22 = vpop.eup %5380 }
0x288f   :  { %3649 = vrot.lane.b32.xlu0 %v5381_v22, %s5403_s0  ;;  %v3998_v22 = vld [vmem:[%s6497_s10 + $0x78] sm:$0xff] }
0x289e   :  { %v3745_v17 = vpop.permute.xlu1 %3744 }
0x289f   :  { %v3747_v0 = vadd.f32 %v3745_v17, %v3737_v15  ;;  %v5076_v15 = vpack.c.bf16 %v3993_v19, %v3991_v18 }
0x28a1   :  { %5382 = vtanh.f32 %v3747_v0 }
0x28ab   :  { %v5383_v24 = vpop.eup %5382 }
0x28ac   :  { %3750 = vrot.lane.b32.xlu1 %v5383_v24, %s5403_s0  ;;  %v3997_v24 = vld [vmem:[%s6497_s10 + $0x70] sm:$0xff] }
0x2901   :  { %v3650_v25 = vpop.permute.xlu0 %3649 }
0x2902   :  { %v3652_v26 = vmul.f32 %v5375_v49, %v3650_v25  ;;  %v3990_v49 = vld [vmem:[%s6497_s10 + $0x38] sm:$0xff]  ;;  %v4000_v25 = vld [vmem:[%s6497_s10 + $0x88] sm:$0xff] }
0x2903   :  { %v5070_v12 = vpack.c.bf16 %v3990_v49, %v3988_v5  ;;  %v5105_v49 = vpack.c.bf16 %v4107_v54, %v4106_v23 }
0x2904   :  { %3760 = vrot.lane.b32.xlu0 %v3652_v26, %s5404_s4  ;;  %v6284_v7 = vadd.f32 %v3652_v26, %v6243_v59  ;;  %v6289_v46 = vmax.f32 %v3550_v6, %v3652_v26  ;;  %v4002_v26 = vld [vmem:[%s6497_s10 + $0x98] sm:$0xff] }
0x291e   :  { %v3751_v61 = vpop.permute.xlu1 %3750 }
0x291f   :  { %v3753_v29 = vmul.f32 %v5379_v47, %v3751_v61  ;;  %v3992_v47 = vld [vmem:[%s6497_s10 + $0x48] sm:$0xff] }
0x2920   :  { %v5074_v13 = vpack.c.bf16 %v3994_v34, %v3992_v47  ;;  %v4113_v47 = vld [vmem:[%s6498_s12 + $0x58] sm:$0xff] }
0x2921   :  { %3861 = vrot.lane.b32.xlu1 %v3753_v29, %s5404_s4  ;;  %v6293_v30 = vadd.f32 %v3753_v29, %v6253_v10  ;;  %v6298_v52 = vmax.f32 %v3551_v45, %v3753_v29 }
0x2976   :  { %v3761_v31 = vpop.permute.xlu0 %3760 }
0x2977   :  { %4802 = vmatmul.mubr.msk.f32.vlgmr.msra.gmra.mrb[50].mxu0 %vm77_vm1, %v3761_v31 }
0x2978   :  { %4091 = vmatprep.mubr.f32.mxu0 %v5401_v4  ;;  %5069 = vmatpush1.bf16.msra.mxu0 %v5068_v60 }
0x2979   :  { %5071 = vmatprep.subr.bf16.mxu0 %v5070_v12  ;;  %v4108_v12 = vld [vmem:[%s6498_s12 + $0x30] sm:$0xff] }
0x297c   :  { %5073 = vmatpush1.bf16.msra.mxu0 %v5072_v28  ;;  %v4112_v28 = vld [vmem:[%s6498_s12 + $0x50] sm:$0xff] }
0x297d   :  { %5075 = vmatprep.subr.bf16.mxu0 %v5074_v13  ;;  %v5114_v34 = vpack.c.bf16 %v4113_v47, %v4112_v28 }
0x2980   :  { %5077 = vmatpush1.bf16.msra.mxu0 %v5076_v15 }
0x2993   :  { %v3862_v63 = vpop.permute.xlu1 %3861 }
0x2994   :  { %4813 = vmatmul.mubr.msk.f32.vlgmr.msra.gmra.mrb[42].mxu1 %vm77_vm1, %v3862_v63  ;;  %v5082_v63 = vpack.c.bf16 %v4002_v26, %v4000_v25  ;;  %v4116_v26 = vld [vmem:[%s6498_s12 + $0x70] sm:$0xff] }
0x2995   :  { %4847 = vmatprep.mubr.msk.f32.mxu1 %vm5402_vm0, %v5401_v4 }
0x2a4a   :  { %v3830_v32 = vpop.f32.mrb[50].mxu0 }
0x2a4b   :  { %v3834_v42 = vadd.f32 %v3830_v32, %v6020_v20  ;;  %v4803_v2 = vpop.f32.mrb[51].mxu0  ;;  %v3999_v32 = vld [vmem:[%s6497_s10 + $0x80] sm:$0xff] }
0x2a4d   :  { %5384 = vtanh.f32 %v3834_v42  ;;  %v4282_v62 = vmul.f32 -1.442695, %v3834_v42  ;;  %v4001_v42 = vld [vmem:[%s6497_s10 + $0x90] sm:$0xff] }
0x2a57   :  { %v5385_v33 = vpop.eup %5384 }
0x2a58   :  { %3844 = vrot.lane.b32.xlu0 %v5385_v33, %s5403_s0 }
0x2a67   :  { %v3931_v14 = vpop.f32.mrb[42].mxu1 }
0x2a68   :  { %v3935_v11 = vadd.f32 %v3931_v14, %v5993_v44  ;;  %v4814_v35 = vpop.f32.mrb[43].mxu1  ;;  %v4004_v14 = vld [vmem:[%s6497_s10 + $0xa8] sm:$0xff] }
0x2a69   :  { %v5084_v35 = vpack.c.bf16 %v4001_v42, %v3999_v32 }
0x2a6a   :  { %5386 = vtanh.f32 %v3935_v11  ;;  %v4284_v40 = vmul.f32 -1.442695, %v3935_v11  ;;  %v4006_v11 = vld [vmem:[%s6497_s10 + $0xb8] sm:$0xff] }
0x2a6b   :  { %5388 = vpow2.f32 %v4282_v62 }
0x2a74   :  { %v5387_v37 = vpop.eup %5386 }
0x2a75   :  { %3945 = vrot.lane.b32.xlu1 %v5387_v37, %s5403_s0  ;;  %v5389_v39 = vpop.eup %5388  ;;  %v5086_v37 = vpack.c.bf16 %v4006_v11, %v4004_v14 }
0x2a76   :  { %v3838_v4 = vadd.f32 1.0, %v5389_v39  ;;  %v4008_v39 = vld [vmem:[%s6497_s10 + $0xc8] sm:$0xff] }
0x2a78   :  { %5390 = vrcp.f32 %v3838_v4  ;;  %v4010_v4 = vld [vmem:[%s6497_s10 + $0xd8] sm:$0xff] }
0x2a79   :  { %5392 = vpow2.f32 %v4284_v40 }
0x2a82   :  { %v5391_v20 = vpop.eup %5390 }
0x2a83   :  { %v5393_v6 = vpop.eup %5392  ;;  %v3842_v45 = vmul.f32 %v5391_v20, %v3646_v21  ;;  %v3996_v21 = vld [vmem:[%s6497_s10 + $0x68] sm:$0xff] }
0x2a84   :  { %v3939_v41 = vadd.f32 1.0, %v5393_v6  ;;  %v5078_v17 = vpack.c.bf16 %v3998_v22, %v3996_v21  ;;  %v4012_v6 = vld [vmem:[%s6497_s10 + $0xe8] sm:$0xff] }
0x2a86   :  { %5394 = vrcp.f32 %v3939_v41  ;;  %5079 = vmatprep.subr.bf16.mxu0 %v5078_v17  ;;  %v4014_v41 = vld [vmem:[%s6497_s10 + $0xf8] sm:$0xff] }
0x2a90   :  { %v6310_v44 = vpop.eup %5394 }
0x2a91   :  { %v3943_v50 = vmul.f32 %v6310_v44, %v3747_v0  ;;  %v3995_v0 = vld [vmem:[%s6497_s10 + $0x60] sm:$0xff] }
0x2a92   :  { %v5080_v31 = vpack.c.bf16 %v3997_v24, %v3995_v0  ;;  %v4114_v0 = vld [vmem:[%s6498_s12 + $0x60] sm:$0xff]  ;;  %v4115_v24 = vld [vmem:[%s6498_s12 + $0x68] sm:$0xff] }
0x2a93   :  { %v5117_v25 = vpack.c.bf16 %v4115_v24, %v4114_v0 }
0x2a94   :  { %5081 = vmatpush1.bf16.msra.mxu0 %v5080_v31  ;;  %v19_v31 = vstv %s6499_s13 }
0x2a95   :  { %5083 = vmatprep.subr.bf16.mxu0 %v5082_v63  ;;  %20 = vst [vmem:[#allocation6] sm:$0x1] %v19_v31  ;;  %v4015_v63 = vld [vmem:[%s6500_s11] sm:$0x3] }
0x2a96   :  { %v4024_v32 = vrot.slane %v4015_v63, %v5610_v38 }
0x2a98   :  { %5085 = vmatpush1.bf16.msra.mxu0 %v5084_v35 }
0x2a99   :  { %5087 = vmatprep.subr.bf16.mxu0 %v5086_v37 }
0x2aca   :  { %v3845_v51 = vpop.permute.xlu0 %3844 }
0x2acb   :  { %v3847_v59 = vmul.f32 %v5391_v20, %v3845_v51  ;;  %v4007_v51 = vld [vmem:[%s6497_s10 + $0xc0] sm:$0xff] }
0x2acd   :  { %3849 = vrot.lane.b32.xlu0 %v3847_v59, %s5404_s4  ;;  %v4009_v59 = vld [vmem:[%s6497_s10 + $0xd0] sm:$0xff] }
0x2ae7   :  { %v3946_v43 = vpop.permute.xlu1 %3945 }
0x2ae8   :  { %v3948_v10 = vmul.f32 %v6310_v44, %v3946_v43  ;;  %v5092_v43 = vpack.c.bf16 %v4009_v59, %v4007_v51 }
0x2aea   :  { %3950 = vrot.lane.b32.xlu1 %v3948_v10, %s5404_s4  ;;  %v5094_v10 = vpack.c.bf16 %v4014_v41, %v4012_v6 }
0x2b3f   :  { %v3850_v27 = vpop.permute.xlu0 %3849 }
0x2b40   :  { %v3852_v48 = vadd.f32 %v3850_v27, %v3842_v45  ;;  %v4011_v45 = vld [vmem:[%s6497_s10 + $0xe0] sm:$0xff]  ;;  %v4013_v27 = vld [vmem:[%s6497_s10 + $0xf0] sm:$0xff] }
0x2b42   :  { %5396 = vtanh.f32 %v3852_v48  ;;  %v5096_v48 = vpack.c.bf16 %v4013_v27, %v4011_v45 }
0x2b4c   :  { %v5397_v56 = vpop.eup %5396 }
0x2b4d   :  { %3855 = vrot.lane.b32.xlu0 %v5397_v56, %s5403_s0  ;;  %v4102_v56 = vld [vmem:[%s6498_s12] sm:$0xff] }
0x2b5c   :  { %v3951_v53 = vpop.permute.xlu1 %3950 }
0x2b5d   :  { %v3953_v58 = vadd.f32 %v3951_v53, %v3943_v50  ;;  %v4103_v50 = vld [vmem:[%s6498_s12 + $0x8] sm:$0xff]  ;;  %v4104_v53 = vld [vmem:[%s6498_s12 + $0x10] sm:$0xff] }
0x2b5f   :  { %5398 = vtanh.f32 %v3953_v58  ;;  %v5099_v58 = vpack.c.bf16 %v4103_v50, %v4102_v56 }
0x2b61   :  { %5100 = vmatpush3.bf16.msra.mxu1 %v5099_v58 }
0x2b62   :  { %5101 = vmatprep.subr.bf16.mxu1 %v5400_v3 }
0x2b69   :  { %v5399_v55 = vpop.eup %5398 }
0x2b6a   :  { %3956 = vrot.lane.b32.xlu1 %v5399_v55, %s5403_s0  ;;  %v4105_v55 = vld [vmem:[%s6498_s12 + $0x18] sm:$0xff] }
0x2b6b   :  { %v5102_v57 = vpack.c.bf16 %v4105_v55, %v4104_v53 }
0x2b6d   :  { %5103 = vmatpush3.bf16.msra.mxu1 %v5102_v57 }
0x2b6e   :  { %5104 = vmatprep.subr.bf16.mxu1 %v5400_v3 }
0x2b71   :  { %5106 = vmatpush3.bf16.msra.mxu1 %v5105_v49 }
0x2b72   :  { %5107 = vmatprep.subr.bf16.mxu1 %v5400_v3 }
0x2bbf   :  { %v3856_v61 = vpop.permute.xlu0 %3855 }
0x2bc0   :  { %v3858_v29 = vmul.f32 %v5391_v20, %v3856_v61  ;;  %v5090_v20 = vpack.c.bf16 %v4010_v4, %v4008_v39  ;;  %v4117_v61 = vld [vmem:[%s6498_s12 + $0x78] sm:$0xff] }
0x2bc2   :  { %v3960_v2 = vadd.f32 %v3858_v29, %v6284_v7  ;;  %v3962_v33 = vmax.f32 %v6289_v46, %v3858_v29  ;;  %v4003_v7 = vld [vmem:[%s6497_s10 + $0xa0] sm:$0xff]  ;;  %v4005_v46 = vld [vmem:[%s6497_s10 + $0xb0] sm:$0xff]  ;;  %v5120_v29 = vpack.c.bf16 %v4117_v61, %v4116_v26 }
0x2bc3   :  { %v5088_v40 = vpack.c.bf16 %v4005_v46, %v4003_v7  ;;  %v4285_v46 = vld [vmem:[#allocation6] ss:$0 sm:$0xff] }
0x2bc4   :  { %3967 = vrot.lane.b32.xlu0 %v3962_v33, %s5404_s4  ;;  %v3964_v62 = vmul.f32 0.125, %v3960_v2  ;;  %s5405_s4 = smov 96  }
0x2bc5   :  { %5089 = vmatpush1.bf16.msra.mxu0 %v5088_v40 }
0x2bc6   :  { %5091 = vmatprep.subr.bf16.mxu0 %v5090_v20 }
0x2bc8   :  { %3975 = vrot.lane.b32.xlu0 %v3964_v62, %s5405_s4 }
0x2bc9   :  { %5093 = vmatpush1.bf16.msra.mxu0 %v5092_v43 }
0x2bca   :  { %5095 = vmatprep.subr.bf16.mxu0 %v5094_v10 }
0x2bcd   :  { %5097 = vmatpush1.bf16.msra.mxu0 %v5096_v48 }
0x2bdc   :  { %v3957_v8 = vpop.permute.xlu1 %3956 }
0x2bdd   :  { %v3959_v1 = vmul.f32 %v6310_v44, %v3957_v8  ;;  %v5108_v44 = vpack.c.bf16 %v4109_v9, %v4108_v12 }
0x2bdf   :  { %v3961_v60 = vadd.f32 %v3959_v1, %v6293_v30  ;;  %v3963_v5 = vmax.f32 %v6298_v52, %v3959_v1  ;;  %v4110_v30 = vld [vmem:[%s6498_s12 + $0x40] sm:$0xff]  ;;  %v4111_v52 = vld [vmem:[%s6498_s12 + $0x48] sm:$0xff]  ;;  %5109 = vmatpush3.bf16.msra.mxu1 %v5108_v44 }
0x2be0   :  { %v5111_v16 = vpack.c.bf16 %v4111_v52, %v4110_v30  ;;  %5110 = vmatprep.subr.bf16.mxu1 %v5400_v3 }
0x2be1   :  { %3971 = vrot.lane.b32.xlu1 %v3963_v5, %s5403_s0  ;;  %v3965_v19 = vmul.f32 0.125, %v3961_v60 }
0x2be3   :  { %5112 = vmatpush3.bf16.msra.mxu1 %v5111_v16 }
0x2be4   :  { %5113 = vmatprep.subr.bf16.mxu1 %v5400_v3 }
0x2be7   :  { %5115 = vmatpush3.bf16.msra.mxu1 %v5114_v34 }
0x2be8   :  { %5116 = vmatprep.subr.bf16.mxu1 %v5400_v3 }
0x2beb   :  { %5118 = vmatpush3.bf16.msra.mxu1 %v5117_v25 }
0x2bec   :  { %5119 = vmatprep.subr.bf16.mxu1 %v5400_v3  ;;  %v4020_v3 = vrot.slane %v4015_v63, %v5605_v36 }
0x2bef   :  { %5121 = vmatpush3.bf16.msra.mxu1 %v5120_v29 }
0x2c36   :  { %v3968_v18 = vpop.permute.xlu0 %3967 }
0x2c3a   :  { %v3976_v21 = vpop.permute.xlu0 %3975 }
0x2c53   :  { %v3972_v13 = vpop.permute.xlu1 %3971 }
0x2c54   :  { %v3978_v22 = vsel %vm77_vm1, %v3968_v18, %v3972_v13 }
0x2c55   :  { %v3980_v15 = vsel %vm3979_vm2, %v3978_v22, %v3976_v21 }
0x2c56   :  { %v3982_v17 = vsel %vm3981_vm3, %v3980_v15, %v3965_v19 }
0x2c57   :  { %4092 = vmatmul.mubr.f32.vlgmr.msra.gmra.mrb[52].mxu0 %v3982_v17 }
0x2d2a   :  { %v4093_v42 = vpop.f32.mrb[52].mxu0 }
0x2d2b   :  { %v4094_v2 = vadd.f32 %v4093_v42, %v4020_v3  ;;  %v4095_v33 = vpop.f32.mrb[53].mxu0 }
0x2d2c   :  { %v4096_v14 = vadd.f32 %v4095_v33, %v4024_v32 }
0x2d2d   :  { %v4098_v11 = vmax.f32 %v4094_v2, 0.0 }
0x2d2e   :  { %v4099_v35 = vmax.f32 %v4096_v14, 0.0 }
0x2d2f   :  { %v4100_v37 = vadd.f32 %v4098_v11, %v3982_v17 }
0x2d31   :  { %v4101_v7 = vadd.f32 %v4100_v37, %v4099_v35 }
0x2d33   :  { %4848 = vmatmul.mubr.f32.vlgmr.msra.gmra.mrb[44].mxu1 %v4101_v7 }
0x2e06   :  { %v4191_v62 = vpop.f32.mrb[44].mxu1 }
0x2e07   :  { %v4192_v39 = vadd.f32 %v4285_v46, %v4191_v62  ;;  %v4849_v4 = vpop.f32.mrb[45].mxu1 }
0x2e09   :  { %4196 = vst.msk [vmem:[%s6501_s14] sm:$0xff] %vm4195_vm4, %v4192_v39 }

</bundles_post_ra>
